<compile_context>
chip_gen: v5e
topology: v5e:2x2
jax: 0.10.0
libtpu: 0.0.40
codegen_flags: <defaults>
</compile_context>

<pallas_src>
import jax
import jax.numpy as jnp
from jax.experimental import pallas as pl
from jax.experimental.pallas import tpu as pltpu


# ----------------------------------------------------------------------------
# parameter preprocessing (plain JAX glue)
# ----------------------------------------------------------------------------
def weight_standardize(w, eps=1e-5):
    """WeightStandardizedConv3d weight transform (float32 path, eps=1e-5)."""
    axes = tuple(range(1, w.ndim))
    mean = jnp.mean(w, axis=axes, keepdims=True)
    var = jnp.var(w, axis=axes, keepdims=True)      # unbiased=False
    return (w - mean) * jax.lax.rsqrt(var + eps)


def _round_up(x, m):
    return (x + m - 1) // m * m


# ----------------------------------------------------------------------------
# Pallas kernel
# ----------------------------------------------------------------------------
def _make_block_kernel(D, H, W, cpad, c_out, num_groups, pad_lanes, eps=1e-5):
    DHW = D * H * W
    cg = c_out // num_groups
    inv_cnt = 1.0 / float(cg * DHW)

    def kernel(x_ref, tss_ref, w_ref, mask_ref, pc_ref, gmat_ref,
               out_ref, xbuf_ref, patch_ref):
        # ---- stage x into a lane-padded flat buffer: [zeros | x | zeros] ----
        # only the two halo strips are zeroed (the interior is overwritten);
        # zeroed every step so each core is self-contained under "parallel".
        xbuf_ref[:, :pad_lanes] = jnp.zeros((cpad, pad_lanes), jnp.float32)
        xbuf_ref[:, pad_lanes + DHW:pad_lanes + DHW + pad_lanes] = (
            jnp.zeros((cpad, pad_lanes), jnp.float32))
        xbuf_ref[:, pad_lanes:pad_lanes + DHW] = x_ref[0]

        # ---- im2col: 27 shifted + masked copies stacked along K -------------
        k = 0
        for kd in range(3):
            for kh in range(3):
                for kw in range(3):
                    off = (kd - 1) * H * W + (kh - 1) * W + (kw - 1)
                    start = pad_lanes + off
                    shifted = xbuf_ref[:, start:start + DHW]     # (cpad, DHW)
                    m = mask_ref[k:k + 1, :]                     # (1, DHW)
                    patch_ref[k * cpad:(k + 1) * cpad, :] = shifted * m
                    k += 1

        # ---- conv: single fused matmul, bf16 MXU operands, f32 accumulate ---
        h = jnp.dot(w_ref[...], patch_ref[...].astype(jnp.bfloat16),
                    preferred_element_type=jnp.float32)          # (c_out, DHW)
        h = h + pc_ref[:, 0:1]                                   # conv bias

        # ---- GroupNorm (two-pass; group reduce via block-diagonal matmul) ---
        gh = jnp.dot(gmat_ref[...], h, preferred_element_type=jnp.float32)
        mean = jnp.sum(gh, axis=-1, keepdims=True) * inv_cnt     # (c_out, 1)
        d = h - mean
        gd2 = jnp.dot(gmat_ref[...], d * d, preferred_element_type=jnp.float32)
        var = jnp.sum(gd2, axis=-1, keepdims=True) * inv_cnt
        h = d * jax.lax.rsqrt(var + eps) * pc_ref[:, 1:2] + pc_ref[:, 2:3]

        # ---- optional time scale/shift, then SiLU ----------------------------
        ss = tss_ref[0]                                          # (c_out, 2)
        h = h * (ss[:, 0:1] + 1.0) + ss[:, 1:2]
        h = h * (1.0 / (1.0 + jnp.exp(-h)))                      # SiLU
        out_ref[...] = h.reshape(1, c_out, DHW)

    return kernel


# ----------------------------------------------------------------------------
# wrapper
# ----------------------------------------------------------------------------
def block_pallas(x_ncdhw, params, num_groups, time_scale_shift=None):
    B, c_in, D, H, W = x_ncdhw.shape
    c_out = params["b"].shape[0]
    DHW = D * H * W
    cpad = _round_up(c_in, 8)                       # sublane-aligned channel pad
    pad_lanes = _round_up(H * W + W + 1, 128)       # >= max |tap offset|, lane aligned

    # channel-major, lane-dense I/O: (B, C, D*H*W) -- pure reshape, no transpose
    x = x_ncdhw.astype(jnp.float32).reshape(B, c_in, DHW)
    if cpad != c_in:
        x = jnp.pad(x, ((0, 0), (0, cpad - c_in), (0, 0)))

    # weight standardization in f32, then bf16, laid out for im2col: (c_out, 27*cpad)
    w_std = weight_standardize(params["w"].astype(jnp.float32))
    w_std = jnp.pad(w_std, ((0, 0), (0, cpad - c_in), (0, 0), (0, 0), (0, 0)))
    w_mat = jnp.transpose(w_std, (0, 2, 3, 4, 1)).reshape(c_out, 27 * cpad)
    w_mat = w_mat.astype(jnp.bfloat16)

    # per-tap h/w boundary masks (the d boundary is handled by the lane padding)
    p = jnp.arange(DHW, dtype=jnp.int32)
    hh = (p // W) % H
    ww = p % W
    rows = []
    for kd in range(3):
        for kh in range(3):
            for kw in range(3):
                oh, ow = kh - 1, kw - 1
                rows.append((hh + oh >= 0) & (hh + oh < H) &
                            (ww + ow >= 0) & (ww + ow < W))
    masks = jnp.stack(rows, axis=0).astype(jnp.float32)          # (27, DHW)

    # packed per-channel params: [conv bias | gamma | beta]
    pc = jnp.stack([params["b"], params["gamma"], params["beta"]],
                   axis=-1).astype(jnp.float32)                  # (c_out, 3)

    # block-diagonal group matrix for GroupNorm reductions
    cg = c_out // num_groups
    ci = jnp.arange(c_out, dtype=jnp.int32)
    gmat = (ci[:, None] // cg == ci[None, :] // cg).astype(jnp.float32)

    # time scale/shift is optional in Block.forward; None -> identity (0, 0)
    if time_scale_shift is None:
        tss = jnp.zeros((B, c_out, 2), jnp.float32)
    else:
        scale, shift = time_scale_shift
        tss = jnp.stack([scale.reshape(B, c_out), shift.reshape(B, c_out)],
                        axis=-1).astype(jnp.float32)

    kernel = _make_block_kernel(D, H, W, cpad, c_out, num_groups, pad_lanes)

    out = pl.pallas_call(
        kernel,
        out_shape=jax.ShapeDtypeStruct((B, c_out, DHW), jnp.float32),
        grid=(B,),
        in_specs=[
            pl.BlockSpec((1, cpad, DHW), lambda b: (b, 0, 0)),
            pl.BlockSpec((1, c_out, 2), lambda b: (b, 0, 0)),
            pl.BlockSpec((c_out, 27 * cpad), lambda b: (0, 0)),
            pl.BlockSpec((27, DHW), lambda b: (0, 0)),
            pl.BlockSpec((c_out, 3), lambda b: (0, 0)),
            pl.BlockSpec((c_out, c_out), lambda b: (0, 0)),
        ],
        out_specs=pl.BlockSpec((1, c_out, DHW), lambda b: (b, 0, 0)),
        scratch_shapes=[
            pltpu.VMEM((cpad, pad_lanes + DHW + pad_lanes), jnp.float32),
            pltpu.VMEM((27 * cpad, DHW), jnp.float32),
        ],
        compiler_params=pltpu.CompilerParams(
            dimension_semantics=("parallel",),
            vmem_limit_bytes=32 * 1024 * 1024,
        ),
    )(x, tss, w_mat, masks, pc, gmat)

    return out.reshape(B, c_out, D, H, W)


# ----------------------------------------------------------------------------
# pure-JAX f32 reference (correctness check only)
# ----------------------------------------------------------------------------
def _conv3d_ref(x, w, b, padding):
    out = jax.lax.conv_general_dilated(
        x, w, window_strides=(1, 1, 1),
        padding=[(padding, padding)] * 3,
        dimension_numbers=("NCDHW", "OIDHW", "NCDHW"))
    return out + b[None, :, None, None, None]


def _group_norm_ref(x, gamma, beta, G, eps=1e-5):
    B, C, D, H, W = x.shape
    xg = x.reshape(B, G, C // G, D, H, W)
    mean = xg.mean(axis=(2, 3, 4, 5), keepdims=True)
    var = xg.var(axis=(2, 3, 4, 5), keepdims=True)
    xn = ((xg - mean) / jnp.sqrt(var + eps)).reshape(B, C, D, H, W)
    return xn * gamma[None, :, None, None, None] + beta[None, :, None, None, None]


def block_ref(x, params, G, time_scale_shift=None):
    h = _conv3d_ref(x, weight_standardize(params["w"]), params["b"], 1)
    h = _group_norm_ref(h, params["gamma"], params["beta"], G)
    if time_scale_shift is not None:
        scale, shift = time_scale_shift
        h = h * (scale[:, :, None, None, None] + 1.0) + shift[:, :, None, None, None]
    return h * jax.nn.sigmoid(h)


# ----------------------------------------------------------------------------
if __name__ == "__main__":
    B, Cin, Cout, D, H, W, G = 2, 4, 16, 8, 8, 8, 8

    key = jax.random.PRNGKey(0)
    ks = jax.random.split(key, 8)
    n = lambda k, s, sc: sc * jax.random.normal(k, s, jnp.float32)

    x = n(ks[0], (B, Cin, D, H, W), 1.0)            # PyTorch NCDHW input
    scale = n(ks[1], (B, Cout), 0.1)
    shift = n(ks[2], (B, Cout), 0.1)
    params = dict(
        w=n(ks[3], (Cout, Cin, 3, 3, 3), 0.2),
        b=n(ks[4], (Cout,), 0.1),
        gamma=1.0 + n(ks[5], (Cout,), 0.1),
        beta=n(ks[6], (Cout,), 0.1),
    )

    out = block_pallas(x, params, G, time_scale_shift=(scale, shift))
    out = jax.block_until_ready(out)

    ref = block_ref(x, params, G, time_scale_shift=(scale, shift))
    assert out.shape == (B, Cout, D, H, W), out.shape
    max_err = float(jnp.max(jnp.abs(out - ref)))
    # tolerance covers bf16 rounding of x / standardized weights on the MXU
    # (accumulation is f32); a real indexing/mask bug would produce O(1) errors.
    assert max_err < 5e-2, f"max abs err {max_err}"

    print("KERNEL_OK")
</pallas_src>

<mosaic_0001>
module attributes {stable_mosaic.version = 11 : i64} {
  func.func @kernel(%arg0: i32, %arg1: memref<1x8x512xf32, #tpu.memory_space<vmem>>, %arg2: memref<1x16x2xf32, #tpu.memory_space<vmem>>, %arg3: memref<16x216xbf16, #tpu.memory_space<vmem>>, %arg4: memref<27x512xf32, #tpu.memory_space<vmem>>, %arg5: memref<16x3xf32, #tpu.memory_space<vmem>>, %arg6: memref<16x16xf32, #tpu.memory_space<vmem>>, %arg7: memref<1x16x512xf32, #tpu.memory_space<vmem>>, %arg8: memref<8x768xf32, #tpu.memory_space<vmem>>, %arg9: memref<216x512xf32, #tpu.memory_space<vmem>>) attributes {dimension_semantics = [#tpu.dimension_semantics<parallel>], iteration_bounds = array<i64: 2>, scalar_prefetch = 0 : i64, scratch_operands = 2 : i64, tpu.core_type = #tpu.core_type<tc>, window_params = [{transform_indices = @transform_0, window_bounds = array<i64: 1, 8, 512>}, {transform_indices = @transform_1, window_bounds = array<i64: 1, 16, 2>}, {pipeline_mode = #tpu.pipeline_mode<synchronous>, transform_indices = @transform_2, window_bounds = array<i64: 16, 216>}, {pipeline_mode = #tpu.pipeline_mode<synchronous>, transform_indices = @transform_3, window_bounds = array<i64: 27, 512>}, {pipeline_mode = #tpu.pipeline_mode<synchronous>, transform_indices = @transform_4, window_bounds = array<i64: 16, 3>}, {pipeline_mode = #tpu.pipeline_mode<synchronous>, transform_indices = @transform_5, window_bounds = array<i64: 16, 16>}, {transform_indices = @transform_6, window_bounds = array<i64: 1, 16, 512>}]} {
    %cst = arith.constant 0.000000e+00 : f32
    %0 = vector.broadcast %cst : f32 to vector<8x128xf32>
    %c0 = arith.constant 0 : index
    %c0_0 = arith.constant 0 : index
    %1 = vector.load %arg8[%c0, %c0_0] : memref<8x768xf32, #tpu.memory_space<vmem>>, vector<8x128xf32>
    tpu.vector_store %arg8[%c0, %c0_0], %0 {strides = array<i32>} : memref<8x768xf32, #tpu.memory_space<vmem>>, vector<8x128xf32>,
    %cst_1 = arith.constant 0.000000e+00 : f32
    %2 = vector.broadcast %cst_1 : f32 to vector<8x128xf32>
    %c0_2 = arith.constant 0 : index
    %c640 = arith.constant 640 : index
    %3 = vector.load %arg8[%c0_2, %c640] : memref<8x768xf32, #tpu.memory_space<vmem>>, vector<8x128xf32>
    tpu.vector_store %arg8[%c0_2, %c640], %2 {strides = array<i32>} : memref<8x768xf32, #tpu.memory_space<vmem>>, vector<8x128xf32>,
    %c0_3 = arith.constant 0 : index
    %c0_4 = arith.constant 0 : index
    %c0_5 = arith.constant 0 : index
    %4 = vector.load %arg1[%c0_3, %c0_4, %c0_5] : memref<1x8x512xf32, #tpu.memory_space<vmem>>, vector<1x8x512xf32>
    %5 = vector.shape_cast %4 : vector<1x8x512xf32> to vector<8x512xf32>
    %c0_6 = arith.constant 0 : index
    %c128 = arith.constant 128 : index
    %6 = vector.load %arg8[%c0_6, %c128] : memref<8x768xf32, #tpu.memory_space<vmem>>, vector<8x512xf32>
    tpu.vector_store %arg8[%c0_6, %c128], %5 {strides = array<i32>} : memref<8x768xf32, #tpu.memory_space<vmem>>, vector<8x512xf32>,
    %c0_7 = arith.constant 0 : index
    %c55 = arith.constant 55 : index
    %7 = vector.load %arg8[%c0_7, %c55] : memref<8x768xf32, #tpu.memory_space<vmem>>, vector<8x512xf32>
    %c0_8 = arith.constant 0 : index
    %c0_9 = arith.constant 0 : index
    %8 = vector.load %arg4[%c0_8, %c0_9] : memref<27x512xf32, #tpu.memory_space<vmem>>, vector<1x512xf32>
    %9 = vector.broadcast %8 : vector<1x512xf32> to vector<8x512xf32>
    %10 = arith.mulf %7, %9 : vector<8x512xf32>
    %c0_10 = arith.constant 0 : index
    %c0_11 = arith.constant 0 : index
    %11 = vector.load %arg9[%c0_10, %c0_11] : memref<216x512xf32, #tpu.memory_space<vmem>>, vector<8x512xf32>
    tpu.vector_store %arg9[%c0_10, %c0_11], %10 {strides = array<i32>} : memref<216x512xf32, #tpu.memory_space<vmem>>, vector<8x512xf32>,
    %c0_12 = arith.constant 0 : index
    %c56 = arith.constant 56 : index
    %12 = vector.load %arg8[%c0_12, %c56] : memref<8x768xf32, #tpu.memory_space<vmem>>, vector<8x512xf32>
    %c1 = arith.constant 1 : index
    %c0_13 = arith.constant 0 : index
    %13 = vector.load %arg4[%c1, %c0_13] : memref<27x512xf32, #tpu.memory_space<vmem>>, vector<1x512xf32>
    %14 = vector.broadcast %13 : vector<1x512xf32> to vector<8x512xf32>
    %15 = arith.mulf %12, %14 : vector<8x512xf32>
    %c8 = arith.constant 8 : index
    %c0_14 = arith.constant 0 : index
    %16 = vector.load %arg9[%c8, %c0_14] : memref<216x512xf32, #tpu.memory_space<vmem>>, vector<8x512xf32>
    tpu.vector_store %arg9[%c8, %c0_14], %15 {strides = array<i32>} : memref<216x512xf32, #tpu.memory_space<vmem>>, vector<8x512xf32>,
    %c0_15 = arith.constant 0 : index
    %c57 = arith.constant 57 : index
    %17 = vector.load %arg8[%c0_15, %c57] : memref<8x768xf32, #tpu.memory_space<vmem>>, vector<8x512xf32>
    %c2 = arith.constant 2 : index
    %c0_16 = arith.constant 0 : index
    %18 = vector.load %arg4[%c2, %c0_16] : memref<27x512xf32, #tpu.memory_space<vmem>>, vector<1x512xf32>
    %19 = vector.broadcast %18 : vector<1x512xf32> to vector<8x512xf32>
    %20 = arith.mulf %17, %19 : vector<8x512xf32>
    %c16 = arith.constant 16 : index
    %c0_17 = arith.constant 0 : index
    %21 = vector.load %arg9[%c16, %c0_17] : memref<216x512xf32, #tpu.memory_space<vmem>>, vector<8x512xf32>
    tpu.vector_store %arg9[%c16, %c0_17], %20 {strides = array<i32>} : memref<216x512xf32, #tpu.memory_space<vmem>>, vector<8x512xf32>,
    %c0_18 = arith.constant 0 : index
    %c63 = arith.constant 63 : index
    %22 = vector.load %arg8[%c0_18, %c63] : memref<8x768xf32, #tpu.memory_space<vmem>>, vector<8x512xf32>
    %c3 = arith.constant 3 : index
    %c0_19 = arith.constant 0 : index
    %23 = vector.load %arg4[%c3, %c0_19] : memref<27x512xf32, #tpu.memory_space<vmem>>, vector<1x512xf32>
    %24 = vector.broadcast %23 : vector<1x512xf32> to vector<8x512xf32>
    %25 = arith.mulf %22, %24 : vector<8x512xf32>
    %c24 = arith.constant 24 : index
    %c0_20 = arith.constant 0 : index
    %26 = vector.load %arg9[%c24, %c0_20] : memref<216x512xf32, #tpu.memory_space<vmem>>, vector<8x512xf32>
    tpu.vector_store %arg9[%c24, %c0_20], %25 {strides = array<i32>} : memref<216x512xf32, #tpu.memory_space<vmem>>, vector<8x512xf32>,
    %c0_21 = arith.constant 0 : index
    %c64 = arith.constant 64 : index
    %27 = vector.load %arg8[%c0_21, %c64] : memref<8x768xf32, #tpu.memory_space<vmem>>, vector<8x512xf32>
    %c4 = arith.constant 4 : index
    %c0_22 = arith.constant 0 : index
    %28 = vector.load %arg4[%c4, %c0_22] : memref<27x512xf32, #tpu.memory_space<vmem>>, vector<1x512xf32>
    %29 = vector.broadcast %28 : vector<1x512xf32> to vector<8x512xf32>
    %30 = arith.mulf %27, %29 : vector<8x512xf32>
    %c32 = arith.constant 32 : index
    %c0_23 = arith.constant 0 : index
    %31 = vector.load %arg9[%c32, %c0_23] : memref<216x512xf32, #tpu.memory_space<vmem>>, vector<8x512xf32>
    tpu.vector_store %arg9[%c32, %c0_23], %30 {strides = array<i32>} : memref<216x512xf32, #tpu.memory_space<vmem>>, vector<8x512xf32>,
    %c0_24 = arith.constant 0 : index
    %c65 = arith.constant 65 : index
    %32 = vector.load %arg8[%c0_24, %c65] : memref<8x768xf32, #tpu.memory_space<vmem>>, vector<8x512xf32>
    %c5 = arith.constant 5 : index
    %c0_25 = arith.constant 0 : index
    %33 = vector.load %arg4[%c5, %c0_25] : memref<27x512xf32, #tpu.memory_space<vmem>>, vector<1x512xf32>
    %34 = vector.broadcast %33 : vector<1x512xf32> to vector<8x512xf32>
    %35 = arith.mulf %32, %34 : vector<8x512xf32>
    %c40 = arith.constant 40 : index
    %c0_26 = arith.constant 0 : index
    %36 = vector.load %arg9[%c40, %c0_26] : memref<216x512xf32, #tpu.memory_space<vmem>>, vector<8x512xf32>
    tpu.vector_store %arg9[%c40, %c0_26], %35 {strides = array<i32>} : memref<216x512xf32, #tpu.memory_space<vmem>>, vector<8x512xf32>,
    %c0_27 = arith.constant 0 : index
    %c71 = arith.constant 71 : index
    %37 = vector.load %arg8[%c0_27, %c71] : memref<8x768xf32, #tpu.memory_space<vmem>>, vector<8x512xf32>
    %c6 = arith.constant 6 : index
    %c0_28 = arith.constant 0 : index
    %38 = vector.load %arg4[%c6, %c0_28] : memref<27x512xf32, #tpu.memory_space<vmem>>, vector<1x512xf32>
    %39 = vector.broadcast %38 : vector<1x512xf32> to vector<8x512xf32>
    %40 = arith.mulf %37, %39 : vector<8x512xf32>
    %c48 = arith.constant 48 : index
    %c0_29 = arith.constant 0 : index
    %41 = vector.load %arg9[%c48, %c0_29] : memref<216x512xf32, #tpu.memory_space<vmem>>, vector<8x512xf32>
    tpu.vector_store %arg9[%c48, %c0_29], %40 {strides = array<i32>} : memref<216x512xf32, #tpu.memory_space<vmem>>, vector<8x512xf32>,
    %c0_30 = arith.constant 0 : index
    %c72 = arith.constant 72 : index
    %42 = vector.load %arg8[%c0_30, %c72] : memref<8x768xf32, #tpu.memory_space<vmem>>, vector<8x512xf32>
    %c7 = arith.constant 7 : index
    %c0_31 = arith.constant 0 : index
    %43 = vector.load %arg4[%c7, %c0_31] : memref<27x512xf32, #tpu.memory_space<vmem>>, vector<1x512xf32>
    %44 = vector.broadcast %43 : vector<1x512xf32> to vector<8x512xf32>
    %45 = arith.mulf %42, %44 : vector<8x512xf32>
    %c56_32 = arith.constant 56 : index
    %c0_33 = arith.constant 0 : index
    %46 = vector.load %arg9[%c56_32, %c0_33] : memref<216x512xf32, #tpu.memory_space<vmem>>, vector<8x512xf32>
    tpu.vector_store %arg9[%c56_32, %c0_33], %45 {strides = array<i32>} : memref<216x512xf32, #tpu.memory_space<vmem>>, vector<8x512xf32>,
    %c0_34 = arith.constant 0 : index
    %c73 = arith.constant 73 : index
    %47 = vector.load %arg8[%c0_34, %c73] : memref<8x768xf32, #tpu.memory_space<vmem>>, vector<8x512xf32>
    %c8_35 = arith.constant 8 : index
    %c0_36 = arith.constant 0 : index
    %48 = vector.load %arg4[%c8_35, %c0_36] : memref<27x512xf32, #tpu.memory_space<vmem>>, vector<1x512xf32>
    %49 = vector.broadcast %48 : vector<1x512xf32> to vector<8x512xf32>
    %50 = arith.mulf %47, %49 : vector<8x512xf32>
    %c64_37 = arith.constant 64 : index
    %c0_38 = arith.constant 0 : index
    %51 = vector.load %arg9[%c64_37, %c0_38] : memref<216x512xf32, #tpu.memory_space<vmem>>, vector<8x512xf32>
    tpu.vector_store %arg9[%c64_37, %c0_38], %50 {strides = array<i32>} : memref<216x512xf32, #tpu.memory_space<vmem>>, vector<8x512xf32>,
    %c0_39 = arith.constant 0 : index
    %c119 = arith.constant 119 : index
    %52 = vector.load %arg8[%c0_39, %c119] : memref<8x768xf32, #tpu.memory_space<vmem>>, vector<8x512xf32>
    %c9 = arith.constant 9 : index
    %c0_40 = arith.constant 0 : index
    %53 = vector.load %arg4[%c9, %c0_40] : memref<27x512xf32, #tpu.memory_space<vmem>>, vector<1x512xf32>
    %54 = vector.broadcast %53 : vector<1x512xf32> to vector<8x512xf32>
    %55 = arith.mulf %52, %54 : vector<8x512xf32>
    %c72_41 = arith.constant 72 : index
    %c0_42 = arith.constant 0 : index
    %56 = vector.load %arg9[%c72_41, %c0_42] : memref<216x512xf32, #tpu.memory_space<vmem>>, vector<8x512xf32>
    tpu.vector_store %arg9[%c72_41, %c0_42], %55 {strides = array<i32>} : memref<216x512xf32, #tpu.memory_space<vmem>>, vector<8x512xf32>,
    %c0_43 = arith.constant 0 : index
    %c120 = arith.constant 120 : index
    %57 = vector.load %arg8[%c0_43, %c120] : memref<8x768xf32, #tpu.memory_space<vmem>>, vector<8x512xf32>
    %c10 = arith.constant 10 : index
    %c0_44 = arith.constant 0 : index
    %58 = vector.load %arg4[%c10, %c0_44] : memref<27x512xf32, #tpu.memory_space<vmem>>, vector<1x512xf32>
    %59 = vector.broadcast %58 : vector<1x512xf32> to vector<8x512xf32>
    %60 = arith.mulf %57, %59 : vector<8x512xf32>
    %c80 = arith.constant 80 : index
    %c0_45 = arith.constant 0 : index
    %61 = vector.load %arg9[%c80, %c0_45] : memref<216x512xf32, #tpu.memory_space<vmem>>, vector<8x512xf32>
    tpu.vector_store %arg9[%c80, %c0_45], %60 {strides = array<i32>} : memref<216x512xf32, #tpu.memory_space<vmem>>, vector<8x512xf32>,
    %c0_46 = arith.constant 0 : index
    %c121 = arith.constant 121 : index
    %62 = vector.load %arg8[%c0_46, %c121] : memref<8x768xf32, #tpu.memory_space<vmem>>, vector<8x512xf32>
    %c11 = arith.constant 11 : index
    %c0_47 = arith.constant 0 : index
    %63 = vector.load %arg4[%c11, %c0_47] : memref<27x512xf32, #tpu.memory_space<vmem>>, vector<1x512xf32>
    %64 = vector.broadcast %63 : vector<1x512xf32> to vector<8x512xf32>
    %65 = arith.mulf %62, %64 : vector<8x512xf32>
    %c88 = arith.constant 88 : index
    %c0_48 = arith.constant 0 : index
    %66 = vector.load %arg9[%c88, %c0_48] : memref<216x512xf32, #tpu.memory_space<vmem>>, vector<8x512xf32>
    tpu.vector_store %arg9[%c88, %c0_48], %65 {strides = array<i32>} : memref<216x512xf32, #tpu.memory_space<vmem>>, vector<8x512xf32>,
    %c0_49 = arith.constant 0 : index
    %c127 = arith.constant 127 : index
    %67 = vector.load %arg8[%c0_49, %c127] : memref<8x768xf32, #tpu.memory_space<vmem>>, vector<8x512xf32>
    %c12 = arith.constant 12 : index
    %c0_50 = arith.constant 0 : index
    %68 = vector.load %arg4[%c12, %c0_50] : memref<27x512xf32, #tpu.memory_space<vmem>>, vector<1x512xf32>
    %69 = vector.broadcast %68 : vector<1x512xf32> to vector<8x512xf32>
    %70 = arith.mulf %67, %69 : vector<8x512xf32>
    %c96 = arith.constant 96 : index
    %c0_51 = arith.constant 0 : index
    %71 = vector.load %arg9[%c96, %c0_51] : memref<216x512xf32, #tpu.memory_space<vmem>>, vector<8x512xf32>
    tpu.vector_store %arg9[%c96, %c0_51], %70 {strides = array<i32>} : memref<216x512xf32, #tpu.memory_space<vmem>>, vector<8x512xf32>,
    %c0_52 = arith.constant 0 : index
    %c128_53 = arith.constant 128 : index
    %72 = vector.load %arg8[%c0_52, %c128_53] : memref<8x768xf32, #tpu.memory_space<vmem>>, vector<8x512xf32>
    %c13 = arith.constant 13 : index
    %c0_54 = arith.constant 0 : index
    %73 = vector.load %arg4[%c13, %c0_54] : memref<27x512xf32, #tpu.memory_space<vmem>>, vector<1x512xf32>
    %74 = vector.broadcast %73 : vector<1x512xf32> to vector<8x512xf32>
    %75 = arith.mulf %72, %74 : vector<8x512xf32>
    %c104 = arith.constant 104 : index
    %c0_55 = arith.constant 0 : index
    %76 = vector.load %arg9[%c104, %c0_55] : memref<216x512xf32, #tpu.memory_space<vmem>>, vector<8x512xf32>
    tpu.vector_store %arg9[%c104, %c0_55], %75 {strides = array<i32>} : memref<216x512xf32, #tpu.memory_space<vmem>>, vector<8x512xf32>,
    %c0_56 = arith.constant 0 : index
    %c129 = arith.constant 129 : index
    %77 = vector.load %arg8[%c0_56, %c129] : memref<8x768xf32, #tpu.memory_space<vmem>>, vector<8x512xf32>
    %c14 = arith.constant 14 : index
    %c0_57 = arith.constant 0 : index
    %78 = vector.load %arg4[%c14, %c0_57] : memref<27x512xf32, #tpu.memory_space<vmem>>, vector<1x512xf32>
    %79 = vector.broadcast %78 : vector<1x512xf32> to vector<8x512xf32>
    %80 = arith.mulf %77, %79 : vector<8x512xf32>
    %c112 = arith.constant 112 : index
    %c0_58 = arith.constant 0 : index
    %81 = vector.load %arg9[%c112, %c0_58] : memref<216x512xf32, #tpu.memory_space<vmem>>, vector<8x512xf32>
    tpu.vector_store %arg9[%c112, %c0_58], %80 {strides = array<i32>} : memref<216x512xf32, #tpu.memory_space<vmem>>, vector<8x512xf32>,
    %c0_59 = arith.constant 0 : index
    %c135 = arith.constant 135 : index
    %82 = vector.load %arg8[%c0_59, %c135] : memref<8x768xf32, #tpu.memory_space<vmem>>, vector<8x512xf32>
    %c15 = arith.constant 15 : index
    %c0_60 = arith.constant 0 : index
    %83 = vector.load %arg4[%c15, %c0_60] : memref<27x512xf32, #tpu.memory_space<vmem>>, vector<1x512xf32>
    %84 = vector.broadcast %83 : vector<1x512xf32> to vector<8x512xf32>
    %85 = arith.mulf %82, %84 : vector<8x512xf32>
    %c120_61 = arith.constant 120 : index
    %c0_62 = arith.constant 0 : index
    %86 = vector.load %arg9[%c120_61, %c0_62] : memref<216x512xf32, #tpu.memory_space<vmem>>, vector<8x512xf32>
    tpu.vector_store %arg9[%c120_61, %c0_62], %85 {strides = array<i32>} : memref<216x512xf32, #tpu.memory_space<vmem>>, vector<8x512xf32>,
    %c0_63 = arith.constant 0 : index
    %c136 = arith.constant 136 : index
    %87 = vector.load %arg8[%c0_63, %c136] : memref<8x768xf32, #tpu.memory_space<vmem>>, vector<8x512xf32>
    %c16_64 = arith.constant 16 : index
    %c0_65 = arith.constant 0 : index
    %88 = vector.load %arg4[%c16_64, %c0_65] : memref<27x512xf32, #tpu.memory_space<vmem>>, vector<1x512xf32>
    %89 = vector.broadcast %88 : vector<1x512xf32> to vector<8x512xf32>
    %90 = arith.mulf %87, %89 : vector<8x512xf32>
    %c128_66 = arith.constant 128 : index
    %c0_67 = arith.constant 0 : index
    %91 = vector.load %arg9[%c128_66, %c0_67] : memref<216x512xf32, #tpu.memory_space<vmem>>, vector<8x512xf32>
    tpu.vector_store %arg9[%c128_66, %c0_67], %90 {strides = array<i32>} : memref<216x512xf32, #tpu.memory_space<vmem>>, vector<8x512xf32>,
    %c0_68 = arith.constant 0 : index
    %c137 = arith.constant 137 : index
    %92 = vector.load %arg8[%c0_68, %c137] : memref<8x768xf32, #tpu.memory_space<vmem>>, vector<8x512xf32>
    %c17 = arith.constant 17 : index
    %c0_69 = arith.constant 0 : index
    %93 = vector.load %arg4[%c17, %c0_69] : memref<27x512xf32, #tpu.memory_space<vmem>>, vector<1x512xf32>
    %94 = vector.broadcast %93 : vector<1x512xf32> to vector<8x512xf32>
    %95 = arith.mulf %92, %94 : vector<8x512xf32>
    %c136_70 = arith.constant 136 : index
    %c0_71 = arith.constant 0 : index
    %96 = vector.load %arg9[%c136_70, %c0_71] : memref<216x512xf32, #tpu.memory_space<vmem>>, vector<8x512xf32>
    tpu.vector_store %arg9[%c136_70, %c0_71], %95 {strides = array<i32>} : memref<216x512xf32, #tpu.memory_space<vmem>>, vector<8x512xf32>,
    %c0_72 = arith.constant 0 : index
    %c183 = arith.constant 183 : index
    %97 = vector.load %arg8[%c0_72, %c183] : memref<8x768xf32, #tpu.memory_space<vmem>>, vector<8x512xf32>
    %c18 = arith.constant 18 : index
    %c0_73 = arith.constant 0 : index
    %98 = vector.load %arg4[%c18, %c0_73] : memref<27x512xf32, #tpu.memory_space<vmem>>, vector<1x512xf32>
    %99 = vector.broadcast %98 : vector<1x512xf32> to vector<8x512xf32>
    %100 = arith.mulf %97, %99 : vector<8x512xf32>
    %c144 = arith.constant 144 : index
    %c0_74 = arith.constant 0 : index
    %101 = vector.load %arg9[%c144, %c0_74] : memref<216x512xf32, #tpu.memory_space<vmem>>, vector<8x512xf32>
    tpu.vector_store %arg9[%c144, %c0_74], %100 {strides = array<i32>} : memref<216x512xf32, #tpu.memory_space<vmem>>, vector<8x512xf32>,
    %c0_75 = arith.constant 0 : index
    %c184 = arith.constant 184 : index
    %102 = vector.load %arg8[%c0_75, %c184] : memref<8x768xf32, #tpu.memory_space<vmem>>, vector<8x512xf32>
    %c19 = arith.constant 19 : index
    %c0_76 = arith.constant 0 : index
    %103 = vector.load %arg4[%c19, %c0_76] : memref<27x512xf32, #tpu.memory_space<vmem>>, vector<1x512xf32>
    %104 = vector.broadcast %103 : vector<1x512xf32> to vector<8x512xf32>
    %105 = arith.mulf %102, %104 : vector<8x512xf32>
    %c152 = arith.constant 152 : index
    %c0_77 = arith.constant 0 : index
    %106 = vector.load %arg9[%c152, %c0_77] : memref<216x512xf32, #tpu.memory_space<vmem>>, vector<8x512xf32>
    tpu.vector_store %arg9[%c152, %c0_77], %105 {strides = array<i32>} : memref<216x512xf32, #tpu.memory_space<vmem>>, vector<8x512xf32>,
    %c0_78 = arith.constant 0 : index
    %c185 = arith.constant 185 : index
    %107 = vector.load %arg8[%c0_78, %c185] : memref<8x768xf32, #tpu.memory_space<vmem>>, vector<8x512xf32>
    %c20 = arith.constant 20 : index
    %c0_79 = arith.constant 0 : index
    %108 = vector.load %arg4[%c20, %c0_79] : memref<27x512xf32, #tpu.memory_space<vmem>>, vector<1x512xf32>
    %109 = vector.broadcast %108 : vector<1x512xf32> to vector<8x512xf32>
    %110 = arith.mulf %107, %109 : vector<8x512xf32>
    %c160 = arith.constant 160 : index
    %c0_80 = arith.constant 0 : index
    %111 = vector.load %arg9[%c160, %c0_80] : memref<216x512xf32, #tpu.memory_space<vmem>>, vector<8x512xf32>
    tpu.vector_store %arg9[%c160, %c0_80], %110 {strides = array<i32>} : memref<216x512xf32, #tpu.memory_space<vmem>>, vector<8x512xf32>,
    %c0_81 = arith.constant 0 : index
    %c191 = arith.constant 191 : index
    %112 = vector.load %arg8[%c0_81, %c191] : memref<8x768xf32, #tpu.memory_space<vmem>>, vector<8x512xf32>
    %c21 = arith.constant 21 : index
    %c0_82 = arith.constant 0 : index
    %113 = vector.load %arg4[%c21, %c0_82] : memref<27x512xf32, #tpu.memory_space<vmem>>, vector<1x512xf32>
    %114 = vector.broadcast %113 : vector<1x512xf32> to vector<8x512xf32>
    %115 = arith.mulf %112, %114 : vector<8x512xf32>
    %c168 = arith.constant 168 : index
    %c0_83 = arith.constant 0 : index
    %116 = vector.load %arg9[%c168, %c0_83] : memref<216x512xf32, #tpu.memory_space<vmem>>, vector<8x512xf32>
    tpu.vector_store %arg9[%c168, %c0_83], %115 {strides = array<i32>} : memref<216x512xf32, #tpu.memory_space<vmem>>, vector<8x512xf32>,
    %c0_84 = arith.constant 0 : index
    %c192 = arith.constant 192 : index
    %117 = vector.load %arg8[%c0_84, %c192] : memref<8x768xf32, #tpu.memory_space<vmem>>, vector<8x512xf32>
    %c22 = arith.constant 22 : index
    %c0_85 = arith.constant 0 : index
    %118 = vector.load %arg4[%c22, %c0_85] : memref<27x512xf32, #tpu.memory_space<vmem>>, vector<1x512xf32>
    %119 = vector.broadcast %118 : vector<1x512xf32> to vector<8x512xf32>
    %120 = arith.mulf %117, %119 : vector<8x512xf32>
    %c176 = arith.constant 176 : index
    %c0_86 = arith.constant 0 : index
    %121 = vector.load %arg9[%c176, %c0_86] : memref<216x512xf32, #tpu.memory_space<vmem>>, vector<8x512xf32>
    tpu.vector_store %arg9[%c176, %c0_86], %120 {strides = array<i32>} : memref<216x512xf32, #tpu.memory_space<vmem>>, vector<8x512xf32>,
    %c0_87 = arith.constant 0 : index
    %c193 = arith.constant 193 : index
    %122 = vector.load %arg8[%c0_87, %c193] : memref<8x768xf32, #tpu.memory_space<vmem>>, vector<8x512xf32>
    %c23 = arith.constant 23 : index
    %c0_88 = arith.constant 0 : index
    %123 = vector.load %arg4[%c23, %c0_88] : memref<27x512xf32, #tpu.memory_space<vmem>>, vector<1x512xf32>
    %124 = vector.broadcast %123 : vector<1x512xf32> to vector<8x512xf32>
    %125 = arith.mulf %122, %124 : vector<8x512xf32>
    %c184_89 = arith.constant 184 : index
    %c0_90 = arith.constant 0 : index
    %126 = vector.load %arg9[%c184_89, %c0_90] : memref<216x512xf32, #tpu.memory_space<vmem>>, vector<8x512xf32>
    tpu.vector_store %arg9[%c184_89, %c0_90], %125 {strides = array<i32>} : memref<216x512xf32, #tpu.memory_space<vmem>>, vector<8x512xf32>,
    %c0_91 = arith.constant 0 : index
    %c199 = arith.constant 199 : index
    %127 = vector.load %arg8[%c0_91, %c199] : memref<8x768xf32, #tpu.memory_space<vmem>>, vector<8x512xf32>
    %c24_92 = arith.constant 24 : index
    %c0_93 = arith.constant 0 : index
    %128 = vector.load %arg4[%c24_92, %c0_93] : memref<27x512xf32, #tpu.memory_space<vmem>>, vector<1x512xf32>
    %129 = vector.broadcast %128 : vector<1x512xf32> to vector<8x512xf32>
    %130 = arith.mulf %127, %129 : vector<8x512xf32>
    %c192_94 = arith.constant 192 : index
    %c0_95 = arith.constant 0 : index
    %131 = vector.load %arg9[%c192_94, %c0_95] : memref<216x512xf32, #tpu.memory_space<vmem>>, vector<8x512xf32>
    tpu.vector_store %arg9[%c192_94, %c0_95], %130 {strides = array<i32>} : memref<216x512xf32, #tpu.memory_space<vmem>>, vector<8x512xf32>,
    %c0_96 = arith.constant 0 : index
    %c200 = arith.constant 200 : index
    %132 = vector.load %arg8[%c0_96, %c200] : memref<8x768xf32, #tpu.memory_space<vmem>>, vector<8x512xf32>
    %c25 = arith.constant 25 : index
    %c0_97 = arith.constant 0 : index
    %133 = vector.load %arg4[%c25, %c0_97] : memref<27x512xf32, #tpu.memory_space<vmem>>, vector<1x512xf32>
    %134 = vector.broadcast %133 : vector<1x512xf32> to vector<8x512xf32>
    %135 = arith.mulf %132, %134 : vector<8x512xf32>
    %c200_98 = arith.constant 200 : index
    %c0_99 = arith.constant 0 : index
    %136 = vector.load %arg9[%c200_98, %c0_99] : memref<216x512xf32, #tpu.memory_space<vmem>>, vector<8x512xf32>
    tpu.vector_store %arg9[%c200_98, %c0_99], %135 {strides = array<i32>} : memref<216x512xf32, #tpu.memory_space<vmem>>, vector<8x512xf32>,
    %c0_100 = arith.constant 0 : index
    %c201 = arith.constant 201 : index
    %137 = vector.load %arg8[%c0_100, %c201] : memref<8x768xf32, #tpu.memory_space<vmem>>, vector<8x512xf32>
    %c26 = arith.constant 26 : index
    %c0_101 = arith.constant 0 : index
    %138 = vector.load %arg4[%c26, %c0_101] : memref<27x512xf32, #tpu.memory_space<vmem>>, vector<1x512xf32>
    %139 = vector.broadcast %138 : vector<1x512xf32> to vector<8x512xf32>
    %140 = arith.mulf %137, %139 : vector<8x512xf32>
    %c208 = arith.constant 208 : index
    %c0_102 = arith.constant 0 : index
    %141 = vector.load %arg9[%c208, %c0_102] : memref<216x512xf32, #tpu.memory_space<vmem>>, vector<8x512xf32>
    tpu.vector_store %arg9[%c208, %c0_102], %140 {strides = array<i32>} : memref<216x512xf32, #tpu.memory_space<vmem>>, vector<8x512xf32>,
    %c0_103 = arith.constant 0 : index
    %c0_104 = arith.constant 0 : index
    %142 = vector.load %arg3[%c0_103, %c0_104] : memref<16x216xbf16, #tpu.memory_space<vmem>>, vector<16x216xbf16>
    %c0_105 = arith.constant 0 : index
    %c0_106 = arith.constant 0 : index
    %143 = vector.load %arg9[%c0_105, %c0_106] : memref<216x512xf32, #tpu.memory_space<vmem>>, vector<216x512xf32>
    %144 = arith.truncf %143 : vector<216x512xf32> to vector<216x512xbf16>
    %cst_107 = arith.constant dense<0.000000e+00> : vector<16x512xf32>
    %145 = tpu.matmul %142, %144, %cst_107 {dimension_numbers = #tpu.dot_dimension_numbers<[1], [0], [0], [1], [0, 0, 1, 1], [], []>} : vector<16x216xbf16>, vector<216x512xbf16>, vector<16x512xf32> -> vector<16x512xf32>
    %c0_108 = arith.constant 0 : index
    %c0_109 = arith.constant 0 : index
    %146 = vector.load %arg5[%c0_108, %c0_109] : memref<16x3xf32, #tpu.memory_space<vmem>>, vector<16x1xf32>
    %147 = vector.broadcast %146 : vector<16x1xf32> to vector<16x512xf32>
    %148 = arith.addf %145, %147 : vector<16x512xf32>
    %c0_110 = arith.constant 0 : index
    %c0_111 = arith.constant 0 : index
    %149 = vector.load %arg6[%c0_110, %c0_111] : memref<16x16xf32, #tpu.memory_space<vmem>>, vector<16x16xf32>
    %cst_112 = arith.constant dense<0.000000e+00> : vector<16x512xf32>
    %150 = tpu.matmul %149, %148, %cst_112 {dimension_numbers = #tpu.dot_dimension_numbers<[1], [0], [0], [1], [0, 0, 1, 1], [], []>} : vector<16x16xf32>, vector<16x512xf32>, vector<16x512xf32> -> vector<16x512xf32>
    %cst_113 = arith.constant dense<0.000000e+00> : vector<16xf32>
    %151 = vector.multi_reduction <add>, %150, %cst_113 [1] : vector<16x512xf32> to vector<16xf32>
    %152 = vector.shape_cast %151 : vector<16xf32> to vector<16x1xf32>
    %cst_114 = arith.constant 9.765625E-4 : f32
    %153 = vector.broadcast %cst_114 : f32 to vector<16x1xf32>
    %154 = arith.mulf %152, %153 : vector<16x1xf32>
    %155 = vector.broadcast %154 : vector<16x1xf32> to vector<16x512xf32>
    %156 = arith.subf %148, %155 : vector<16x512xf32>
    %c0_115 = arith.constant 0 : index
    %c0_116 = arith.constant 0 : index
    %157 = vector.load %arg6[%c0_115, %c0_116] : memref<16x16xf32, #tpu.memory_space<vmem>>, vector<16x16xf32>
    %158 = arith.mulf %156, %156 : vector<16x512xf32>
    %cst_117 = arith.constant dense<0.000000e+00> : vector<16x512xf32>
    %159 = tpu.matmul %157, %158, %cst_117 {dimension_numbers = #tpu.dot_dimension_numbers<[1], [0], [0], [1], [0, 0, 1, 1], [], []>} : vector<16x16xf32>, vector<16x512xf32>, vector<16x512xf32> -> vector<16x512xf32>
    %cst_118 = arith.constant dense<0.000000e+00> : vector<16xf32>
    %160 = vector.multi_reduction <add>, %159, %cst_118 [1] : vector<16x512xf32> to vector<16xf32>
    %161 = vector.shape_cast %160 : vector<16xf32> to vector<16x1xf32>
    %cst_119 = arith.constant 9.765625E-4 : f32
    %162 = vector.broadcast %cst_119 : f32 to vector<16x1xf32>
    %163 = arith.mulf %161, %162 : vector<16x1xf32>
    %cst_120 = arith.constant 9.99999974E-6 : f32
    %164 = vector.broadcast %cst_120 : f32 to vector<16x1xf32>
    %165 = arith.addf %163, %164 : vector<16x1xf32>
    %166 = math.rsqrt %165 : vector<16x1xf32>
    %167 = vector.broadcast %166 : vector<16x1xf32> to vector<16x512xf32>
    %168 = arith.mulf %156, %167 : vector<16x512xf32>
    %c0_121 = arith.constant 0 : index
    %c1_122 = arith.constant 1 : index
    %169 = vector.load %arg5[%c0_121, %c1_122] : memref<16x3xf32, #tpu.memory_space<vmem>>, vector<16x1xf32>
    %170 = vector.broadcast %169 : vector<16x1xf32> to vector<16x512xf32>
    %171 = arith.mulf %168, %170 : vector<16x512xf32>
    %c0_123 = arith.constant 0 : index
    %c2_124 = arith.constant 2 : index
    %172 = vector.load %arg5[%c0_123, %c2_124] : memref<16x3xf32, #tpu.memory_space<vmem>>, vector<16x1xf32>
    %173 = vector.broadcast %172 : vector<16x1xf32> to vector<16x512xf32>
    %174 = arith.addf %171, %173 : vector<16x512xf32>
    %c0_125 = arith.constant 0 : index
    %c0_126 = arith.constant 0 : index
    %c0_127 = arith.constant 0 : index
    %175 = vector.load %arg2[%c0_125, %c0_126, %c0_127] : memref<1x16x2xf32, #tpu.memory_space<vmem>>, vector<1x16x2xf32>
    %176 = vector.shape_cast %175 : vector<1x16x2xf32> to vector<16x2xf32>
    %177 = vector.extract_strided_slice %176 {offsets = [0, 0], sizes = [16, 1], strides = [1, 1]} : vector<16x2xf32> to vector<16x1xf32>
    %cst_128 = arith.constant 1.000000e+00 : f32
    %178 = vector.broadcast %cst_128 : f32 to vector<16x1xf32>
    %179 = arith.addf %177, %178 : vector<16x1xf32>
    %180 = vector.broadcast %179 : vector<16x1xf32> to vector<16x512xf32>
    %181 = arith.mulf %174, %180 : vector<16x512xf32>
    %182 = vector.extract_strided_slice %176 {offsets = [0, 1], sizes = [16, 1], strides = [1, 1]} : vector<16x2xf32> to vector<16x1xf32>
    %183 = vector.broadcast %182 : vector<16x1xf32> to vector<16x512xf32>
    %184 = arith.addf %181, %183 : vector<16x512xf32>
    %cst_129 = arith.constant 0.000000e+00 : f32
    %185 = vector.broadcast %cst_129 : f32 to vector<16x512xf32>
    %186 = arith.subf %185, %184 : vector<16x512xf32>
    %187 = math.exp %186 : vector<16x512xf32>
    %cst_130 = arith.constant 1.000000e+00 : f32
    %188 = vector.broadcast %cst_130 : f32 to vector<16x512xf32>
    %189 = arith.addf %188, %187 : vector<16x512xf32>
    %cst_131 = arith.constant 1.000000e+00 : f32
    %190 = vector.broadcast %cst_131 : f32 to vector<16x512xf32>
    %191 = arith.divf %190, %189 : vector<16x512xf32>
    %192 = arith.mulf %184, %191 : vector<16x512xf32>
    %193 = vector.shape_cast %192 : vector<16x512xf32> to vector<1x16x512xf32>
    %c0_132 = arith.constant 0 : index
    %c0_133 = arith.constant 0 : index
    %c0_134 = arith.constant 0 : index
    %194 = vector.load %arg7[%c0_132, %c0_133, %c0_134] : memref<1x16x512xf32, #tpu.memory_space<vmem>>, vector<1x16x512xf32>
    tpu.vector_store %arg7[%c0_132, %c0_133, %c0_134], %193 {strides = array<i32>} : memref<1x16x512xf32, #tpu.memory_space<vmem>>, vector<1x16x512xf32>,
    return
  }
  func.func @transform_0(%arg0: i32) -> (i32, i32, i32) {
    %c0_i32 = arith.constant 0 : i32
    %c0_i32_0 = arith.constant 0 : i32
    %c0_i32_1 = arith.constant 0 : i32
    return %arg0, %c0_i32, %c0_i32_0 : i32, i32, i32
  }
  func.func @transform_1(%arg0: i32) -> (i32, i32, i32) {
    %c0_i32 = arith.constant 0 : i32
    %c0_i32_0 = arith.constant 0 : i32
    %c0_i32_1 = arith.constant 0 : i32
    return %arg0, %c0_i32, %c0_i32_0 : i32, i32, i32
  }
  func.func @transform_2(%arg0: i32) -> (i32, i32) {
    %c0_i32 = arith.constant 0 : i32
    %c0_i32_0 = arith.constant 0 : i32
    %c0_i32_1 = arith.constant 0 : i32
    return %c0_i32, %c0_i32_0 : i32, i32
  }
  func.func @transform_3(%arg0: i32) -> (i32, i32) {
    %c0_i32 = arith.constant 0 : i32
    %c0_i32_0 = arith.constant 0 : i32
    %c0_i32_1 = arith.constant 0 : i32
    return %c0_i32, %c0_i32_0 : i32, i32
  }
  func.func @transform_4(%arg0: i32) -> (i32, i32) {
    %c0_i32 = arith.constant 0 : i32
    %c0_i32_0 = arith.constant 0 : i32
    %c0_i32_1 = arith.constant 0 : i32
    return %c0_i32, %c0_i32_0 : i32, i32
  }
  func.func @transform_5(%arg0: i32) -> (i32, i32) {
    %c0_i32 = arith.constant 0 : i32
    %c0_i32_0 = arith.constant 0 : i32
    %c0_i32_1 = arith.constant 0 : i32
    return %c0_i32, %c0_i32_0 : i32, i32
  }
  func.func @transform_6(%arg0: i32) -> (i32, i32, i32) {
    %c0_i32 = arith.constant 0 : i32
    %c0_i32_0 = arith.constant 0 : i32
    %c0_i32_1 = arith.constant 0 : i32
    return %arg0, %c0_i32, %c0_i32_0 : i32, i32, i32
  }
}

</mosaic_0001>

<bundles_post_ra>
// kernel: tpu_custom_call.1
= control target key start
LH: loop header
LB: loop body
LE: loop exit
PB: predicated region body
PF: predicated region fallthrough
CT: control target
= control target key end

     0   :  { %11 = vsyncpa [#allocation5], 0  ;;  %s5575_s0 = inlined_call_operand.hbm [shape: f32[2,8,512], index: 0, kind: input, shape index: {}]   ;;  %s5576_s1 = inlined_call_operand.vmem [shape: f32[2,16,2], index: 1, kind: input, shape index: {}]   ;;  %s5577_s2 = inlined_call_operand.vmem [shape: bf16[16,216], index: 2, kind: input, shape index: {}]   ;;  %s5578_s3 = inlined_call_operand.hbm [shape: f32[27,512], index: 3, kind: input, shape index: {}]   ;;  %s5579_s4 = inlined_call_operand.vmem [shape: f32[16,3], index: 4, kind: input, shape index: {}]   ;;  %s5580_s5 = inlined_call_operand.vmem [shape: f32[16,16], index: 5, kind: input, shape index: {}]   ;;  %s5581_s6 = inlined_call_operand.hbm [shape: f32[2,16,512], index: 6, kind: output, shape index: {}]  }
   0x1   :  { %13 = vsyncpa [#allocation5 + $0x1], 0 }
   0x2   :  { %14 = vsyncpa [#allocation8], 0 }
   0x3   :  { %15 = vsyncpa [#allocation6], 0 }
   0x4   :  { %17 = vsyncpa [#allocation6 + $0x1], 0  ;;  %s3514_s21 = smov 0   ;;  %s3516_s22 = smov 0  }
   0x5   :  { %s3518_s23 = smov 0   ;;  %s3520_s24 = smov 0  }
   0x6 LB: > { %s204_s27 = sshll.u32 %s5578_s3, 4  ;;  %s3538_s28 = sadd.s32 4294967295, %s3452_s24   ;;  %s3452_s24 = sphi %s3520_s24, %s5791_s24   ;;  %s3448_s23 = sphi %s3518_s23, %s5790_s23   ;;  %s3444_s22 = sphi %s3516_s22, %s5789_s22   ;;  %s3440_s21 = sphi %s3514_s21, %s5788_s21   ;;  %s205_s27 = int_to_ptr.hbm [resolvable:$true] %s204_s27 }
   0x7   : > { %p2848_p0 = scmp.ge.s32.totalorder %s3452_s24, 1  ;;  %p44_p1 = scmp.eq.s32.totalorder %s3538_s28, 0 }
   0x8   : > { %p190_p2 = scmp.lt.s32.totalorder %s3452_s24, 3  ;;  %s3454_s30 = smov [#allocation7]  }
   0x9   : > { %s206_s7 = sshll.u32 %s3454_s30, 4  ;;  %s3455_s8 = smov 512   ;;  %s207_s7 = int_to_ptr.vmem [resolvable:$true] %s206_s7 }
   0xa   : > { %p3543_p3 = pnand %p2848_p0, %p190_p2  ;;  %s3456_s9 = smov 32  }
   0xb   : > { %s2847_s10 = sadd.s32 4294967294, %s3452_s24   ;;  %s3554_s11 = sadd.s32 1, %s3452_s24  }
   0xc   : > { %p2908_p4 = pneg %p3543_p3  ;;  %s30_s12 = sadd.s32 1, %s3448_s23 }
   0xd   : > { %s27_s13 = ssub.s32 %s3452_s24, %s3554_s11  ;;  %p37_p7 = scmp.ne.s32.totalorder %s3448_s23, %s3444_s22 }
   0xe   : > { %p2909_p6 = pnand %p2908_p4, %p44_p1  ;;  %p28_p8 = scmp.eq.s32.totalorder %s27_s13, 0 }
   0xf   : > { %p38_p9 = scmp.eq.s32.totalorder %s3452_s24, 0  ;;  %p43_p10 = scmp.ne.s32.totalorder %s3444_s22, %s3440_s21 }
  0x10   : > { %2911 = dma.hbm_to_vmem [thread:$0]  (!%p2909_p6), %s205_s27, 2048, %s207_s7, [#allocation8], %s3455_s8, %s3455_s8, %s3456_s9  }
  0x11   : > { %p177_p11 = scmp.eq.s32.totalorder %s3538_s28, 1  ;;  %p3570_p12 = por %p44_p1, %p43_p10 }
  0x12   : > { %s3566_s14 = scalar_select %p28_p8, %s3448_s23, %s30_s12  }
  0x13   : > { %p3574_p13 = por %p177_p11, %p37_p7  ;;  %p183_p0 = scmp.eq.s32.totalorder %s2847_s10, 1 }
  0x14   : > { %p39_p2 = por %p38_p9, %p37_p7  ;;  %s226_s17 = sand.u32 1, %s3448_s23  }
  0x15   : > { %p3579_p4 = por %p183_p0, %p43_p10  ;;  %p2921_p6 = scmp.lt.s32.totalorder %s3452_s24, 2 }
  0x16   : > { %s2851_s19 = sshll.u32 %s226_s17, 5  ;;  %s2893_s20 = sshll.u32 %s3452_s24, 5 }
  0x17   : > { %s235_s27 = scalar_lea.hbm %s5575_s0, %s2893_s20  ;;  %s230_s7 = scalar_lea.vmem [#allocation4], %s2851_s19 }
  0x18   : > { %s237_s30 = sshll.u32 %s235_s27, 4  ;;  %s239_s8 = sshll.u32 %s230_s7, 4  ;;  %s238_s30 = int_to_ptr.hbm [resolvable:$true] %s237_s30  ;;  %s240_s8 = int_to_ptr.vmem [resolvable:$true] %s239_s8 }
  0x19   : > { %p3588_p8 = pnand %p2921_p6, %p39_p2  ;;  %s227_s10 = scalar_lea.sflag [#allocation5], %s226_s17 }
  0x1a   : > { %s3352_s12 = sshra.s32 %s238_s30, 4  ;;  %s3359_s19 = scalar_lea.hbm %s5575_s0, 64  ;;  %s3353_s12 = int_to_ptr.hbm [resolvable:$true] %s3352_s12 }
  0x1b   : > { %s3354_s13 = scalar_lea.hbm %s3353_s12, 32  ;;  %p3356_p9 = pneg %p3588_p8 }
  0x1c   : > { %p3355_p7 = scmp.ne.s32.totalorder %s3353_s12, %s3354_s13  ;;  %p3360_p0 = scmp.lt.s32.totalorder %s3353_s12, %s5575_s0 }
  0x1d   : > { %p3361_p2 = scmp.lt.s32.totalorder %s3359_s19, %s3354_s13 }
  0x1e   : > { %p3357_p10 = pnand %p3356_p9, %p3355_p7 }
  0x1f   : > { %p3362_p6 = por %p3361_p2, %p3360_p0 }
  0x20   : > { %p3358_p11 = pneg %p3357_p10 }
  0x22   : > { %p3363_p5 = pnand %p3362_p6, %p3358_p11 }
  0x24   : > { %3366 = shalt.err (!%p3363_p5)
}
  0x25   : > { %2915 = dma.hbm_to_vmem [thread:$0]  (!%p3588_p8), %s238_s30, 512, %s240_s8, %s227_s10  }
  0x26   : > { %256 = sbr.rel (%p3543_p3) target bundleno = 1428 (0x594), region = 44 }
  0x2b   : > { %s3605_s17 = sand.u32 1, %s3444_s22  }
  0x2c   : > { %s2855_s7 = sshll.u32 %s3605_s17, 5  ;;  %s259_s20 = scalar_lea.sflag [#allocation5], %s3605_s17 }
  0x2d   : > { %s3609_s25 = scalar_lea.vmem [#allocation4], %s2855_s7 }
  0x2e   : > { %3427 = dma.done.wait (%p3570_p12), %s259_s20, 512  }
  0x2f   : > { %3429 = vsyncadd (%p3570_p12), %s259_s20, 4294966784 }
  0x30   : > { %3431 = dma.done.wait (%p44_p1), [#allocation8], 2048  }
  0x31   : > { %3433 = vsyncadd (%p44_p1), [#allocation8], 4294965248  ;;  %v323_v0 = vld [vmem:[#allocation7] ss:$8 sm:$0xf]  ;;  %s5632_s29 = smov 55  }
  0x32   : > { %v385_v1 = vld [vmem:[#allocation7 + $0x1] ss:$8 sm:$0xf]  ;;  %v327_v2 = vperm.slane %v323_v0, 2  ;;  %v325_v3 = vperm.slane %v323_v0, 0  ;;  %s3458_s30 = smov 56  }
  0x33   : > { %v388_v4 = vperm.slane %v385_v1, 1  ;;  %v447_v5 = vld [vmem:[#allocation7 + $0x2] ss:$8 sm:$0xf]  ;;  %v328_v6 = vperm.slane %v323_v0, 3  ;;  %v326_v7 = vperm.slane %v323_v0, 1 }
  0x34   : > { %333 = vrot.lane.b32.xlu1 %v327_v2, %s5632_s29  ;;  %329 = vrot.lane.b32.xlu0 %v325_v3, %s5632_s29  ;;  %v449_v8 = vperm.slane %v447_v5, 0  ;;  %s3459_s15 = smov 57   ;;  %v387_v9 = vperm.slane %v385_v1, 0  ;;  %v389_v10 = vperm.slane %v385_v1, 2  ;;  %v452_v11 = vperm.slane %v447_v5, 3  ;;  %s3460_s8 = smov 73  }
  0x35   : > { %393 = vrot.lane.b32.xlu2 %v388_v4, %s3458_s30  ;;  %v3628_v12 = vld [vmem:[#allocation7 + $0x62] ss:$8 sm:$0xf]  ;;  %v390_v13 = vperm.slane %v385_v1, 3  ;;  %v450_v14 = vperm.slane %v447_v5, 1  ;;  %v451_v17 = vperm.slane %v447_v5, 2 }
  0x36   : > { %v1867_v15 = vperm.slane %v3628_v12, 2  ;;  %v3634_v16 = vld [vmem:[#allocation7 + $0x26] ss:$8 sm:$0xf]  ;;  %v1865_v18 = vperm.slane %v3628_v12, 0  ;;  %s5586_s9 = smov 1  }
  0x37   : > { %v1147_v19 = vperm.slane %v3634_v16, 2  ;;  %v3641_v20 = vld [vmem:[#allocation7 + $0x27] ss:$8 sm:$0xf]  ;;  %v1866_v21 = vperm.slane %v3628_v12, 1  ;;  %v1145_v22 = vperm.slane %v3634_v16, 0 }
  0x38   : > { %v1207_v23 = vperm.slane %v3641_v20, 2  ;;  %s5584_s10 = smov 7   ;;  %v3649_v24 = vld [vmem:[#allocation7 + $0x60] ss:$8 sm:$0xf]  ;;  %v1146_v25 = vperm.slane %v3634_v16, 1 }
  0x39   : > { %v1205_v26 = vperm.slane %v3641_v20, 0  ;;  %v1747_v27 = vperm.slane %v3649_v24, 2  ;;  %s5628_s12 = smov 71   ;;  %v3657_v28 = vld [vmem:[#allocation7 + $0x61] ss:$8 sm:$0xf] }
  0x3a   : > { %v1206_v29 = vperm.slane %v3641_v20, 1  ;;  %v1745_v30 = vperm.slane %v3649_v24, 0  ;;  %v1807_v31 = vperm.slane %v3657_v28, 2  ;;  %s5621_s13 = smov 72   ;;  %v1746_v33 = vperm.slane %v3649_v24, 1  ;;  %s5590_s19 = smov 127  }
  0x3b   : > { %v3665_v32 = vld [vmem:[#allocation7 + $0x24] ss:$8 sm:$0xf]  ;;  %v1805_v34 = vperm.slane %v3657_v28, 0  ;;  %v1806_v37 = vperm.slane %v3657_v28, 1  ;;  %s3466_s26 = smov 64  }
  0x3c   : > { %335 = vrot.lane.b32.xlu1 %v328_v6, %s5632_s29  ;;  %331 = vrot.lane.b32.xlu0 %v326_v7, %s5632_s29  ;;  %v1062_v35 = vperm.slane %v3665_v32, 2  ;;  %v3673_v36 = vld [vmem:[#allocation7 + $0x46] ss:$8 sm:$0xf]  ;;  %v1060_v38 = vperm.slane %v3665_v32, 0  ;;  %v1061_v41 = vperm.slane %v3665_v32, 1 }
  0x3d   : > { %453 = vrot.lane.b32.xlu2 %v449_v8, %s3459_s15  ;;  %v1627_v39 = vperm.slane %v3673_v36, 2  ;;  %v3681_v40 = vld [vmem:[#allocation7 + $0x47] ss:$8 sm:$0xf]  ;;  %v1625_v42 = vperm.slane %v3673_v36, 0  ;;  %s5582_s27 = smov 65  }
  0x3e   : > { %v1687_v43 = vperm.slane %v3681_v40, 2  ;;  %v3689_v44 = vld [vmem:[#allocation7 + $0x22] ss:$8 sm:$0xf]  ;;  %v1626_v45 = vperm.slane %v3673_v36, 1  ;;  %v1685_v46 = vperm.slane %v3681_v40, 0 }
  0x3f   : > { %v938_v47 = vperm.slane %v3689_v44, 2  ;;  %s5588_s7 = smov 120   ;;  %v3697_v48 = vld [vmem:[#allocation7 + $0x23] ss:$8 sm:$0xf]  ;;  %v1686_v50 = vperm.slane %v3681_v40, 1 }
  0x40   : > { %v936_v51 = vperm.slane %v3689_v44, 0  ;;  %v1000_v52 = vperm.slane %v3697_v48, 2  ;;  %s5625_s20 = smov 121   ;;  %v937_v54 = vperm.slane %v3689_v44, 1  ;;  %v998_v55 = vperm.slane %v3697_v48, 0  ;;  %v3712_v56 = vld [vmem:[%s3609_s25 + $0x18] sm:$0xff] }
  0x41   : > { %v999_v58 = vperm.slane %v3697_v48, 1  ;;  %vm337_vm0 = vcmask 449536   ;;  %v3721_v63 = vld [vmem:[%s3609_s25] sm:$0xff]  ;;  %v3730_v8 = vld [vmem:[%s3609_s25 + $0x10] sm:$0xff]  ;;  %vm399_vm1 = vcmask 457728   ;;  %vm461_vm2 = vcmask 465920  }
  0x42   : > { %vm5630_vm3 = vcmask 596992   ;;  %vm428_vm4 = vcmask 588800   ;;  %vm490_vm5 = vcmask 580608   ;;  %vm523_vm6 = vcmask 515072   ;;  %p302_p1 = scmp.lt.s32.totalorder %s3538_s28, 1 }
  0x43   : > { %vm886_vm7 = vcmask 973824   ;;  %vm5635_vm8 = vcmask 7168   ;;  %vm1039_vm9 = vcmask 56320   ;;  %vm1072_vm10 = vcmask 1039360  }
  0x44   : > { %391 = vrot.lane.b32.xlu1 %v387_v9, %s3458_s30  ;;  %395 = vrot.lane.b32.xlu0 %v389_v10, %s3458_s30  ;;  %v3734_v10 = vld [vmem:[%s3609_s25 + $0x8] sm:$0xff]  ;;  %vm585_vm11 = vcmask 523264   ;;  %vm552_vm12 = vcmask 531456   ;;  %vm5627_vm13 = vcmask 982016   ;;  %vm1010_vm14 = vcmask 990208  }
  0x45   : > { %459 = vrot.lane.b32.xlu2 %v452_v11, %s3459_s15  ;;  %vm5638_vm15 = vcmask 64512  }
  0x4c   : > { %397 = vrot.lane.b32.xlu1 %v390_v13, %s3458_s30  ;;  %455 = vrot.lane.b32.xlu0 %v450_v14, %s3459_s15 }
  0x4d   : > { %1873 = vrot.lane.b32.xlu2 %v1867_v15, %s3460_s8 }
  0x54   : > { %457 = vrot.lane.b32.xlu1 %v451_v17, %s3459_s15  ;;  %1869 = vrot.lane.b32.xlu0 %v1865_v18, %s3460_s8 }
  0x55   : > { %1153 = vrot.lane.b32.xlu2 %v1147_v19, %s5586_s9 }
  0x5c   : > { %1871 = vrot.lane.b32.xlu1 %v1866_v21, %s3460_s8  ;;  %1149 = vrot.lane.b32.xlu0 %v1145_v22, %s5586_s9 }
  0x5d   : > { %1213 = vrot.lane.b32.xlu2 %v1207_v23, %s5584_s10 }
  0x64   : > { %1151 = vrot.lane.b32.xlu1 %v1146_v25, %s5586_s9  ;;  %1209 = vrot.lane.b32.xlu0 %v1205_v26, %s5584_s10 }
  0x65   : > { %1753 = vrot.lane.b32.xlu2 %v1747_v27, %s5628_s12 }
  0x6c   : > { %1211 = vrot.lane.b32.xlu1 %v1206_v29, %s5584_s10  ;;  %1749 = vrot.lane.b32.xlu0 %v1745_v30, %s5628_s12 }
  0x6d   : > { %1813 = vrot.lane.b32.xlu2 %v1807_v31, %s5621_s13 }
  0x74   : > { %1751 = vrot.lane.b32.xlu1 %v1746_v33, %s5628_s12  ;;  %1809 = vrot.lane.b32.xlu0 %v1805_v34, %s5621_s13 }
  0x75   : > { %1068 = vrot.lane.b32.xlu2 %v1062_v35, %s5590_s19 }
  0x7c   : > { %1811 = vrot.lane.b32.xlu1 %v1806_v37, %s5621_s13  ;;  %1064 = vrot.lane.b32.xlu0 %v1060_v38, %s5590_s19 }
  0x7d   : > { %1633 = vrot.lane.b32.xlu2 %v1627_v39, %s3466_s26 }
  0x84   : > { %1066 = vrot.lane.b32.xlu1 %v1061_v41, %s5590_s19  ;;  %1629 = vrot.lane.b32.xlu0 %v1625_v42, %s3466_s26  ;;  %v3758_v42 = vld [vmem:[#allocation7 + $0x44] ss:$8 sm:$0xf] }
  0x85   : > { %1693 = vrot.lane.b32.xlu2 %v1687_v43, %s5582_s27 }
  0x8c   : > { %1631 = vrot.lane.b32.xlu1 %v1626_v45, %s3466_s26  ;;  %1689 = vrot.lane.b32.xlu0 %v1685_v46, %s5582_s27 }
  0x8d   : > { %944 = vrot.lane.b32.xlu2 %v938_v47, %s5588_s7 }
  0x8f   : > { %v394_v49 = vpop.permute.xlu2 %393 }
  0x94   : > { %1691 = vrot.lane.b32.xlu1 %v1686_v50, %s5582_s27  ;;  %940 = vrot.lane.b32.xlu0 %v936_v51, %s5588_s7  ;;  %s3470_s27 = smov 63  }
  0x95   : > { %1006 = vrot.lane.b32.xlu2 %v1000_v52, %s5625_s20  ;;  %v1505_v52 = vperm.slane %v3758_v42, 0 }
  0x97   : > { %v3705_v53 = vpop.permute.xlu2 %453 }
  0x98   : > { %v470_v47 = vmul.f32 0.0, %v3705_v53 }
  0x9c   : > { %942 = vrot.lane.b32.xlu1 %v937_v54, %s5588_s7  ;;  %1002 = vrot.lane.b32.xlu0 %v998_v55, %s5625_s20 }
  0x9f   : > { %v460_v57 = vpop.permute.xlu2 %459 }
  0xa0   : > { %v474_v59 = vmul.f32 %v460_v57, %v3712_v56 }
  0xa2   : > { %488 = vrot.lane.b32.xlu2 %v474_v59, %s5628_s12  ;;  %v1148_v59 = vperm.slane %v3634_v16, 3  ;;  %v1506_v16 = vperm.slane %v3758_v42, 1 }
  0xa4   : > { %1004 = vrot.lane.b32.xlu1 %v999_v58, %s5625_s20  ;;  %v3773_v58 = vld [vmem:[#allocation7 + $0x45] ss:$8 sm:$0xf] }
  0xa6   : > { %v334_v60 = vpop.permute.xlu1 %333  ;;  %v330_v61 = vpop.permute.xlu0 %329 }
  0xa7   : > { %v3718_v62 = vpop.permute.xlu2 %1873  ;;  %v346_v0 = vmul.f32 0.0, %v330_v61 }
  0xae   : > { %v336_v1 = vpop.permute.xlu1 %335  ;;  %v332_v2 = vpop.permute.xlu0 %331 }
  0xaf   : > { %v350_v3 = vmul.f32 %v336_v1, %v3712_v56  ;;  %v338_v4 = vsel %vm337_vm0, %v330_v61, %v332_v2  ;;  %v3725_v5 = vpop.permute.xlu2 %1153  ;;  %v340_v9 = vsel %vm337_vm0, %v334_v60, %v336_v1  ;;  %v339_v11 = vsel %vm337_vm0, %v332_v2, %v334_v60  ;;  %v3787_v1 = vld [vmem:[#allocation7 + $0x20] ss:$8 sm:$0xf] }
  0xb0   : > { %v347_v6 = vmul.f32 %v338_v4, %v3721_v63  ;;  %v349_v13 = vmul.f32 %v340_v9, %v3730_v8  ;;  %v348_v14 = vmul.f32 %v339_v11, %v3734_v10  ;;  %v1565_v60 = vperm.slane %v3773_v58, 0 }
  0xb1   : > { %364 = vrot.lane.b32.xlu0 %v350_v3, %s3460_s8  ;;  %v814_v3 = vperm.slane %v3787_v1, 0  ;;  %v1567_v11 = vperm.slane %v3773_v58, 2 }
  0xb2   : > { %v2981_v7 = vpack.i.bf16 %v347_v6, %v346_v0  ;;  %v2986_v19 = vpack.i.bf16 %v349_v13, %v348_v14  ;;  %v1566_v13 = vperm.slane %v3773_v58, 1 }
  0xb4   : > { %2982 = vrot.lane.b32.xlu2 %v2981_v7, %s3460_s8  ;;  %v3801_v7 = vld [vmem:[#allocation7 + $0x21] ss:$8 sm:$0xf] }
  0xb5   : > { %v874_v14 = vperm.slane %v3801_v7, 0 }
  0xb6   : > { %v392_v15 = vpop.permute.xlu1 %391  ;;  %v396_v17 = vpop.permute.xlu0 %395 }
  0xb7   : > { %v3740_v18 = vpop.permute.xlu2 %1213  ;;  %v400_v21 = vsel %vm399_vm1, %v392_v15, %v394_v49  ;;  %v401_v22 = vsel %vm399_vm1, %v394_v49, %v396_v17  ;;  %v408_v23 = vmul.f32 0.0, %v392_v15 }
  0xb8   : > { %v409_v25 = vmul.f32 %v400_v21, %v3721_v63  ;;  %v410_v33 = vmul.f32 %v401_v22, %v3734_v10  ;;  %v815_v21 = vperm.slane %v3787_v1, 1  ;;  %v1868_v22 = vperm.slane %v3628_v12, 3 }
  0xba   : > { %v2991_v37 = vpack.i.bf16 %v409_v25, %v408_v23  ;;  %v3823_v25 = vld [vmem:[#allocation7 + $0x42] ss:$8 sm:$0xf] }
  0xbc   : > { %2987 = vrot.lane.b32.xlu2 %v2986_v19, %s3460_s8  ;;  %v816_v19 = vperm.slane %v3787_v1, 2 }
  0xbe   : > { %v398_v26 = vpop.permute.xlu1 %397  ;;  %v456_v27 = vpop.permute.xlu0 %455 }
  0xbf   : > { %v402_v29 = vsel %vm399_vm1, %v396_v17, %v398_v26  ;;  %v412_v30 = vmul.f32 %v398_v26, %v3712_v56  ;;  %v3748_v31 = vpop.permute.xlu2 %1753  ;;  %v462_v38 = vsel %vm461_vm2, %v3705_v53, %v456_v27  ;;  %v1208_v53 = vperm.slane %v3641_v20, 3 }
  0xc0   : > { %v411_v34 = vmul.f32 %v402_v29, %v3730_v8  ;;  %v471_v39 = vmul.f32 %v462_v38, %v3721_v63  ;;  %v1507_v20 = vperm.slane %v3758_v42, 2  ;;  %v876_v26 = vperm.slane %v3801_v7, 2 }
  0xc1   : > { %426 = vrot.lane.b32.xlu1 %v412_v30, %s5621_s13  ;;  %v1386_v30 = vperm.slane %v3823_v25, 1 }
  0xc2   : > { %v2996_v35 = vpack.i.bf16 %v411_v34, %v410_v33  ;;  %v3001_v55 = vpack.i.bf16 %v471_v39, %v470_v47  ;;  %v3837_v34 = vld [vmem:[#allocation7 + $0x43] ss:$8 sm:$0xf] }
  0xc3   : > { %v1446_v38 = vperm.slane %v3837_v34, 1  ;;  %v1445_v47 = vperm.slane %v3837_v34, 0 }
  0xc4   : > { %2997 = vrot.lane.b32.xlu0 %v2996_v35, %s5621_s13  ;;  %2992 = vrot.lane.b32.xlu2 %v2991_v37, %s5621_s13  ;;  %v1385_v35 = vperm.slane %v3823_v25, 0  ;;  %v1063_v37 = vperm.slane %v3665_v32, 3  ;;  %v1387_v32 = vperm.slane %v3823_v25, 2 }
  0xc6   : > { %v458_v41 = vpop.permute.xlu1 %457  ;;  %v3760_v43 = vpop.permute.xlu0 %1869 }
  0xc7   : > { %v463_v45 = vsel %vm461_vm2, %v456_v27, %v458_v41  ;;  %v464_v46 = vsel %vm461_vm2, %v458_v41, %v460_v57  ;;  %v3767_v51 = vpop.permute.xlu2 %1813  ;;  %v875_v27 = vperm.slane %v3801_v7, 1 }
  0xc8   : > { %v472_v49 = vmul.f32 %v463_v45, %v3734_v10  ;;  %v473_v50 = vmul.f32 %v464_v46, %v3730_v8  ;;  %v3851_v46 = vld [vmem:[#allocation7 + $0x6] ss:$8 sm:$0xf] }
  0xca   : > { %v3006_v54 = vpack.i.bf16 %v473_v50, %v472_v49  ;;  %v695_v49 = vperm.slane %v3851_v46, 1 }
  0xcc   : > { %3007 = vrot.lane.b32.xlu1 %v3006_v54, %s5628_s12  ;;  %3002 = vrot.lane.b32.xlu0 %v3001_v55, %s5628_s12  ;;  %v3863_v54 = vld [vmem:[#allocation7 + $0x7] ss:$8 sm:$0xf] }
  0xcd   : > { %1509 = vrot.lane.b32.xlu2 %v1505_v52, %s3459_s15 }
  0xce   : > { %v3775_v57 = vpop.permute.xlu0 %1149  ;;  %v3782_v0 = vpop.permute.xlu1 %1871 }
  0xcf   : > { %v3780_v61 = vpop.permute.xlu2 %1068 }
  0xd4   : > { %1215 = vrot.lane.b32.xlu1 %v1208_v53, %s5584_s10  ;;  %1155 = vrot.lane.b32.xlu0 %v1148_v59, %s5586_s9  ;;  %s5619_s10 = smov 119   ;;  %v694_v53 = vperm.slane %v3851_v46, 0  ;;  %v1447_v59 = vperm.slane %v3837_v34, 2  ;;  %s5629_s9 = smov 8  }
  0xd5   : > { %1569 = vrot.lane.b32.xlu2 %v1565_v60, %s3470_s27  ;;  %v755_v60 = vperm.slane %v3863_v54, 1 }
  0xd6   : > { %v3789_v2 = vpop.permute.xlu0 %1209  ;;  %v3799_v6 = vpop.permute.xlu1 %1151 }
  0xd7   : > { %v3796_v4 = vpop.permute.xlu2 %1633 }
  0xdc   : > { %1513 = vrot.lane.b32.xlu1 %v1507_v20, %s3459_s15  ;;  %1511 = vrot.lane.b32.xlu0 %v1506_v16, %s3459_s15 }
  0xdd   : > { %818 = vrot.lane.b32.xlu2 %v814_v3, %s3460_s8  ;;  %v754_v3 = vperm.slane %v3863_v54, 0 }
  0xde   : > { %v3803_v9 = vpop.permute.xlu0 %1749  ;;  %v3813_v17 = vpop.permute.xlu1 %1211 }
  0xdf   : > { %v3811_v15 = vpop.permute.xlu2 %1693 }
  0xe4   : > { %1573 = vrot.lane.b32.xlu1 %v1567_v11, %s3470_s27  ;;  %1571 = vrot.lane.b32.xlu0 %v1566_v13, %s3470_s27  ;;  %v696_v11 = vperm.slane %v3851_v46, 2 }
  0xe5   : > { %878 = vrot.lane.b32.xlu2 %v874_v14, %s5619_s10  ;;  %v1001_v14 = vperm.slane %v3697_v48, 3 }
  0xe6   : > { %v3818_v23 = vpop.permute.xlu0 %1809  ;;  %v3830_v33 = vpop.permute.xlu1 %1751 }
  0xe7   : > { %v3827_v29 = vpop.permute.xlu2 %944 }
  0xec   : > { %822 = vrot.lane.b32.xlu1 %v816_v19, %s3460_s8  ;;  %820 = vrot.lane.b32.xlu0 %v815_v21, %s3460_s8  ;;  %v3885_v21 = vld [vmem:[#allocation7 + $0x40] ss:$8 sm:$0xf] }
  0xed   : > { %1875 = vrot.lane.b32.xlu2 %v1868_v22, %s3460_s8  ;;  %v939_v22 = vperm.slane %v3689_v44, 3  ;;  %v1266_v44 = vperm.slane %v3885_v21, 1 }
  0xee   : > { %v3832_v12 = vpop.permute.xlu0 %1064  ;;  %v3844_v41 = vpop.permute.xlu1 %1811 }
  0xef   : > { %v3842_v39 = vpop.permute.xlu2 %1006 }
  0xf0   : > { %5662 = vst [vmem:[#allocation13_spill] sm:$0xff] %v3842_v39 }
  0xf4   : > { %882 = vrot.lane.b32.xlu1 %v876_v26, %s5619_s10  ;;  %880 = vrot.lane.b32.xlu0 %v875_v27, %s5619_s10  ;;  %v756_v26 = vperm.slane %v3863_v54, 2  ;;  %v1267_v27 = vperm.slane %v3885_v21, 2 }
  0xf5   : > { %1391 = vrot.lane.b32.xlu2 %v1386_v30, %s5632_s29 }
  0xf6   : > { %v3849_v45 = vpop.permute.xlu0 %1629  ;;  %v3861_v52 = vpop.permute.xlu1 %1066 }
  0xfc   : > { %1389 = vrot.lane.b32.xlu1 %v1385_v35, %s5632_s29  ;;  %1070 = vrot.lane.b32.xlu0 %v1063_v37, %s5590_s19  ;;  %v3858_v50 = vpop.permute.xlu2 %488  ;;  %v3899_v37 = vld [vmem:[#allocation7 + $0x41] ss:$8 sm:$0xf]  ;;  %s5671_s19 = smov 65  }
  0xfd   : > { %1451 = vrot.lane.b32.xlu2 %v1446_v38, %s3458_s30  ;;  %5663 = vst [vmem:[#allocation14_spill] sm:$0xff] %v3858_v50  ;;  %v1265_v38 = vperm.slane %v3885_v21, 0 }
  0xfe   : > { %v3865_v55 = vpop.permute.xlu0 %1689  ;;  %v3875_v16 = vpop.permute.xlu1 %1631 }
 0x104   : > { %1449 = vrot.lane.b32.xlu1 %v1445_v47, %s3458_s30  ;;  %1393 = vrot.lane.b32.xlu0 %v1387_v32, %s5632_s29  ;;  %v1327_v47 = vperm.slane %v3899_v37, 2 }
 0x105   : > { %700 = vrot.lane.b32.xlu2 %v695_v49, %s5628_s12 }
 0x106   : > { %v3879_v13 = vpop.permute.xlu0 %940  ;;  %v3890_v30 = vpop.permute.xlu1 %1691 }
 0x107   : > { %5665 = vst [vmem:[#allocation16_spill] sm:$0xff] %v3879_v13 }
 0x10c   : > { %698 = vrot.lane.b32.xlu1 %v694_v53, %s5628_s12  ;;  %1453 = vrot.lane.b32.xlu0 %v1447_v59, %s3458_s30 }
 0x10d   : > { %760 = vrot.lane.b32.xlu2 %v755_v60, %s5621_s13  ;;  %v3912_v60 = vld [vmem:[#allocation7 + $0x4] ss:$8 sm:$0xf] }
 0x10e   : > { %v3873_v20 = vpop.permute.xlu2 %2982  ;;  %v3892_v35 = vpop.permute.xlu0 %1002 }
 0x10f   : > { %5664 = vst [vmem:[#allocation15_spill] sm:$0xff] %v3873_v20  ;;  %v3904_v53 = vpop.permute.xlu1 %942 }
 0x110   : > { %5666 = vst [vmem:[#allocation17_spill] sm:$0xff] %v3892_v35 }
 0x111   : > { %5668 = vst [vmem:[#allocation19_spill] sm:$0xff] %v3904_v53 }
 0x114   : > { %758 = vrot.lane.b32.xlu1 %v754_v3, %s5621_s13  ;;  %702 = vrot.lane.b32.xlu0 %v696_v11, %s5628_s12  ;;  %v1326_v11 = vperm.slane %v3899_v37, 1 }
 0x115   : > { %1008 = vrot.lane.b32.xlu2 %v1001_v14, %s5625_s20  ;;  %v1325_v14 = vperm.slane %v3899_v37, 0 }
 0x116   : > { %v2988_v19 = vpop.permute.xlu2 %2987 }
 0x117   : > { %v2990_v32 = vunpack.i.h.bf16 %v2988_v19  ;;  %v2989_v50 = vunpack.i.l.bf16 %v2988_v19  ;;  %v574_v19 = vperm.slane %v3912_v60, 1 }
 0x11c   : > { %946 = vrot.lane.b32.xlu1 %v939_v22, %s5588_s7  ;;  %762 = vrot.lane.b32.xlu0 %v756_v26, %s5621_s13  ;;  %s3473_s7 = smov 9   ;;  %v573_v22 = vperm.slane %v3912_v60, 0  ;;  %v3922_v26 = vpop.permute.xlu1 %1004 }
 0x11d   : > { %1273 = vrot.lane.b32.xlu2 %v1267_v27, %s5629_s9  ;;  %5670 = vst [vmem:[#allocation21_spill] sm:$0xff] %v3922_v26  ;;  %v3924_v27 = vld [vmem:[#allocation7 + $0x5] ss:$8 sm:$0xf] }
 0x11e   : > { %v3897_v48 = vpop.permute.xlu2 %2992 }
 0x11f   : > { %5667 = vst [vmem:[#allocation18_spill] sm:$0xff] %v3897_v48  ;;  %v5598_v35 = vunpack.i.h.bf16 %v3897_v48  ;;  %v637_v48 = vperm.slane %v3924_v27, 3 }
 0x123   : > { %v365_v49 = vpop.permute.xlu0 %364 }
 0x124   : > { %v3907_v59 = vsel %vm5630_vm3, %v2990_v32, %v365_v49  ;;  %1271 = vrot.lane.b32.xlu1 %v1266_v44, %s5629_s9  ;;  %1269 = vrot.lane.b32.xlu0 %v1265_v38, %s5629_s9  ;;  %v1808_v38 = vperm.slane %v3657_v28, 3  ;;  %v634_v49 = vperm.slane %v3924_v27, 0 }
 0x125   : > { %5669 = vst [vmem:[#allocation20_spill] sm:$0xff] %v3907_v59  ;;  %1333 = vrot.lane.b32.xlu2 %v1327_v47, %s3473_s7  ;;  %v1748_v47 = vperm.slane %v3649_v24, 3  ;;  %v575_v24 = vperm.slane %v3912_v60, 2  ;;  %v509_v59 = vld [vmem:[#allocation7 + $0x3] ss:$8 sm:$0xf] }
 0x127   : > { %v3914_v3 = vpop.permute.xlu2 %1509 }
 0x12c   : > { %1331 = vrot.lane.b32.xlu1 %v1326_v11, %s3473_s7  ;;  %1329 = vrot.lane.b32.xlu0 %v1325_v14, %s3473_s7  ;;  %v5597_v11 = vunpack.i.h.bf16 %v3873_v20 }
 0x12d   : > { %577 = vrot.lane.b32.xlu2 %v573_v22, %s3466_s26 }
 0x12f   : > { %v3926_v44 = vpop.permute.xlu2 %1569 }
 0x133   : > { %v427_v14 = vpop.permute.xlu1 %426 }
 0x134   : > { %1815 = vrot.lane.b32.xlu1 %v1808_v38, %s5621_s13  ;;  %1755 = vrot.lane.b32.xlu0 %v1748_v47, %s5628_s12  ;;  %v3943_v38 = vsel %vm5630_vm3, %v5597_v11, %v2989_v50  ;;  %v3946_v47 = vsel %vm5630_vm3, %v2989_v50, %v2990_v32  ;;  %v636_v50 = vperm.slane %v3924_v27, 2 }
 0x135   : > { %638 = vrot.lane.b32.xlu2 %v634_v49, %s5671_s19  ;;  %5672 = vst [vmem:[#allocation22_spill] sm:$0xff] %v3943_v38  ;;  %v817_v49 = vperm.slane %v3787_v1, 3  ;;  %v635_v1 = vperm.slane %v3924_v27, 1  ;;  %v514_v38 = vperm.slane %v509_v59, 3 }
 0x136   : > { %v2998_v22 = vpop.permute.xlu0 %2997  ;;  %5673 = vst [vmem:[#allocation23_spill] sm:$0xff] %v3946_v47  ;;  %v877_v47 = vperm.slane %v3801_v7, 3 }
 0x137   : > { %v3000_v26 = vunpack.i.h.bf16 %v2998_v22  ;;  %v2999_v28 = vunpack.i.l.bf16 %v2998_v22  ;;  %v3936_v39 = vpop.permute.xlu2 %818 }
 0x139   : > { %v3952_v22 = vsel %vm428_vm4, %v5598_v35, %v2999_v28  ;;  %v3955_v13 = vsel %vm428_vm4, %v2999_v28, %v3000_v26  ;;  %v3958_v53 = vsel %vm428_vm4, %v3000_v26, %v427_v14 }
 0x13a   : > { %5674 = vst [vmem:[#allocation24_spill] sm:$0xff] %v3952_v22  ;;  %v1878_v22 = vsel %vm5630_vm3, %v3782_v0, %v3718_v62 }
 0x13b   : > { %5675 = vst [vmem:[#allocation25_spill] sm:$0xff] %v3955_v13  ;;  %v513_v13 = vperm.slane %v509_v59, 2 }
 0x13c   : > { %5676 = vst [vmem:[#allocation26_spill] sm:$0xff] %v3958_v53  ;;  %581 = vrot.lane.b32.xlu1 %v575_v24, %s3466_s26  ;;  %579 = vrot.lane.b32.xlu0 %v574_v19, %s3466_s26  ;;  %v1688_v24 = vperm.slane %v3681_v40, 3  ;;  %v1628_v40 = vperm.slane %v3673_v36, 3 }
 0x13d   : > { %824 = vrot.lane.b32.xlu2 %v817_v49, %s3460_s8 }
 0x13e   : > { %v3969_v32 = vpop.permute.xlu1 %3007  ;;  %v3971_v28 = vpop.permute.xlu0 %3002 }
 0x13f   : > { %5677 = vst [vmem:[#allocation27_spill] sm:$0xff] %v3969_v32  ;;  %v5603_v26 = vunpack.i.l.bf16 %v3969_v32  ;;  %v5604_v14 = vunpack.i.h.bf16 %v3971_v28  ;;  %v3975_v35 = vpop.permute.xlu2 %878 }
 0x140   : > { %5678 = vst [vmem:[#allocation28_spill] sm:$0xff] %v3971_v28  ;;  %v1568_v28 = vperm.slane %v3773_v58, 3 }
 0x141   : > { %v3985_v19 = vsel %vm490_vm5, %v5604_v14, %v5603_v26 }
 0x142   : > { %5679 = vst [vmem:[#allocation29_spill] sm:$0xff] %v3985_v19 }
 0x144   : > { %642 = vrot.lane.b32.xlu1 %v636_v50, %s5671_s19  ;;  %640 = vrot.lane.b32.xlu0 %v635_v1, %s5671_s19 }
 0x145   : > { %1695 = vrot.lane.b32.xlu2 %v1688_v24, %s5671_s19 }
 0x146   : > { %v3990_v49 = vpop.permute.xlu1 %1215  ;;  %v3992_v11 = vpop.permute.xlu0 %1155 }
 0x147   : > { %5680 = vst [vmem:[#allocation30_spill] sm:$0xff] %v3992_v11  ;;  %v3994_v53 = vpop.permute.xlu2 %1875 }
 0x14c   : > { %1635 = vrot.lane.b32.xlu1 %v1628_v40, %s3466_s26  ;;  %884 = vrot.lane.b32.xlu0 %v877_v47, %s5619_s10  ;;  %v512_v47 = vperm.slane %v509_v59, 1  ;;  %v511_v40 = vperm.slane %v509_v59, 0  ;;  %s5686_s10 = smov 127  }
 0x14d   : > { %519 = vrot.lane.b32.xlu2 %v513_v13, %s3470_s27  ;;  %v1508_v13 = vperm.slane %v3758_v42, 3 }
 0x14e   : > { %v4001_v50 = vpop.permute.xlu1 %1513  ;;  %v1512_v1 = vpop.permute.xlu0 %1511 }
 0x14f   : > { %v1517_v24 = vsel %vm461_vm2, %v3914_v3, %v1512_v1  ;;  %v1518_v26 = vsel %vm461_vm2, %v1512_v1, %v4001_v50  ;;  %v4007_v14 = vpop.permute.xlu2 %1391 }
 0x150   : > { %v4010_v36 = vmul.f32 %v1517_v24, %v3734_v10  ;;  %v4013_v7 = vmul.f32 %v1518_v26, %v3730_v8 }
 0x154   : > { %517 = vrot.lane.b32.xlu1 %v512_v47, %s3470_s27  ;;  %515 = vrot.lane.b32.xlu0 %v511_v40, %s3470_s27  ;;  %v757_v40 = vperm.slane %v3863_v54, 3 }
 0x155   : > { %1515 = vrot.lane.b32.xlu2 %v1508_v13, %s3459_s15  ;;  %v697_v13 = vperm.slane %v3851_v46, 3 }
 0x156   : > { %v4021_v1 = vpop.permute.xlu1 %1573  ;;  %v1572_v24 = vpop.permute.xlu0 %1571 }
 0x157   : > { %5681 = vst [vmem:[#allocation31_spill] sm:$0xff] %v4021_v1  ;;  %v1577_v26 = vsel %vm523_vm6, %v3926_v44, %v1572_v24  ;;  %v1578_v20 = vsel %vm523_vm6, %v1572_v24, %v4021_v1  ;;  %v4027_v42 = vpop.permute.xlu2 %1451  ;;  %v1879_v24 = vsel %vm5630_vm3, %v3718_v62, %v3994_v53 }
 0x158   : > { %v4030_v32 = vmul.f32 %v1577_v26, %v3734_v10  ;;  %v4033_v47 = vmul.f32 %v1578_v20, %v3730_v8  ;;  %v4053_v26 = vmul.f32 %v1879_v24, %v3712_v56  ;;  %v1877_v24 = vsel %vm5630_vm3, %v3760_v43, %v3782_v0 }
 0x15c   : > { %764 = vrot.lane.b32.xlu1 %v757_v40, %s5621_s13  ;;  %704 = vrot.lane.b32.xlu0 %v697_v13, %s5628_s12  ;;  %v576_v13 = vperm.slane %v3912_v60, 3  ;;  %v1887_v60 = vmul.f32 %v1878_v22, %v3730_v8  ;;  %v1388_v22 = vperm.slane %v3823_v25, 3  ;;  %s5687_s13 = smov 1  }
 0x15d   : > { %644 = vrot.lane.b32.xlu2 %v637_v48, %s5671_s19 }
 0x15e   : > { %v4046_v20 = vpop.permute.xlu1 %822  ;;  %v821_v54 = vpop.permute.xlu0 %820 }
 0x15f   : > { %v827_v46 = vsel %vm5630_vm3, %v821_v54, %v4046_v20  ;;  %v4050_v27 = vpop.permute.xlu2 %700  ;;  %v826_v1 = vsel %vm5630_vm3, %v3936_v39, %v821_v54  ;;  %v1328_v54 = vperm.slane %v3899_v37, 3 }
 0x160   : > { %v4056_v40 = vmul.f32 %v827_v46, %v3734_v10  ;;  %v1886_v46 = vmul.f32 %v1877_v24, %v3734_v10  ;;  %v835_v25 = vmul.f32 %v826_v1, %v3721_v63  ;;  %v1157_v1 = vsel %vm5635_vm8, %v3775_v57, %v3799_v6 }
 0x161   : > { %v1166_v24 = vmul.f32 %v1157_v1, %v3734_v10 }
 0x162   : > { %v3011_v19 = vpack.i.bf16 %v1887_v60, %v1886_v46  ;;  %v1268_v46 = vperm.slane %v3885_v21, 3  ;;  %v1217_v21 = vsel %vm1039_vm9, %v3789_v2, %v3813_v17 }
 0x164   : > { %583 = vrot.lane.b32.xlu1 %v576_v13, %s3466_s26  ;;  %1575 = vrot.lane.b32.xlu0 %v1568_v28, %s3470_s27  ;;  %v1448_v13 = vperm.slane %v3837_v34, 3 }
 0x165   : > { %521 = vrot.lane.b32.xlu2 %v514_v38, %s3470_s27 }
 0x166   : > { %v4071_v58 = vpop.permute.xlu1 %882  ;;  %v881_v59 = vpop.permute.xlu0 %880 }
 0x167   : > { %v887_v62 = vsel %vm886_vm7, %v3975_v35, %v881_v59  ;;  %v888_v0 = vsel %vm886_vm7, %v881_v59, %v4071_v58  ;;  %v4079_v48 = vpop.permute.xlu2 %760 }
 0x168   : > { %v4082_v28 = vmul.f32 %v887_v62, %v3721_v63  ;;  %v4085_v38 = vmul.f32 %v888_v0, %v3734_v10  ;;  %v1158_v0 = vsel %vm5635_vm8, %v3799_v6, %v3725_v5 }
 0x169   : > { %v1167_v6 = vmul.f32 %v1158_v0, %v3730_v8 }
 0x16c   : > { %1455 = vrot.lane.b32.xlu1 %v1448_v13, %s3458_s30  ;;  %1395 = vrot.lane.b32.xlu0 %v1388_v22, %s5632_s29  ;;  %v1218_v13 = vsel %vm1039_vm9, %v3813_v17, %v3740_v18  ;;  %v1073_v22 = vsel %vm1072_vm10, %v3832_v12, %v3861_v52 }
 0x16d   : > { %3012 = vrot.lane.b32.xlu2 %v3011_v19, %s5632_s29  ;;  %v1885_v19 = vmul.f32 %v3760_v43, %v3721_v63  ;;  %v1074_v43 = vsel %vm1072_vm10, %v3861_v52, %v3780_v61  ;;  %v1227_v17 = vmul.f32 %v1218_v13, %v3730_v8 }
 0x16e   : > { %v4096_v59 = vpop.permute.xlu1 %1389  ;;  %v4098_v62 = vpop.permute.xlu0 %1070  ;;  %v1083_v52 = vmul.f32 %v1074_v43, %v3734_v10 }
 0x16f   : > { %5682 = vst [vmem:[#allocation32_spill] sm:$0xff] %v4096_v59  ;;  %v1397_v34 = vsel %vm337_vm0, %v4096_v59, %v4007_v14  ;;  %v4104_v60 = vpop.permute.xlu2 %1008  ;;  %v3026_v37 = vpack.i.bf16 %v835_v25, %v1885_v19  ;;  %v1226_v25 = vmul.f32 %v1217_v21, %v3734_v10 }
 0x170   : > { %5683 = vst [vmem:[#allocation33_spill] sm:$0xff] %v4098_v62  ;;  %v4150_v13 = vmul.f32 %v1397_v34, %v3734_v10  ;;  %v1818_v34 = vsel %vm428_vm4, %v3844_v41, %v3767_v51 }
 0x171   : > { %v3021_v43 = vpack.i.bf16 %v1227_v17, %v1226_v25 }
 0x174   : > { %1335 = vrot.lane.b32.xlu1 %v1328_v54, %s3473_s7  ;;  %1275 = vrot.lane.b32.xlu0 %v1268_v46, %s5629_s9  ;;  %v1082_v54 = vmul.f32 %v1073_v22, %v3721_v63  ;;  %v3016_v22 = vpack.i.bf16 %v1167_v6, %v1166_v24  ;;  %v1638_v24 = vsel %vm585_vm11, %v3875_v16, %v3796_v4 }
 0x175   : > { %3027 = vrot.lane.b32.xlu2 %v3026_v37, %s5632_s29  ;;  %v1758_v37 = vsel %vm490_vm5, %v3830_v33, %v3748_v31  ;;  %v1637_v6 = vsel %vm585_vm11, %v3849_v45, %v3875_v16  ;;  %v1647_v16 = vmul.f32 %v1638_v24, %v3730_v8  ;;  %v1219_v24 = vsel %vm1039_vm9, %v3740_v18, %v3990_v49 }
 0x176   : > { %v4135_v19 = vpop.permute.xlu1 %1449  ;;  %v4137_v59 = vpop.permute.xlu0 %1393  ;;  %v1165_v18 = vmul.f32 %v3775_v57, %v3721_v63  ;;  %v1698_v57 = vsel %vm552_vm12, %v3890_v30, %v3811_v15 }
 0x177   : > { %5684 = vst [vmem:[#allocation34_spill] sm:$0xff] %v4135_v19  ;;  %v1457_v46 = vsel %vm399_vm1, %v4135_v19, %v4027_v42  ;;  %v1398_v0 = vsel %vm337_vm0, %v4007_v14, %v4137_v59  ;;  %v4147_v1 = vpop.permute.xlu2 %1273  ;;  %v1757_v14 = vsel %vm490_vm5, %v3803_v9, %v3830_v33  ;;  %v1767_v33 = vmul.f32 %v1758_v37, %v3730_v8 }
 0x178   : > { %5685 = vst [vmem:[#allocation35_spill] sm:$0xff] %v4137_v59  ;;  %v4153_v21 = vmul.f32 %v1398_v0, %v3730_v8  ;;  %v1817_v0 = vsel %vm428_vm4, %v3818_v23, %v3844_v41  ;;  %v3041_v59 = vpack.i.bf16 %v1083_v52, %v1082_v54  ;;  %v1766_v17 = vmul.f32 %v1757_v14, %v3734_v10 }
 0x179   : > { %v1827_v41 = vmul.f32 %v1818_v34, %v3730_v8  ;;  %v1826_v25 = vmul.f32 %v1817_v0, %v3734_v10  ;;  %v4194_v37 = vmul.f32 %v1457_v46, %v3734_v10  ;;  %v1228_v46 = vmul.f32 %v1219_v24, %v3712_v56 }
 0x17a   : > { %v3031_v0 = vpack.i.bf16 %v1767_v33, %v1766_v17 }
 0x17b   : > { %v3036_v34 = vpack.i.bf16 %v1827_v41, %v1826_v25 }
 0x17c   : > { %3022 = vrot.lane.b32.xlu1 %v3021_v43, %s5625_s20  ;;  %3017 = vrot.lane.b32.xlu0 %v3016_v22, %s5686_s10  ;;  %v1646_v43 = vmul.f32 %v1637_v6, %v3734_v10 }
 0x17d   : > { %3042 = vrot.lane.b32.xlu2 %v3041_v59, %s5687_s13 }
 0x17e   : > { %v4182_v52 = vpop.permute.xlu1 %698  ;;  %v4184_v54 = vpop.permute.xlu0 %1453  ;;  %v3056_v6 = vpack.i.bf16 %v1647_v16, %v1646_v43  ;;  %v1225_v16 = vmul.f32 %v3789_v2, %v3721_v63  ;;  %v1825_v43 = vmul.f32 %v3818_v23, %v3721_v63  ;;  %v1075_v23 = vsel %vm1072_vm10, %v3780_v61, %v4098_v62  ;;  %v5692_v62 = vld [vmem:[#allocation17_spill] sm:$0xff] }
 0x17f   : > { %v1458_v59 = vsel %vm399_vm1, %v4027_v42, %v4184_v54  ;;  %v4191_v22 = vpop.permute.xlu2 %1333  ;;  %v1159_v42 = vsel %vm5635_vm8, %v3725_v5, %v3992_v11  ;;  %v706_v2 = vsel %vm490_vm5, %v4182_v52, %v4050_v27 }
 0x180   : > { %v4197_v14 = vmul.f32 %v1458_v59, %v3730_v8  ;;  %v1168_v33 = vmul.f32 %v1159_v42, %v3712_v56  ;;  %v1697_v42 = vsel %vm552_vm12, %v3865_v55, %v3890_v30  ;;  %v715_v30 = vmul.f32 %v706_v2, %v3721_v63  ;;  %v5690_v2 = vld [vmem:[#allocation13_spill] sm:$0xff] }
 0x184   : > { %3037 = vrot.lane.b32.xlu1 %v3036_v34, %s3458_s30  ;;  %3032 = vrot.lane.b32.xlu0 %v3031_v0, %s3459_s15  ;;  %v3051_v34 = vpack.i.bf16 %v1228_v46, %v1225_v16  ;;  %v3046_v0 = vpack.i.bf16 %v1168_v33, %v1165_v18  ;;  %v1706_v46 = vmul.f32 %v1697_v42, %v3734_v10 }
 0x185   : > { %3057 = vrot.lane.b32.xlu2 %v3056_v6, %s3466_s26  ;;  %v1707_v6 = vmul.f32 %v1698_v57, %v3730_v8  ;;  %v1765_v16 = vmul.f32 %v3803_v9, %v3721_v63  ;;  %v5689_v57 = vld [vmem:[#allocation16_spill] sm:$0xff] }
 0x186   : > { %v4212_v17 = vpop.permute.xlu1 %758  ;;  %v4214_v41 = vpop.permute.xlu0 %702 }
 0x187   : > { %v766_v5 = vsel %vm428_vm4, %v4212_v17, %v4079_v48  ;;  %v4221_v25 = vpop.permute.xlu2 %577 }
 0x188   : > { %v775_v59 = vmul.f32 %v766_v5, %v3721_v63  ;;  %v1084_v5 = vmul.f32 %v1075_v23, %v3730_v8  ;;  %v5691_v23 = vld [vmem:[#allocation21_spill] sm:$0xff] }
 0x189   : > { %v1012_v19 = vsel %vm1010_vm14, %v5691_v23, %v5690_v2  ;;  %v1011_v9 = vsel %vm1010_vm14, %v5692_v62, %v5691_v23 }
 0x18a   : > { %v3071_v24 = vpack.i.bf16 %v775_v59, %v1825_v43  ;;  %v1081_v43 = vmul.f32 0.0, %v3832_v12  ;;  %v5688_v59 = vld [vmem:[#allocation19_spill] sm:$0xff] }
 0x18b   : > { %v949_v42 = vsel %vm5627_vm13, %v5689_v57, %v5688_v59 }
 0x18c   : > { %3052 = vrot.lane.b32.xlu1 %v3051_v34, %s5625_s20  ;;  %3047 = vrot.lane.b32.xlu0 %v3046_v0, %s5686_s10  ;;  %v950_v34 = vsel %vm5627_vm13, %v5688_v59, %v3827_v29  ;;  %v3061_v0 = vpack.i.bf16 %v1707_v6, %v1706_v46  ;;  %v3086_v11 = vpack.i.bf16 %v1084_v5, %v1081_v43  ;;  %v4280_v5 = vmul.f32 0.0, %v3994_v53  ;;  %s5693_s20 = smov 7  }
 0x18d   : > { %3072 = vrot.lane.b32.xlu2 %v3071_v24, %s3458_s30  ;;  %v3066_v24 = vpack.i.bf16 %v715_v30, %v1765_v16  ;;  %v959_v12 = vmul.f32 %v950_v34, %v3734_v10  ;;  %v958_v6 = vmul.f32 %v949_v42, %v3721_v63  ;;  %v1021_v46 = vmul.f32 %v1012_v19, %v3734_v10 }
 0x18e   : > { %v4246_v33 = vpop.permute.xlu1 %946  ;;  %v4248_v18 = vpop.permute.xlu0 %762  ;;  %v1020_v30 = vmul.f32 %v1011_v9, %v3721_v63  ;;  %v4288_v34 = vmul.f32 0.0, %v3936_v39 }
 0x18f   : > { %v4251_v61 = vpop.permute.xlu2 %638 }
 0x190   : > { %v3081_v42 = vpack.i.bf16 %v1021_v46, %v1020_v30 }
 0x194   : > { %3062 = vrot.lane.b32.xlu0 %v3061_v0, %s3470_s27  ;;  %3067 = vrot.lane.b32.xlu1 %v3066_v24, %s3459_s15  ;;  %v3076_v24 = vpack.i.bf16 %v959_v12, %v958_v6  ;;  %v5695_v12 = vpack.i.bf16 %v4033_v47, %v4030_v32 }
 0x195   : > { %3087 = vrot.lane.b32.xlu2 %v3086_v11, %s5687_s13 }
 0x196   : > { %v4275_v16 = vpop.permute.xlu1 %1271  ;;  %v4277_v59 = vpop.permute.xlu0 %1269 }
 0x197   : > { %v825_v23 = vpop.permute.xlu2 %824 }
 0x198   : > { %v4283_v43 = vmul.f32 %v825_v23, %v3712_v56  ;;  %v828_v11 = vsel %vm5630_vm3, %v4046_v20, %v825_v23  ;;  %v5694_v23 = vpack.i.bf16 %v4013_v7, %v4010_v36  ;;  %v5696_v36 = vpack.i.bf16 %v4053_v26, %v4056_v40 }
 0x199   : > { %v4291_v19 = vmul.f32 %v828_v11, %v3730_v8  ;;  %v1013_v11 = vsel %vm1010_vm14, %v5690_v2, %v4104_v60  ;;  %v1645_v2 = vmul.f32 %v3849_v45, %v3721_v63  ;;  %vm915_vm3 = vcmask 72704  }
 0x19a   : > { %v1022_v7 = vmul.f32 %v1013_v11, %v3730_v8 }
 0x19c   : > { %3077 = vrot.lane.b32.xlu0 %v3076_v24, %s5629_s9  ;;  %3082 = vrot.lane.b32.xlu1 %v3081_v42, %s5693_s20 }
 0x19e   : > { %v4299_v9 = vpop.permute.xlu1 %1331  ;;  %v4301_v20 = vpop.permute.xlu0 %1329 }
 0x19f   : > { %v4303_v39 = vpop.permute.xlu2 %1695 }
 0x1a4   : > { %3092 = vrot.lane.b32.xlu0 %v5694_v23, %s5628_s12  ;;  %3097 = vrot.lane.b32.xlu1 %v5695_v12, %s5671_s19  ;;  %v1019_v23 = vmul.f32 0.0, %v5692_v62 }
 0x1a6   : > { %v4313_v6 = vpop.permute.xlu1 %1815  ;;  %v4315_v46 = vpop.permute.xlu0 %1755  ;;  %v3126_v40 = vpack.i.bf16 %v1022_v7, %v1019_v23 }
 0x1a7   : > { %v4317_v30 = vpop.permute.xlu2 %519 }
 0x1ac   : > { %3112 = vrot.lane.b32.xlu1 %v5696_v36, %s5632_s29  ;;  %v4346_v36 = vmul.f32 0.0, %v4303_v39 }
 0x1ae   : > { %v4327_v24 = vpop.permute.xlu1 %581  ;;  %v4329_v32 = vpop.permute.xlu0 %579 }
 0x1af   : > { %v586_v47 = vsel %vm585_vm11, %v4221_v25, %v4329_v32  ;;  %v4334_v42 = vpop.permute.xlu2 %1515 }
 0x1b0   : > { %5697 = vst [vmem:[#allocation19_spill] sm:$0xff] %v4334_v42  ;;  %v595_v26 = vmul.f32 %v586_v47, %v3721_v63  ;;  %v1519_v11 = vsel %vm461_vm2, %v4001_v50, %v4334_v42  ;;  %v1705_v50 = vmul.f32 %v3865_v55, %v3721_v63 }
 0x1b1   : > { %v1528_v62 = vmul.f32 %v1519_v11, %v3712_v56 }
 0x1b2   : > { %v3101_v12 = vpack.i.bf16 %v595_v26, %v1645_v2 }
 0x1b4   : > { %3127 = vrot.lane.b32.xlu1 %v3126_v40, %s5693_s20  ;;  %3102 = vrot.lane.b32.xlu2 %v3101_v12, %s3466_s26  ;;  %v1525_v40 = vmul.f32 %v3914_v3, %v3721_v63  ;;  %v4367_v12 = vmul.f32 0.0, %v4251_v61  ;;  %v1819_v3 = vsel %vm428_vm4, %v3767_v51, %v4313_v6 }
 0x1b5   : > { %v1828_v51 = vmul.f32 %v1819_v3, %v3712_v56 }
 0x1b6   : > { %v4348_v0 = vpop.permute.xlu1 %642  ;;  %v4350_v45 = vpop.permute.xlu0 %640  ;;  %v3141_v42 = vpack.i.bf16 %v1528_v62, %v1525_v40 }
 0x1b7   : > { %v646_v7 = vsel %vm552_vm12, %v4251_v61, %v4350_v45  ;;  %v645_v47 = vpop.permute.xlu2 %644  ;;  %v5698_v61 = vpack.i.bf16 %v4085_v38, %v4082_v28  ;;  %v957_v28 = vmul.f32 0.0, %v5689_v57  ;;  %v5699_v57 = vpack.i.bf16 %v4153_v21, %v4150_v13 }
 0x1b8   : > { %v655_v2 = vmul.f32 %v646_v7, %v3721_v63  ;;  %v4360_v23 = vmul.f32 %v645_v47, %v3712_v56  ;;  %v648_v26 = vsel %vm552_vm12, %v4348_v0, %v645_v47  ;;  %v951_v7 = vsel %vm5627_vm13, %v3827_v29, %v4246_v33 }
 0x1b9   : > { %v4370_v11 = vmul.f32 %v648_v26, %v3730_v8  ;;  %v767_v29 = vsel %vm428_vm4, %v4079_v48, %v4248_v18  ;;  %v1278_v48 = vsel %vm5638_vm15, %v4275_v16, %v4147_v1  ;;  %v1277_v56 = vsel %vm5638_vm15, %v4277_v59, %v4275_v16 }
 0x1ba   : > { %v3106_v53 = vpack.i.bf16 %v655_v2, %v1705_v50  ;;  %v960_v50 = vmul.f32 %v951_v7, %v3730_v8  ;;  %v1287_v7 = vmul.f32 %v1278_v48, %v3730_v8  ;;  %v1585_v21 = vmul.f32 %v3926_v44, %v3721_v63 }
 0x1bb   : > { %vm2108_vm13 = vcmask 1043456   ;;  %v1759_v44 = vsel %vm490_vm5, %v3748_v31, %v4315_v46  ;;  %v4453_v31 = vmul.f32 0.0, %v4313_v6 }
 0x1bc   : > { %3117 = vrot.lane.b32.xlu2 %v5698_v61, %s3473_s7  ;;  %3107 = vrot.lane.b32.xlu0 %v3106_v53, %s3470_s27  ;;  %v776_v53 = vmul.f32 %v767_v29, %v3734_v10 }
 0x1bd   : > { %3142 = vrot.lane.b32.xlu1 %v3141_v42, %s5628_s12  ;;  %v3121_v42 = vpack.i.bf16 %v960_v50, %v957_v28  ;;  %v1286_v50 = vmul.f32 %v1277_v56, %v3734_v10  ;;  %s5700_s12 = smov 72  }
 0x1be   : > { %v4392_v62 = vpop.permute.xlu1 %1635  ;;  %v4394_v2 = vpop.permute.xlu0 %884  ;;  %v3156_v40 = vpack.i.bf16 %v1828_v51, %v776_v53 }
 0x1bf   : > { %v4397_v26 = vpop.permute.xlu2 %521  ;;  %v3171_v56 = vpack.i.bf16 %v1287_v7, %v1286_v50  ;;  %v4456_v7 = vld [vmem:[%s3609_s25 + $0x18] sm:$0xff] }
 0x1c0   : > { %v526_v38 = vsel %vm523_vm6, %v4317_v30, %v4397_v26  ;;  %v1768_v50 = vmul.f32 %v4456_v7, %v1759_v44 }
 0x1c1   : > { %v4421_v29 = vmul.f32 %v526_v38, %v3730_v8 }
 0x1c4   : > { %3132 = vrot.lane.b32.xlu2 %v5699_v57, %s3460_s8  ;;  %3122 = vrot.lane.b32.xlu0 %v3121_v42, %s5629_s9  ;;  %v5701_v57 = vpack.i.bf16 %v4197_v14, %v4194_v37  ;;  %s5702_s9 = smov 120   ;;  %v4462_v14 = vmul.f32 0.0, %v4315_v46 }
 0x1c5   : > { %3157 = vrot.lane.b32.xlu1 %v3156_v40, %s3458_s30 }
 0x1c6   : > { %v4417_v3 = vpop.permute.xlu1 %517  ;;  %v516_v61 = vpop.permute.xlu0 %515 }
 0x1c7   : > { %v524_v16 = vsel %vm523_vm6, %v516_v61, %v4417_v3  ;;  %v4425_v51 = vmul.f32 0.0, %v516_v61  ;;  %v4427_v13 = vpop.permute.xlu2 %3012  ;;  %v707_v61 = vsel %vm490_vm5, %v4050_v27, %v4214_v41 }
 0x1c8   : > { %v533_v28 = vmul.f32 %v524_v16, %v3721_v63  ;;  %v5631_v53 = vunpack.i.h.bf16 %v4427_v13  ;;  %v3014_v42 = vunpack.i.l.bf16 %v4427_v13  ;;  %v716_v44 = vmul.f32 %v707_v61, %v3734_v10 }
 0x1c9   : > { %v1337_v10 = vsel %vm915_vm3, %v4301_v20, %v4299_v9  ;;  %v889_v61 = vsel %vm886_vm7, %v4071_v58, %v4394_v2 }
 0x1ca   : > { %v3146_v48 = vpack.i.bf16 %v533_v28, %v1585_v21  ;;  %v1906_v40 = vsel %vm337_vm0, %v3014_v42, %v5631_v53 }
 0x1cb   : > { %v2080_v63 = vpack.c.bf16 %v1906_v40, %v1906_v40  ;;  %v4476_v40 = vmul.f32 0.0, %v4212_v17  ;;  %v3151_v17 = vpack.i.bf16 %v1768_v50, %v716_v44  ;;  %v5703_v50 = vpack.i.bf16 %v4291_v19, %v4288_v34  ;;  %v4510_v44 = vld [vmem:[%s3609_s25 + $0x10] sm:$0xff] }
 0x1cc   : > { %3147 = vrot.lane.b32.xlu2 %v3146_v48, %s5671_s19  ;;  %3137 = vrot.lane.b32.xlu0 %v5701_v57, %s5700_s12  ;;  %v4521_v19 = vmul.f32 0.0, %v4392_v62 }
 0x1cd   : > { %3172 = vrot.lane.b32.xlu1 %v3171_v56, %s5702_s9  ;;  %v2113_v16 = vsel %vm2108_vm13, %v2080_v63, 0 }
 0x1ce   : > { %2165 = vmatpush.bf16.msra.mxu3 %v2113_v16  ;;  %v765_v21 = vpop.permute.xlu1 %764  ;;  %v4459_v37 = vpop.permute.xlu0 %704 }
 0x1cf   : > { %v4465_v27 = vmul.f32 %v4456_v7, %v765_v21  ;;  %v768_v28 = vsel %vm428_vm4, %v4248_v18, %v765_v21  ;;  %v4471_v6 = vmul.f32 %v4456_v7, %v4459_v37  ;;  %v4473_v48 = vpop.permute.xlu2 %3027 }
 0x1d0   : > { %v4480_v46 = vmul.f32 %v768_v28, %v3730_v8  ;;  %v3029_v56 = vunpack.i.l.bf16 %v4473_v48  ;;  %v1338_v8 = vsel %vm915_vm3, %v4299_v9, %v4191_v22 }
 0x1d1   : > { %v1347_v9 = vmul.f32 %v4510_v44, %v1338_v8 }
 0x1d2   : > { %v3206_v57 = vpack.i.bf16 %v4480_v46, %v4476_v40  ;;  %v1905_v16 = vsel %vm337_vm0, %v3029_v56, %v3014_v42  ;;  %v4506_v42 = vmul.f32 %v4456_v7, %v4397_v26  ;;  %v4514_v56 = vld [vmem:[%s3609_s25 + $0x8] sm:$0xff] }
 0x1d3   : > { %v2079_v21 = vpack.c.bf16 %v1905_v16, %v1905_v16  ;;  %v1346_v58 = vmul.f32 %v4514_v56, %v1337_v10  ;;  %v895_v10 = vmul.f32 0.0, %v3975_v35  ;;  %v1639_v35 = vsel %vm585_vm11, %v3796_v4, %v4392_v62  ;;  %v5706_v62 = vld [vmem:[#allocation35_spill] sm:$0xff] }
 0x1d4   : > { %3152 = vrot.lane.b32.xlu0 %v3151_v17, %s3459_s15  ;;  %3162 = vrot.lane.b32.xlu2 %v5703_v50, %s5632_s29  ;;  %v898_v17 = vmul.f32 %v4510_v44, %v889_v61  ;;  %v4535_v61 = vmul.f32 0.0, %v4221_v25  ;;  %s5704_s29 = smov 119   ;;  %v587_v25 = vsel %vm585_vm11, %v4329_v32, %v4327_v24  ;;  %v5707_v32 = vld [vmem:[#allocation34_spill] sm:$0xff] }
 0x1d5   : > { %v2110_v28 = vsel %vm2108_vm13, %v2079_v21, 0  ;;  %v3176_v18 = vpack.i.bf16 %v1347_v9, %v1346_v58  ;;  %v5705_v9 = vld [vmem:[#allocation32_spill] sm:$0xff] }
 0x1d6   : > { %2137 = vmatpush.bf16.msra.mxu1 %v2110_v28  ;;  %v584_v16 = vpop.permute.xlu1 %583  ;;  %v4518_v34 = vpop.permute.xlu0 %1575  ;;  %v3166_v63 = vpack.i.bf16 %v898_v17, %v895_v10  ;;  %v4560_v17 = vld [vmem:[%s3609_s25] sm:$0xff]  ;;  %v596_v10 = vmul.f32 %v4514_v56, %v587_v25  ;;  %v1699_v25 = vsel %vm552_vm12, %v3811_v15, %v4303_v39  ;;  %s5710_s25 = smov 121  }
 0x1d7   : > { %v4524_v26 = vmul.f32 %v4456_v7, %v584_v16  ;;  %v588_v21 = vsel %vm585_vm11, %v4327_v24, %v584_v16  ;;  %v4529_v8 = vmul.f32 0.0, %v4518_v34  ;;  %v4531_v50 = vpop.permute.xlu2 %3042  ;;  %v1405_v58 = vmul.f32 %v4560_v17, %v5705_v9  ;;  %v4602_v39 = vld [vmem:[#allocation7 + $0x25] ss:$8 sm:$0xf] }
 0x1d8   : > { %v4538_v28 = vmul.f32 %v4510_v44, %v588_v21  ;;  %v1648_v21 = vmul.f32 %v4456_v7, %v1639_v35  ;;  %v1285_v46 = vmul.f32 %v4560_v17, %v4277_v59  ;;  %v5709_v59 = vld [vmem:[#allocation31_spill] sm:$0xff] }
 0x1da   : > { %v3191_v9 = vpack.i.bf16 %v1648_v21, %v596_v10 }
 0x1dc   : > { %3167 = vrot.lane.b32.xlu0 %v3166_v63, %s3473_s7  ;;  %3177 = vrot.lane.b32.xlu2 %v3176_v18, %s5704_s29  ;;  %v1465_v63 = vmul.f32 %v4560_v17, %v5707_v32 }
 0x1de   : > { %v4555_v16 = vpop.permute.xlu1 %1455  ;;  %v4557_v53 = vpop.permute.xlu0 %1395 }
 0x1df   : > { %v1459_v4 = vsel %vm399_vm1, %v4184_v54, %v4555_v16  ;;  %v1399_v18 = vsel %vm337_vm0, %v5706_v62, %v4557_v53  ;;  %v4570_v24 = vpop.permute.xlu2 %3057  ;;  %v647_v54 = vsel %vm552_vm12, %v4350_v45, %v4348_v0  ;;  %v708_v62 = vsel %vm490_vm5, %v4214_v41, %v4459_v37 }
 0x1e0   : > { %v1468_v35 = vmul.f32 %v4456_v7, %v1459_v4  ;;  %v1408_v38 = vmul.f32 %v4456_v7, %v1399_v18  ;;  %v717_v0 = vmul.f32 %v4510_v44, %v708_v62  ;;  %v1708_v41 = vmul.f32 %v4456_v7, %v1699_v25 }
 0x1e1   : > { %v1229_v62 = vmul.f32 0.0, %v3990_v49 }
 0x1e2   : > { %v3186_v47 = vpack.i.bf16 %v1468_v35, %v1465_v63  ;;  %v3181_v55 = vpack.i.bf16 %v1408_v38, %v1405_v58  ;;  %v656_v38 = vmul.f32 %v4514_v56, %v647_v54 }
 0x1e4   : > { %3182 = vrot.lane.b32.xlu0 %v3181_v55, %s3460_s8  ;;  %3192 = vrot.lane.b32.xlu2 %v3191_v9, %s3466_s26  ;;  %v714_v55 = vmul.f32 0.0, %v4182_v52  ;;  %v3196_v37 = vpack.i.bf16 %v1708_v41, %v656_v38  ;;  %v3044_v52 = vunpack.i.l.bf16 %v4531_v50 }
 0x1e5   : > { %3187 = vrot.lane.b32.xlu1 %v3186_v47, %s5700_s12  ;;  %v3045_v47 = vunpack.i.h.bf16 %v4531_v50 }
 0x1e6   : > { %v4590_v21 = vpop.permute.xlu1 %1335  ;;  %v4592_v58 = vpop.permute.xlu0 %1275  ;;  %v3201_v4 = vpack.i.bf16 %v717_v0, %v714_v55 }
 0x1e7   : > { %v4595_v45 = vpop.permute.xlu2 %3072  ;;  %v1279_v15 = vsel %vm5638_vm15, %v4147_v1, %v4592_v58  ;;  %v1122_v1 = vperm.slane %v4602_v39, 1  ;;  %v1339_v49 = vsel %vm915_vm3, %v4191_v22, %v4590_v21 }
 0x1e8   : > { %v1288_v18 = vmul.f32 %v4456_v7, %v1279_v15 }
 0x1e9   : > { %v1130_v55 = vmul.f32 %v4514_v56, %v1122_v1  ;;  %v1348_v1 = vmul.f32 %v4456_v7, %v1339_v49 }
 0x1ea   : > { %v3211_v0 = vpack.i.bf16 %v1288_v18, %v1285_v46  ;;  %v1103_v18 = vsel %vm5635_vm8, %v3044_v52, %v3045_v47 }
 0x1ec   : > { %3207 = vrot.lane.b32.xlu2 %v3206_v57, %s3458_s30  ;;  %3197 = vrot.lane.b32.xlu0 %v3196_v37, %s3470_s27 }
 0x1ed   : > { %3202 = vrot.lane.b32.xlu1 %v3201_v4, %s3459_s15  ;;  %v5708_v4 = vld [vmem:[#allocation30_spill] sm:$0xff] }
 0x1ee   : > { %v3023_v32 = vpop.permute.xlu1 %3022  ;;  %v3018_v63 = vpop.permute.xlu0 %3017  ;;  %v1169_v15 = vmul.f32 0.0, %v5708_v4 }
 0x1ef   : > { %v3025_v10 = vunpack.i.h.bf16 %v3023_v32  ;;  %v3024_v35 = vunpack.i.l.bf16 %v3023_v32  ;;  %v3020_v9 = vunpack.i.h.bf16 %v3018_v63  ;;  %v3019_v54 = vunpack.i.l.bf16 %v3018_v63  ;;  %v4614_v40 = vpop.permute.xlu2 %3087 }
 0x1f0   : > { %v5633_v57 = vunpack.i.h.bf16 %v4614_v40  ;;  %v1579_v32 = vsel %vm523_vm6, %v5709_v59, %v4518_v34  ;;  %v525_v63 = vsel %vm523_vm6, %v4417_v3, %v4317_v30 }
 0x1f1   : > { %v1186_v25 = vsel %vm1072_vm10, %v3019_v54, %v3020_v9  ;;  %v1246_v38 = vsel %vm1010_vm14, %v3024_v35, %v3025_v10  ;;  %v1588_v34 = vmul.f32 %v4456_v7, %v1579_v32  ;;  %v534_v3 = vmul.f32 %v4514_v56, %v525_v63 }
 0x1f2   : > { %v2056_v41 = vpack.c.bf16 %v1246_v38, %v1186_v25  ;;  %v4626_v37 = vsel %vm5635_vm8, %v3045_v47, %v5633_v57  ;;  %v2052_v47 = vpack.c.bf16 %v1130_v55, %v1103_v18  ;;  %v3089_v56 = vunpack.i.l.bf16 %v4614_v40 }
 0x1f3   : > { %v3226_v4 = vpack.i.bf16 %v1588_v34, %v534_v3  ;;  %v1121_v18 = vperm.slane %v4602_v39, 0 }
 0x1f4   : > { %2149 = vmatpush.bf16.msra.mxu2 %v2056_v41  ;;  %3212 = vrot.lane.b32.xlu2 %v3211_v0, %s5702_s9 }
 0x1f5   : > { %1183 = vrot.lane.b32.xlu0 %v1169_v15, %s5686_s10  ;;  %1243 = vrot.lane.b32.xlu1 %v1229_v62, %s5710_s25  ;;  %v1345_v62 = vmul.f32 %v4560_v17, %v4301_v20  ;;  %s5711_s10 = smov 55   ;;  %v5712_v20 = vpack.i.bf16 %v4283_v43, %v4280_v5 }
 0x1f6   : > { %v4646_v22 = vpop.permute.xlu1 %3037  ;;  %v4648_v46 = vpop.permute.xlu0 %3032 }
 0x1f7   : > { %v3040_v25 = vunpack.i.h.bf16 %v4646_v22  ;;  %v3039_v38 = vunpack.i.l.bf16 %v4646_v22  ;;  %v3035_v0 = vunpack.i.h.bf16 %v4648_v46  ;;  %v3034_v30 = vunpack.i.l.bf16 %v4648_v46 }
 0x1f8   : > { %2150 = vmatpush.bf16.msra.mxu2 %v2052_v47  ;;  %v3216_v59 = vpack.i.bf16 %v1348_v1, %v1345_v62 }
 0x1f9   : > { %v1786_v41 = vsel %vm461_vm2, %v3034_v30, %v3035_v0  ;;  %v1846_v55 = vsel %vm399_vm1, %v3039_v38, %v3040_v25 }
 0x1fa   : > { %v2076_v15 = vpack.c.bf16 %v1846_v55, %v1786_v41  ;;  %v5713_v41 = vld [vmem:[#allocation33_spill] sm:$0xff] }
 0x1fb   : > { %v1085_v55 = vmul.f32 %v4456_v7, %v5713_v41 }
 0x1fc   : > { %3227 = vrot.lane.b32.xlu2 %v3226_v4, %s5671_s19  ;;  %2166 = vmatpush.bf16.msra.mxu3 %v2076_v15  ;;  %v1129_v15 = vmul.f32 %v4560_v17, %v1121_v18  ;;  %v5715_v17 = vpack.i.bf16 %v4370_v11, %v4367_v12 }
 0x1fd   : > { %3217 = vrot.lane.b32.xlu0 %v3216_v59, %s5704_s29  ;;  %3222 = vrot.lane.b32.xlu1 %v5712_v20, %s5711_s10  ;;  %v5714_v59 = vpack.i.bf16 %v4538_v28, %v4535_v61 }
 0x1fe   : > { %v4670_v32 = vpop.permute.xlu1 %3052  ;;  %v4672_v49 = vpop.permute.xlu0 %3047 }
 0x1ff   : > { %v5640_v63 = vunpack.i.h.bf16 %v4670_v32  ;;  %v3054_v34 = vunpack.i.l.bf16 %v4670_v32  ;;  %v5641_v1 = vunpack.i.h.bf16 %v4672_v49  ;;  %v3049_v47 = vunpack.i.l.bf16 %v4672_v49 }
 0x201   : > { %v1185_v3 = vsel %vm1072_vm10, %v3049_v47, %v3019_v54  ;;  %v1245_v5 = vsel %vm1010_vm14, %v3054_v34, %v3024_v35  ;;  %v4684_v43 = vsel %vm1072_vm10, %v3020_v9, %v5641_v1  ;;  %v4689_v62 = vsel %vm1010_vm14, %v3025_v10, %v5640_v63 }
 0x202   : > { %v2055_v4 = vpack.c.bf16 %v1245_v5, %v1185_v3  ;;  %v1102_v35 = vsel %vm5635_vm8, %v3089_v56, %v3044_v52  ;;  %v3060_v9 = vunpack.i.h.bf16 %v4570_v24  ;;  %v3059_v10 = vunpack.i.l.bf16 %v4570_v24 }
 0x203   : > { %v2051_v20 = vpack.c.bf16 %v1129_v15, %v1102_v35  ;;  %v3074_v56 = vunpack.i.l.bf16 %v4595_v45  ;;  %v1023_v3 = vmul.f32 %v4456_v7, %v4104_v60  ;;  %vm5726_vm8 = vcmask 596992  }
 0x204   : > { %2121 = vmatpush.bf16.msra.mxu0 %v2055_v4  ;;  %1099 = vrot.lane.b32.xlu2 %v1085_v55, %s5687_s13  ;;  %v1666_v12 = vsel %vm585_vm11, %v3059_v10, %v3060_v9  ;;  %s5716_s13 = smov 8  }
 0x205   : > { %3232 = vrot.lane.b32.xlu0 %v5714_v59, %s3466_s26  ;;  %3237 = vrot.lane.b32.xlu1 %v5715_v17, %s3470_s27  ;;  %v1845_v28 = vsel %vm399_vm1, %v3074_v56, %v3039_v38  ;;  %v961_v38 = vmul.f32 %v4456_v7, %v4246_v33  ;;  %v899_v17 = vmul.f32 %v4456_v7, %v4394_v2 }
 0x206   : > { %v4710_v50 = vpop.permute.xlu0 %3062  ;;  %v4712_v52 = vpop.permute.xlu1 %3067  ;;  %v5718_v56 = vpack.i.bf16 %v4465_v27, %v4453_v31  ;;  %v5720_v27 = vld [vmem:[#allocation19_spill] sm:$0xff] }
 0x207   : > { %v3065_v18 = vunpack.i.h.bf16 %v4710_v50  ;;  %v3064_v34 = vunpack.i.l.bf16 %v4710_v50  ;;  %v3069_v47 = vunpack.i.l.bf16 %v4712_v52  ;;  %v3070_v1 = vunpack.i.h.bf16 %v4712_v52 }
 0x208   : > { %2122 = vmatpush.bf16.msra.mxu0 %v2051_v20 }
 0x209   : > { %v1785_v61 = vsel %vm461_vm2, %v3069_v47, %v3034_v30  ;;  %v1726_v11 = vsel %vm523_vm6, %v3064_v34, %v3065_v18  ;;  %v5717_v30 = vpack.i.bf16 %v4421_v29, %v4425_v51  ;;  %v5719_v47 = vpack.i.bf16 %v4471_v6, %v4462_v14 }
 0x20a   : > { %v2075_v5 = vpack.c.bf16 %v1845_v28, %v1785_v61  ;;  %v2072_v41 = vpack.c.bf16 %v1726_v11, %v1666_v12  ;;  %v1529_v6 = vmul.f32 0.0, %v5720_v27 }
 0x20c   : > { %1037 = vrot.lane.b32.xlu2 %v1023_v3, %s5693_s20  ;;  %2138 = vmatpush.bf16.msra.mxu1 %v2075_v5  ;;  %s2897_s20 = sshll.u32 %s3538_s28, 6 }
 0x20d   : > { %975 = vrot.lane.b32.xlu1 %v961_v38, %s5716_s13  ;;  %3242 = vrot.lane.b32.xlu0 %v5717_v30, %s5671_s19  ;;  %s2748_s13 = scalar_lea.hbm %s5581_s6, %s2897_s20 }
 0x20e   : > { %2167 = vmatpush.bf16.msra.mxu3 %v2072_v41  ;;  %v4740_v55 = vpop.permute.xlu0 %3077  ;;  %v4742_v4 = vpop.permute.xlu1 %3082 }
 0x20f   : > { %v3080_v60 = vunpack.i.h.bf16 %v4740_v55  ;;  %v3079_v15 = vunpack.i.l.bf16 %v4740_v55  ;;  %v3085_v33 = vunpack.i.h.bf16 %v4742_v4  ;;  %v3084_v35 = vunpack.i.l.bf16 %v4742_v4  ;;  %v4748_v59 = vpop.permute.xlu2 %3102 }
 0x211   : > { %v979_v29 = vsel %vm5638_vm15, %v3079_v15, %v3080_v60  ;;  %v1041_v51 = vsel %vm1039_vm9, %v3084_v35, %v3085_v33 }
 0x212   : > { %v2048_v20 = vpack.c.bf16 %v1041_v51, %v979_v29  ;;  %v5722_v29 = vpack.i.bf16 %v4360_v23, %v4346_v36  ;;  %v5723_v51 = vpack.i.bf16 %v4524_v26, %v4521_v19  ;;  %v1469_v23 = vmul.f32 0.0, %v4555_v16 }
 0x213   : > { %v1409_v26 = vmul.f32 0.0, %v4557_v53  ;;  %v1349_v16 = vmul.f32 0.0, %v4590_v21 }
 0x214   : > { %913 = vrot.lane.b32.xlu2 %v899_v17, %s3473_s7  ;;  %2151 = vmatpush.bf16.msra.mxu2 %v2048_v20  ;;  %v3030_v20 = vunpack.i.h.bf16 %v4473_v48 }
 0x215   : > { %3252 = vrot.lane.b32.xlu1 %v5718_v56, %s3458_s30  ;;  %3247 = vrot.lane.b32.xlu0 %v5719_v47, %s3459_s15  ;;  %s5721_s30 = smov 71  }
 0x216   : > { %v4769_v61 = vpop.permute.xlu0 %3092  ;;  %v4771_v28 = vpop.permute.xlu1 %3097 }
 0x217   : > { %v3095_v2 = vunpack.i.h.bf16 %v4769_v61  ;;  %v3094_v12 = vunpack.i.l.bf16 %v4769_v61  ;;  %v3100_v11 = vunpack.i.h.bf16 %v4771_v28  ;;  %v3099_v3 = vunpack.i.l.bf16 %v4771_v28  ;;  %v4777_v5 = vpop.permute.xlu2 %3117 }
 0x218   : > { %v3120_v38 = vunpack.i.h.bf16 %v4777_v5  ;;  %v3119_v30 = vunpack.i.l.bf16 %v4777_v5 }
 0x219   : > { %v1546_v31 = vsel %vm490_vm5, %v3094_v12, %v3095_v2  ;;  %v1606_v14 = vsel %vm552_vm12, %v3099_v3, %v3100_v11 }
 0x21a   : > { %v2068_v41 = vpack.c.bf16 %v1606_v14, %v1546_v31  ;;  %v917_v36 = vsel %vm915_vm3, %v3119_v30, %v3120_v38  ;;  %v5724_v14 = vpack.i.bf16 %v4506_v42, %v4529_v8 }
 0x21c   : > { %1543 = vrot.lane.b32.xlu2 %v1529_v6, %s5721_s30  ;;  %2168 = vmatpush.bf16.msra.mxu3 %v2068_v41  ;;  %s2751_s30 = sshll.u32 %s2748_s13, 4  ;;  %s2752_s30 = int_to_ptr.hbm [resolvable:$true] %s2751_s30 }
 0x21d   : > { %3262 = vrot.lane.b32.xlu1 %v5722_v29, %s3470_s27  ;;  %3257 = vrot.lane.b32.xlu0 %v5723_v51, %s3466_s26  ;;  %v1289_v29 = vmul.f32 0.0, %v4592_v58  ;;  %v3104_v51 = vunpack.i.l.bf16 %v4748_v59  ;;  %s2857_s27 = sshll.u32 %s3605_s17, 6  ;;  %s3396_s15 = sshra.s32 %s2752_s30, 4  ;;  %s3397_s15 = int_to_ptr.hbm [resolvable:$true] %s3396_s15 }
 0x21e   : > { %v4797_v17 = vpop.permute.xlu1 %3112  ;;  %s5507_s7 = scalar_lea.vmem [#allocation9], %s2857_s27  ;;  %p3403_p8 = scmp.lt.s32.totalorder %s3397_s15, %s5581_s6 }
 0x21f   : > { %v3114_v56 = vunpack.i.l.bf16 %v4797_v17  ;;  %v4801_v47 = vpop.permute.xlu2 %3132 }
 0x220   : > { %v3134_v4 = vunpack.i.l.bf16 %v4801_v47 }
 0x221   : > { %v855_v31 = vsel %vm337_vm0, %v3030_v20, %v3114_v56 }
 0x222   : > { %v2044_v19 = vpack.c.bf16 %v917_v36, %v855_v31 }
 0x224   : > { %1483 = vrot.lane.b32.xlu2 %v1469_v23, %s5700_s12  ;;  %2152 = vmatpush.bf16.msra.mxu2 %v2044_v19  ;;  %v1665_v23 = vsel %vm585_vm11, %v3104_v51, %v3059_v10 }
 0x225   : > { %1423 = vrot.lane.b32.xlu1 %v1409_v26, %s3460_s8  ;;  %3267 = vrot.lane.b32.xlu0 %v5724_v14, %s5671_s19  ;;  %s303_s8 = scalar_select %p302_p1, %s3538_s28, 1 }
 0x226   : > { %v4819_v27 = vpop.permute.xlu1 %3127  ;;  %s2749_s28 = sshll.u32 %s5507_s7, 4  ;;  %s3402_s19 = scalar_lea.hbm %s5581_s6, 128  ;;  %s2750_s28 = int_to_ptr.vmem [resolvable:$true] %s2749_s28 }
 0x227   : > { %v5634_v6 = vunpack.i.h.bf16 %v4819_v27  ;;  %v4822_v41 = vpop.permute.xlu2 %3147 }
 0x228   : > { %v3149_v58 = vunpack.i.l.bf16 %v4822_v41 }
 0x229   : > { %v4827_v53 = vsel %vm1039_vm9, %v3085_v33, %v5634_v6 }
 0x22a   : > { %v1605_v57 = vsel %vm552_vm12, %v3149_v58, %v3099_v3 }
 0x22d   : > { %1363 = vrot.lane.b32.xlu1 %v1349_v16, %s5704_s29  ;;  %1303 = vrot.lane.b32.xlu0 %v1289_v29, %s5702_s9  ;;  %v3129_v29 = vunpack.i.l.bf16 %v4819_v27  ;;  %s2894_s9 = sshll.u32 %s303_s8, 4  ;;  %s2737_s29 = scalar_lea.sflag [#allocation6], %s3605_s17 }
 0x22e   : > { %v4834_v42 = vpop.permute.xlu0 %3107  ;;  %s5326_s26 = scalar_lea.vmem %s5576_s1, %s2894_s9  ;;  %s3398_s8 = scalar_lea.hbm %s3397_s15, 64 }
 0x22f   : > { %v3109_v8 = vunpack.i.l.bf16 %v4834_v42  ;;  %v4837_v31 = vpop.permute.xlu1 %3142  ;;  %v4839_v36 = vpop.permute.xlu2 %3162  ;;  %v1040_v3 = vsel %vm1039_vm9, %v3129_v29, %v3084_v35  ;;  %p3399_p3 = scmp.ne.s32.totalorder %s3397_s15, %s3398_s8  ;;  %p3404_p7 = scmp.lt.s32.totalorder %s3402_s19, %s3398_s8 }
 0x230   : > { %v3144_v33 = vunpack.i.l.bf16 %v4837_v31  ;;  %v5636_v21 = vunpack.i.h.bf16 %v4839_v36 }
 0x231   : > { %v1725_v19 = vsel %vm523_vm6, %v3109_v8, %v3064_v34  ;;  %p3400_p5 = pnand %p3399_p3, %p3574_p13  ;;  %p3405_p9 = por %p3404_p7, %p3403_p8 }
 0x232   : > { %v2071_v26 = vpack.c.bf16 %v1725_v19, %v1665_v23  ;;  %v1545_v14 = vsel %vm490_vm5, %v3144_v33, %v3094_v12  ;;  %v4854_v16 = vsel %vm337_vm0, %v3114_v56, %v5636_v21  ;;  %v5639_v23 = vunpack.i.h.bf16 %v4797_v17 }
 0x233   : > { %v2067_v10 = vpack.c.bf16 %v1605_v57, %v1545_v14  ;;  %p3401_p12 = pneg %p3400_p5 }
 0x234   : > { %2139 = vmatpush.bf16.msra.mxu1 %v2071_v26 }
 0x235   : > { %p3406_p10 = pnand %p3405_p9, %p3401_p12 }
 0x236   : > { %v4858_v6 = vpop.permute.xlu0 %3122 }
 0x237   : > { %v5637_v51 = vunpack.i.h.bf16 %v4858_v6  ;;  %v3124_v34 = vunpack.i.l.bf16 %v4858_v6  ;;  %v4862_v8 = vpop.permute.xlu1 %3157  ;;  %v4864_v12 = vpop.permute.xlu2 %3177 }
 0x238   : > { %2140 = vmatpush.bf16.msra.mxu1 %v2067_v10  ;;  %v5725_v10 = vunpack.i.h.bf16 %v4427_v13  ;;  %v5647_v58 = vunpack.i.h.bf16 %v4862_v8  ;;  %v5645_v54 = vunpack.i.l.bf16 %v4862_v8 }
 0x239   : > { %v978_v56 = vsel %vm5638_vm15, %v3124_v34, %v3079_v15  ;;  %v4877_v57 = vsel %vm5638_vm15, %v3080_v60, %v5637_v51  ;;  %v3135_v15 = vunpack.i.h.bf16 %v4801_v47  ;;  %vm5727_vm15 = vcmask 982016   ;;  %v2862_v47 = vld [vmem:[%s5577_s2] sm:$0xf] }
 0x23a   : > { %v2047_v33 = vpack.c.bf16 %v1040_v3, %v978_v56  ;;  %v1907_v34 = vsel %vm337_vm0, %v5725_v10, %v5639_v23  ;;  %v5644_v56 = vunpack.i.h.bf16 %v4864_v12  ;;  %v5650_v3 = vunpack.i.l.bf16 %v4864_v12 }
 0x23b   : > { %v2081_v10 = vpack.c.bf16 %v1907_v34, %v1907_v34 }
 0x23c   : > { %2123 = vmatpush.bf16.msra.mxu0 %v2047_v33  ;;  %v1426_v33 = vsel %vm5726_vm8, %v3134_v4, %v3135_v15  ;;  %v1366_v23 = vsel %vm886_vm7, %v5650_v3, %v5644_v56 }
 0x23e   : > { %v4884_v19 = vpop.permute.xlu0 %3137 }
 0x23f   : > { %v5651_v35 = vunpack.i.h.bf16 %v4884_v19  ;;  %v3139_v55 = vunpack.i.l.bf16 %v4884_v19  ;;  %v4888_v26 = vpop.permute.xlu1 %3172  ;;  %v4890_v60 = vpop.permute.xlu2 %3192  ;;  %v5729_v61 = vunpack.i.h.bf16 %v4884_v19 }
 0x240   : > { %v5642_v14 = vunpack.i.h.bf16 %v4888_v26  ;;  %v5643_v29 = vunpack.i.l.bf16 %v4888_v26 }
 0x241   : > { %v1486_v21 = vsel %vm428_vm4, %v3139_v55, %v5651_v35 }
 0x242   : > { %v2064_v51 = vpack.c.bf16 %v1486_v21, %v1426_v33  ;;  %v1306_v13 = vsel %vm5727_vm15, %v5643_v29, %v5642_v14  ;;  %v3075_v33 = vunpack.i.h.bf16 %v4595_v45  ;;  %v2116_v29 = vsel %vm2108_vm13, %v2081_v10, 0 }
 0x243   : > { %v2060_v21 = vpack.c.bf16 %v1366_v23, %v1306_v13  ;;  %v1847_v23 = vsel %vm399_vm1, %v3040_v25, %v5647_v58  ;;  %v3164_v10 = vunpack.i.l.bf16 %v4839_v36  ;;  %vm2104_vm15 = vcmask 719872  }
 0x244   : > { %2169 = vmatpush.bf16.msra.mxu3 %v2064_v51  ;;  %v795_v45 = vsel %vm399_vm1, %v3075_v33, %v5645_v54 }
 0x246   : > { %v4919_v63 = vpop.permute.xlu0 %3152 }
 0x247   : > { %v5648_v51 = vunpack.i.h.bf16 %v4919_v63  ;;  %v5649_v34 = vunpack.i.l.bf16 %v4919_v63  ;;  %v4925_v14 = vpop.permute.xlu2 %3207 }
 0x248   : > { %2170 = vmatpush.bf16.msra.mxu3 %v2060_v21 }
 0x249   : > { %v735_v56 = vsel %vm461_vm2, %v3070_v1, %v5649_v34  ;;  %v1787_v52 = vsel %vm461_vm2, %v3035_v0, %v5648_v51  ;;  %v854_v0 = vsel %vm337_vm0, %v3164_v10, %v3030_v20  ;;  %v5652_v10 = vunpack.i.l.bf16 %v4890_v60 }
 0x24a   : > { %v2077_v13 = vpack.c.bf16 %v1847_v23, %v1787_v52 }
 0x24c   : > { %2193 = vmatpush.bf16.msrb.mxu3 %v2116_v29  ;;  %v2040_v29 = vpack.c.bf16 %v795_v45, %v735_v56 }
 0x24e   : > { %2153 = vmatpush.bf16.msra.mxu2 %v2040_v29  ;;  %v4945_v21 = vpop.permute.xlu0 %3167 }
 0x24f   : > { %v5646_v54 = vunpack.i.h.bf16 %v4945_v21  ;;  %v3169_v46 = vunpack.i.l.bf16 %v4945_v21  ;;  %v4962_v56 = vpop.permute.xlu2 %3212 }
 0x250   : > { %2194 = vmatpush.bf16.msrb.mxu3 %v2077_v13  ;;  %v5653_v13 = vunpack.i.h.bf16 %v4890_v60 }
 0x251   : > { %v916_v22 = vsel %vm915_vm3, %v3169_v46, %v3119_v30  ;;  %v4960_v25 = vsel %vm915_vm3, %v3120_v38, %v5646_v54  ;;  %v3209_v46 = vunpack.i.l.bf16 %v4925_v14  ;;  %v3110_v54 = vunpack.i.h.bf16 %v4834_v42  ;;  %v5744_v42 = vld [vmem:[#allocation28_spill] sm:$0xff] }
 0x252   : > { %v2043_v45 = vpack.c.bf16 %v916_v22, %v854_v0  ;;  %v5654_v22 = vunpack.i.h.bf16 %v4748_v59  ;;  %v1667_v34 = vsel %vm585_vm11, %v3060_v9, %v5653_v13  ;;  %v2895_v13 = vld [vmem:[%s5577_s2 + $0x4] sm:$0xf] }
 0x253   : > { %v794_v51 = vsel %vm399_vm1, %v3209_v46, %v3075_v33 }
 0x254   : > { %2124 = vmatpush.bf16.msra.mxu0 %v2043_v45  ;;  %v3150_v45 = vunpack.i.h.bf16 %v4822_v41  ;;  %v615_v52 = vsel %vm585_vm11, %v5654_v22, %v5652_v10  ;;  %v2864_v22 = vld [vmem:[%s5577_s2 + $0x8] sm:$0xf0]  ;;  %v5756_v41 = vunpack.i.l.bf16 %v4890_v60 }
 0x256   : > { %v4966_v48 = vpop.permute.xlu0 %3182 }
 0x257   : > { %v3184_v20 = vunpack.i.l.bf16 %v4966_v48  ;;  %v4969_v23 = vpop.permute.xlu1 %3187  ;;  %v4977_v0 = vpop.permute.xlu2 %3227  ;;  %v3185_v3 = vunpack.i.h.bf16 %v4966_v48 }
 0x258   : > { %v3189_v30 = vunpack.i.l.bf16 %v4969_v23  ;;  %v5656_v35 = vunpack.i.h.bf16 %v4969_v23 }
 0x259   : > { %v1425_v5 = vsel %vm5726_vm8, %v3184_v20, %v3134_v4  ;;  %v3145_v4 = vunpack.i.h.bf16 %v4837_v31  ;;  %v5773_v31 = vunpack.i.h.bf16 %v4969_v23 }
 0x25a   : > { %v1485_v38 = vsel %vm428_vm4, %v3189_v30, %v3139_v55  ;;  %v3230_v55 = vunpack.i.h.bf16 %v4977_v0  ;;  %v3229_v30 = vunpack.i.l.bf16 %v4977_v0 }
 0x25b   : > { %v2063_v29 = vpack.c.bf16 %v1485_v38, %v1425_v5 }
 0x25c   : > { %v554_v50 = vsel %vm552_vm12, %v3150_v45, %v3229_v30 }
 0x25d   : > { %2141 = vmatpush.bf16.msra.mxu1 %v2063_v29 }
 0x25e   : > { %v4983_v20 = vpop.permute.xlu0 %3197 }
 0x25f   : > { %v3200_v5 = vunpack.i.h.bf16 %v4983_v20  ;;  %v5655_v38 = vunpack.i.l.bf16 %v4983_v20  ;;  %v4989_v58 = vpop.permute.xlu1 %3202 }
 0x260   : > { %v3204_v29 = vunpack.i.l.bf16 %v4989_v58 }
 0x261   : > { %v675_v33 = vsel %vm523_vm6, %v3110_v54, %v5655_v38  ;;  %v1727_v46 = vsel %vm523_vm6, %v3065_v18, %v3200_v5  ;;  %v5032_v18 = vor.u32 %v2895_v13, %v2864_v22  ;;  %v5730_v13 = vunpack.i.h.bf16 %v4672_v49 }
 0x262   : > { %v734_v24 = vsel %vm461_vm2, %v3204_v29, %v3070_v1  ;;  %v2036_v10 = vpack.c.bf16 %v675_v33, %v615_v52  ;;  %v2073_v9 = vpack.c.bf16 %v1727_v46, %v1667_v34  ;;  %v1607_v1 = vsel %vm552_vm12, %v3100_v11, %v3230_v55  ;;  %v5728_v34 = vld [vmem:[#allocation29_spill] sm:$0xff] }
 0x263   : > { %v2039_v38 = vpack.c.bf16 %v794_v51, %v734_v24  ;;  %v1547_v51 = vsel %vm490_vm5, %v3095_v2, %v3145_v4  ;;  %2869 = vmatmul.msk.bf16.vlgmr.msra.gmra.mxu3 %vm2104_vm15, %v5032_v18  ;;  %v2032_v52 = vpack.c.bf16 %v554_v50, %v5728_v34  ;;  %v1427_v11 = vsel %vm5726_vm8, %v3135_v15, %v3185_v3  ;;  %v2896_v15 = vld [vmem:[%s5577_s2 + $0x4] sm:$0xf0] }
 0x264   : > { %2154 = vmatpush.bf16.msra.mxu2 %v2036_v10  ;;  %2195 = vmatpush.bf16.msrb.mxu3 %v2073_v9  ;;  %v2069_v29 = vpack.c.bf16 %v1607_v1, %v1547_v51  ;;  %v1487_v2 = vsel %vm428_vm4, %v5729_v61, %v5656_v35  ;;  %v5731_v22 = vunpack.i.h.bf16 %v4670_v32  ;;  %v5070_v46 = vor.u32 %v2896_v15, %v2862_v47  ;;  %v5732_v32 = vld [vmem:[#allocation24_spill] sm:$0xff]  ;;  %v5733_v24 = vld [vmem:[#allocation22_spill] sm:$0xff] }
 0x265   : > { %2125 = vmatpush.bf16.msra.mxu0 %v2039_v38  ;;  %v2065_v19 = vpack.c.bf16 %v1487_v2, %v1427_v11  ;;  %v5734_v9 = vpack.c.bf16 %v5732_v32, %v5733_v24  ;;  %v3214_v50 = vunpack.i.l.bf16 %v4962_v56  ;;  %v3215_v1 = vunpack.i.h.bf16 %v4962_v56  ;;  %v5089_v2 = vpop.permute.xlu2 %1099 }
 0x266   : > { %v5735_v11 = vunpack.i.l.bf16 %v4888_v26  ;;  %v5738_v47 = vunpack.i.h.bf16 %v4888_v26  ;;  %v5741_v24 = vunpack.i.h.bf16 %v4797_v17 }
 0x267   : > { %v1184_v28 = vpop.permute.xlu0 %1183  ;;  %v1244_v33 = vpop.permute.xlu1 %1243 }
 0x268   : > { %v5055_v10 = vsel %vm1072_vm10, %v5730_v13, %v1184_v28  ;;  %v5060_v38 = vsel %vm1010_vm14, %v5731_v22, %v1244_v33  ;;  %2155 = vmatpush.bf16.msra.mxu2 %v2032_v52  ;;  %2196 = vmatpush.bf16.msrb.mxu3 %v2069_v29  ;;  %v1123_v33 = vperm.slane %v4602_v39, 2  ;;  %vm5736_vm10 = vcmask 982016  }
 0x269   : > { %v2058_v49 = vpack.c.bf16 %v5060_v38, %v5055_v10  ;;  %v1305_v61 = vsel %vm5736_vm10, %v3214_v50, %v5735_v11  ;;  %v5737_v13 = vunpack.i.l.bf16 %v4864_v12  ;;  %vm5739_vm14 = vmmov %vm5736_vm10 }
 0x26a   : > { %v1307_v15 = vsel %vm5739_vm14, %v5738_v47, %v3215_v1 }
 0x26c   : > { %2156 = vmatpush.bf16.msra.mxu2 %v5734_v9  ;;  %2197 = vmatpush.bf16.msrb.mxu3 %v2065_v19  ;;  %v5740_v19 = vunpack.i.h.bf16 %v4864_v12 }
 0x26f   : > { %v5077_v51 = vpop.permute.xlu0 %3217  ;;  %v5079_v34 = vpop.permute.xlu1 %3222  ;;  %2157 = vmatmul.bf16.vlgmr.msra.gmra.mxu2 %v5070_v46 }
 0x270   : > { %v3220_v52 = vunpack.i.h.bf16 %v5077_v51  ;;  %v3219_v29 = vunpack.i.l.bf16 %v5077_v51  ;;  %v3224_v28 = vunpack.i.l.bf16 %v5079_v34 }
 0x272   : > { %v1365_v22 = vsel %vm886_vm7, %v3219_v29, %v5737_v13  ;;  %v1367_v32 = vsel %vm886_vm7, %v5740_v19, %v3220_v52  ;;  %v1908_v9 = vsel %vm337_vm0, %v5741_v24, %v3224_v28  ;;  %v1131_v29 = vmul.f32 %v4510_v44, %v1123_v33 }
 0x273   : > { %v2059_v50 = vpack.c.bf16 %v1365_v22, %v1305_v61  ;;  %v2061_v11 = vpack.c.bf16 %v1367_v32, %v1307_v15  ;;  %v2082_v35 = vpack.c.bf16 %v1908_v9, %v1908_v9  ;;  %v5742_v13 = vpack.c.bf16 %v4689_v62, %v4684_v43  ;;  %v1038_v22 = vpop.permute.xlu2 %1037  ;;  %v5746_v9 = vld [vmem:[#allocation18_spill] sm:$0xff] }
 0x274   : > { %v2053_v61 = vpack.c.bf16 %v1131_v29, %v4626_v37  ;;  %v5743_v44 = vunpack.i.h.bf16 %v4748_v59  ;;  %v3474_v33 = vmov 0   ;;  %v3205_v59 = vunpack.i.h.bf16 %v4989_v58 }
 0x275   : > { %2142 = vmatpush.bf16.msra.mxu1 %v2059_v50  ;;  %2198 = vmatpush.bf16.msrb.mxu3 %v2061_v11  ;;  %v2119_v26 = vsel %vm2108_vm13, %v2082_v35, 0  ;;  %v5132_v35 = vld [vmem:[%s5579_s4] sm:$0xff]  ;;  %v3004_v15 = vunpack.i.l.bf16 %v5744_v42  ;;  %v3210_v19 = vunpack.i.h.bf16 %v4925_v14  ;;  %v2994_v50 = vunpack.i.l.bf16 %v5746_v9 }
 0x276   : > { %2221 = vmatpush.bf16.msrb.mxu2 %v2119_v26  ;;  %3272 = vset.pattern.permute.xlu0 %v3474_v33  ;;  %v5747_v11 = vunpack.i.h.bf16 %v4819_v27  ;;  %v5748_v26 = vunpack.i.h.bf16 %v4858_v6  ;;  %vm5749_vm13 = vcmask 64512   ;;  %v5751_v27 = vld [vmem:[#allocation15_spill] sm:$0xff]  ;;  %v5752_v6 = vpack.c.bf16 %v4960_v25, %v4854_v16 }
 0x277   : > { %v5112_v12 = vpop.permute.xlu0 %3232  ;;  %v5114_v47 = vpop.permute.xlu1 %3237  ;;  %3271 = vset.pattern.permute.xlu2 %v3474_v33  ;;  %2087 = vperm.xlu0 %3272, %v5132_v35   ;;  %v1124_v25 = vperm.slane %v4602_v39, 3 }
 0x278   : > { %v3234_v17 = vunpack.i.l.bf16 %v5112_v12  ;;  %v3239_v28 = vunpack.i.l.bf16 %v5114_v47  ;;  %2868 = vmatmul.msk.bf16.vlgmr.msra.gmra.mxu1 %vm2104_vm15, %v5032_v18  ;;  %2870 = vmatmul.msk.bf16.vlgmr.msrb.gmra.mxu3 %vm2104_vm15, %v5032_v18  ;;  %v1043_v29 = vsel %vm1039_vm9, %v5747_v11, %v1038_v22  ;;  %vm5759_vm9 = vmmov %vm5726_vm8  ;;  %vm5762_vm8 = vcmask 7168  }
 0x279   : > { %2177 = vmatpush.bf16.msrb.mxu1 %v5742_v13 }
 0x27a   : > { %v614_v43 = vsel %vm585_vm11, %v3234_v17, %v5743_v44  ;;  %v674_v62 = vsel %vm523_vm6, %v3239_v28, %v3110_v54  ;;  %v5745_v54 = vpack.c.bf16 %v4827_v53, %v4877_v57  ;;  %v3235_v53 = vunpack.i.h.bf16 %v5112_v12 }
 0x27b   : > { %v2035_v37 = vpack.c.bf16 %v674_v62, %v614_v43  ;;  %v3240_v57 = vunpack.i.h.bf16 %v5114_v47  ;;  %v5750_v28 = vunpack.i.l.bf16 %v4919_v63  ;;  %v2984_v43 = vunpack.i.l.bf16 %v5751_v27 }
 0x27c   : > { %v5753_v62 = vunpack.i.h.bf16 %v5744_v42 }
 0x27d   : > { %2178 = vmatpush.bf16.msrb.mxu1 %v2053_v61  ;;  %2126 = vmatpush.bf16.msra.mxu0 %v2035_v37  ;;  %v736_v61 = vsel %vm461_vm2, %v5750_v28, %v3205_v59 }
 0x27e   : > { %v491_v37 = vsel %vm490_vm5, %v3004_v15, %v5753_v62  ;;  %v5757_v15 = vunpack.i.l.bf16 %v4983_v20 }
 0x27f   : > { %v976_v32 = vpop.permute.xlu1 %975  ;;  %v5143_v24 = vpop.permute.xlu0 %3242 }
 0x280   : > { %v981_v13 = vsel %vm5749_vm13, %v5748_v26, %v976_v32  ;;  %v3244_v17 = vunpack.i.l.bf16 %v5143_v24  ;;  %v5754_v32 = vunpack.i.l.bf16 %v4862_v8  ;;  %v5755_v26 = vunpack.i.h.bf16 %v5746_v9  ;;  %v914_v9 = vpop.permute.xlu2 %913 }
 0x281   : > { %2179 = vmatpush.bf16.msrb.mxu1 %v5745_v54  ;;  %v2050_v44 = vpack.c.bf16 %v1043_v29, %v981_v13  ;;  %v3245_v42 = vunpack.i.h.bf16 %v5143_v24  ;;  %v676_v13 = vsel %vm523_vm6, %v5757_v15, %v3240_v57 }
 0x282   : > { %v553_v22 = vsel %vm552_vm12, %v3244_v17, %v3150_v45  ;;  %v796_v11 = vsel %vm399_vm1, %v5754_v32, %v3210_v19  ;;  %v429_v16 = vsel %vm428_vm4, %v2994_v50, %v5755_v26  ;;  %v616_v45 = vsel %vm585_vm11, %v5756_v41, %v3235_v53  ;;  %v5760_v17 = vld [vmem:[#allocation27_spill] sm:$0xff] }
 0x283   : > { %v2031_v54 = vpack.c.bf16 %v553_v22, %v491_v37  ;;  %v2041_v29 = vpack.c.bf16 %v796_v11, %v736_v61  ;;  %v5758_v50 = vunpack.i.h.bf16 %v5751_v27  ;;  %v3010_v28 = vunpack.i.h.bf16 %v5760_v17 }
 0x284   : > { %v1132_v32 = vmul.f32 %v4456_v7, %v1124_v25  ;;  %v5761_v11 = vunpack.i.h.bf16 %v4614_v40  ;;  %v555_v27 = vsel %vm552_vm12, %v3229_v30, %v3245_v42  ;;  %v5763_v7 = vunpack.i.h.bf16 %v4919_v63 }
 0x285   : > { %2180 = vmatpush.bf16.msrb.mxu1 %v5752_v6  ;;  %2127 = vmatpush.bf16.msra.mxu0 %v2031_v54  ;;  %v367_v39 = vsel %vm5759_vm9, %v2984_v43, %v5758_v50  ;;  %v2037_v54 = vpack.c.bf16 %v676_v13, %v616_v45  ;;  %v5207_v43 = vld [vmem:[%s5579_s4 + $0x8] sm:$0xff]  ;;  %v5765_v30 = vunpack.i.l.bf16 %v5760_v17  ;;  %v3225_v63 = vunpack.i.h.bf16 %v5079_v34 }
 0x286   : > { %v2027_v62 = vpack.c.bf16 %v429_v16, %v367_v39  ;;  %v1105_v26 = vsel %vm5762_vm8, %v5761_v11, %v5089_v2  ;;  %v5764_v2 = vunpack.i.h.bf16 %v4862_v8  ;;  %2092 = vperm.xlu2 %3271, %v5207_v43   ;;  %v5766_v39 = vunpack.i.h.bf16 %v4839_v36 }
 0x287   : > { %v3253_v61 = vpop.permute.xlu1 %3252  ;;  %v3248_v6 = vpop.permute.xlu0 %3247  ;;  %v493_v25 = vsel %vm490_vm5, %v5765_v30, %v3010_v28  ;;  %v2054_v38 = vpack.c.bf16 %v1132_v32, %v1105_v26  ;;  %v5770_v34 = vunpack.i.h.bf16 %v4890_v60  ;;  %v5776_v30 = vld [vmem:[#allocation26_spill] sm:$0xff] }
 0x288   : > { %v3254_v37 = vunpack.i.l.bf16 %v3253_v61  ;;  %v3249_v22 = vunpack.i.l.bf16 %v3248_v6  ;;  %v2033_v10 = vpack.c.bf16 %v555_v27, %v493_v25  ;;  %v1544_v15 = vpop.permute.xlu2 %1543  ;;  %v3255_v13 = vunpack.i.h.bf16 %v3253_v61  ;;  %v5777_v25 = vld [vmem:[#allocation20_spill] sm:$0xff] }
 0x289   : > { %2181 = vmatpush.bf16.msrb.mxu1 %v2041_v29  ;;  %2128 = vmatpush.bf16.msra.mxu0 %v2027_v62  ;;  %v3250_v50 = vunpack.i.h.bf16 %v3248_v6  ;;  %v857_v62 = vsel %vm337_vm0, %v5766_v39, %v3225_v63  ;;  %v5771_v61 = vunpack.i.h.bf16 %v4945_v21  ;;  %v1548_v14 = vsel %vm490_vm5, %v3145_v4, %v1544_v15  ;;  %vm5772_vm0 = vmmov %vm5759_vm9  ;;  %v5301_v15 = vld [vmem:[%s5580_s5 + $0x8] sm:$0xff] }
 0x28a   : > { %v1788_v40 = vsel %vm461_vm2, %v5763_v7, %v3249_v22  ;;  %v1848_v29 = vsel %vm399_vm1, %v5764_v2, %v3254_v37  ;;  %v5767_v37 = vld [vmem:[#allocation25_spill] sm:$0xff]  ;;  %v5768_v22 = vld [vmem:[#allocation23_spill] sm:$0xff]  ;;  %v797_v20 = vsel %vm399_vm1, %v3210_v19, %v3255_v13  ;;  %vm5775_vm1 = vmmov %vm5736_vm10 }
 0x28b   : > { %v2078_v16 = vpack.c.bf16 %v1848_v29, %v1788_v40  ;;  %v919_v6 = vsel %vm915_vm3, %v5771_v61, %v914_v9  ;;  %v737_v60 = vsel %vm461_vm2, %v3205_v59, %v3250_v50  ;;  %vm2235_vm2 = vcmask 130048  }
 0x28c   : > { %2129 = vmatmul.bf16.vlgmr.msra.gmra.mxu0 %v5070_v46  ;;  %v2046_v26 = vpack.c.bf16 %v919_v6, %v857_v62  ;;  %v2042_v9 = vpack.c.bf16 %v797_v20, %v737_v60 }
 0x28d   : > { %2182 = vmatpush.bf16.msrb.mxu1 %v2037_v54  ;;  %2205 = vmatpush.bf16.msrb.mxu0 %v2058_v49  ;;  %v5769_v54 = vpack.c.bf16 %v5767_v37, %v5768_v22 }
 0x28e   : > { %2222 = vmatpush.bf16.msrb.mxu2 %v2078_v16  ;;  %v5774_v16 = vld [vmem:[#allocation14_spill] sm:$0xff] }
 0x28f   : > { %v3263_v8 = vpop.permute.xlu1 %3262  ;;  %v3258_v49 = vpop.permute.xlu0 %3257  ;;  %v494_v48 = vsel %vm490_vm5, %v3010_v28, %v5774_v16 }
 0x290   : > { %v3264_v41 = vunpack.i.l.bf16 %v3263_v8  ;;  %v3259_v45 = vunpack.i.l.bf16 %v3258_v49  ;;  %v3265_v27 = vunpack.i.h.bf16 %v3263_v8  ;;  %v3260_v7 = vunpack.i.h.bf16 %v3258_v49  ;;  %v1484_v19 = vpop.permute.xlu2 %1483 }
 0x291   : > { %2183 = vmatpush.bf16.msrb.mxu1 %v2033_v10  ;;  %2206 = vmatpush.bf16.msrb.mxu0 %v2054_v38  ;;  %v1488_v4 = vsel %vm428_vm4, %v5773_v31, %v1484_v19  ;;  %v5778_v10 = vpack.c.bf16 %v5776_v30, %v5777_v25 }
 0x292   : > { %v1668_v32 = vsel %vm585_vm11, %v5770_v34, %v3259_v45  ;;  %v1728_v11 = vsel %vm523_vm6, %v3200_v5, %v3264_v41  ;;  %v617_v2 = vsel %vm585_vm11, %v3235_v53, %v3260_v7  ;;  %v677_v58 = vsel %vm523_vm6, %v3240_v57, %v3265_v27 }
 0x293   : > { %v2074_v36 = vpack.c.bf16 %v1728_v11, %v1668_v32  ;;  %v2038_v53 = vpack.c.bf16 %v677_v58, %v617_v2 }
 0x295   : > { %2184 = vmatpush.bf16.msrb.mxu1 %v5769_v54  ;;  %2207 = vmatpush.bf16.msrb.mxu0 %v2050_v44 }
 0x296   : > { %2223 = vmatpush.bf16.msrb.mxu2 %v2074_v36 }
 0x297   : > { %v1424_v5 = vpop.permute.xlu1 %1423  ;;  %v3268_v21 = vpop.permute.xlu0 %3267 }
 0x298   : > { %2185 = vmatmul.bf16.vlgmr.msrb.gmra.mxu1 %v5070_v46  ;;  %v3269_v44 = vunpack.i.l.bf16 %v3268_v21  ;;  %v3270_v40 = vunpack.i.h.bf16 %v3268_v21  ;;  %v1428_v12 = vsel %vm5772_vm0, %v3185_v3, %v1424_v5 }
 0x299   : > { %2208 = vmatpush.bf16.msrb.mxu0 %v2046_v26 }
 0x29a   : > { %v1608_v59 = vsel %vm552_vm12, %v3230_v55, %v3269_v44  ;;  %v556_v47 = vsel %vm552_vm12, %v3245_v42, %v3270_v40  ;;  %v2066_v55 = vpack.c.bf16 %v1488_v4, %v1428_v12 }
 0x29b   : > { %v2070_v29 = vpack.c.bf16 %v1608_v59, %v1548_v14  ;;  %v2034_v23 = vpack.c.bf16 %v556_v47, %v494_v48 }
 0x29d   : > { %2209 = vmatpush.bf16.msrb.mxu0 %v2042_v9  ;;  %2224 = vmatpush.bf16.msrb.mxu2 %v2070_v29 }
 0x29f   : > { %v1364_v0 = vpop.permute.xlu1 %1363  ;;  %v1304_v57 = vpop.permute.xlu0 %1303 }
 0x2a0   : > { %v1368_v3 = vsel %vm886_vm7, %v3220_v52, %v1364_v0  ;;  %v1308_v24 = vsel %vm5775_vm1, %v3215_v1, %v1304_v57  ;;  %v3475_v57 = vmov 1  }
 0x2a1   : > { %2210 = vmatpush.bf16.msrb.mxu0 %v2038_v53  ;;  %2225 = vmatpush.bf16.msrb.mxu2 %v2066_v55  ;;  %v2062_v42 = vpack.c.bf16 %v1368_v3, %v1308_v24  ;;  %v5332_v55 = vld [vmem:[%s5326_s26] sm:$0xff] }
 0x2a2   : > { %3274 = vset.pattern.permute.xlu2 %v3475_v57  ;;  %3273 = vset.pattern.permute.xlu1 %v3475_v57  ;;  %v2530_v48 = vadd.f32 1.0, %v5332_v55 }
 0x2a5   : > { %2211 = vmatpush.bf16.msrb.mxu0 %v2034_v23  ;;  %2226 = vmatpush.bf16.msrb.mxu2 %v2062_v42 }
 0x2a8   : > { %2871 = vmatmul.msk.bf16.vlgmr.msrb.gmra.mxu2 %vm2104_vm15, %v5032_v18  ;;  %v5294_v18 = vld [vmem:[%s5580_s5] sm:$0xff] }
 0x2a9   : > { %2212 = vmatpush.bf16.msrb.mxu0 %v5778_v10 }
 0x2ac   : > { %2213 = vmatmul.bf16.vlgmr.msrb.gmra.mxu0 %v5070_v46 }
 0x2e0   : > { %v2093_v56 = vpop.permute.xlu2 %2092 }
 0x2e6   : > { %v2172_v51 = vpop.f32.mrf.mxu3 }
 0x2e9   : > { %v2088_v17 = vpop.permute.xlu0 %2087 }
 0x2ee   : > { %v2174_v38 = vpop.f32.mrf.mxu3 }
 0x2f2   : > { %v2158_v52 = vpop.f32.mrf.mxu2 }
 0x2f3   : > { %v2159_v28 = vadd.f32 %v2158_v52, %v2088_v17 }
 0x2f5   : > { %v5287_v49 = vadd.f32 %v2172_v51, %v2159_v28  ;;  %v2144_v41 = vpop.f32.mrf.mxu1 }
 0x2fa   : > { %v2160_v1 = vpop.f32.mrf.mxu2 }
 0x2fb   : > { %v2161_v63 = vadd.f32 %v2160_v1, %v2093_v56  ;;  %v2200_v13 = vpop.f32.mrf.mxu3 }
 0x2fd   : > { %v5285_v8 = vadd.f32 %v2174_v38, %v2161_v63  ;;  %v2146_v46 = vpop.f32.mrf.mxu1 }
 0x2ff   : > { %2279 = vmatpush.msra.mxu1 %v5285_v8 }
 0x301   : > { %2280 = vmatpush.msra.mxu1 %v5287_v49 }
 0x302   : > { %2874 = vmatmul.msk.f32.vlgmr.msra.gmra.mxu1 %vm2235_vm2, %v5294_v18 }
 0x303   : > { %v2202_v11 = vpop.f32.mrf.mxu3 }
 0x309   : > { %v2130_v45 = vpop.f32.mrf.mxu0 }
 0x30a   : > { %2875 = vmatmul.msk.f32.gmra.mxu1 %vm2235_vm2, %v5301_v15  ;;  %v2131_v39 = vadd.f32 %v2130_v45, %v2088_v17  ;;  %v3476_v45 = vmov 2  }
 0x30b   : > { %3275 = vset.pattern.permute.xlu0 %v3476_v45 }
 0x30c   : > { %v2145_v54 = vadd.f32 %v2144_v41, %v2131_v39 }
 0x311   : > { %v2132_v50 = vpop.f32.mrf.mxu0 }
 0x312   : > { %v2133_v62 = vadd.f32 %v2132_v50, %v2093_v56 }
 0x314   : > { %v5305_v22 = vadd.f32 %v2146_v46, %v2133_v62 }
 0x315   : > { %v2186_v37 = vpop.f32.mrf.mxu1 }
 0x316   : > { %2256 = vmatpush.msra.mxu3 %v5305_v22  ;;  %v2187_v34 = vadd.f32 %v2186_v37, %v2088_v17 }
 0x318   : > { %2257 = vmatpush.msra.mxu3 %v2145_v54  ;;  %v2201_v6 = vadd.f32 %v2200_v13, %v2187_v34 }
 0x319   : > { %2872 = vmatmul.msk.f32.vlgmr.msra.gmra.mxu3 %vm2235_vm2, %v5294_v18 }
 0x31d   : > { %v2188_v32 = vpop.f32.mrf.mxu1 }
 0x31e   : > { %v2189_v61 = vadd.f32 %v2188_v32, %v2093_v56 }
 0x320   : > { %v2203_v36 = vadd.f32 %v2202_v11, %v2189_v61 }
 0x321   : > { %2873 = vmatmul.msk.f32.gmra.mxu3 %vm2235_vm2, %v5301_v15 }
 0x322   : > { %2302 = vmatpush.msra.mxu2 %v2203_v36 }
 0x324   : > { %2303 = vmatpush.msra.mxu2 %v2201_v6 }
 0x325   : > { %2876 = vmatmul.msk.f32.vlgmr.msra.gmra.mxu2 %vm2235_vm2, %v5294_v18 }
 0x329   : > { %v2214_v26 = vpop.f32.mrf.mxu0 }
 0x32a   : > { %v2215_v5 = vadd.f32 %v2214_v26, %v2088_v17 }
 0x32b   : > { %v2228_v27 = vpop.f32.mrf.mxu2 }
 0x32c   : > { %v2229_v44 = vadd.f32 %v2228_v27, %v2215_v5 }
 0x32d   : > { %2877 = vmatmul.msk.f32.gmra.mxu2 %vm2235_vm2, %v5301_v15 }
 0x331   : > { %v2216_v7 = vpop.f32.mrf.mxu0 }
 0x332   : > { %v2217_v60 = vadd.f32 %v2216_v7, %v2093_v56 }
 0x333   : > { %v2230_v20 = vpop.f32.mrf.mxu2 }
 0x334   : > { %v2231_v21 = vadd.f32 %v2230_v20, %v2217_v60 }
 0x336   : > { %2325 = vmatpush.msra.mxu0 %v2231_v21  ;;  %2898 = vmatpush.msrb.mxu3 %v2231_v21 }
 0x338   : > { %2326 = vmatpush.msra.mxu0 %v2229_v44  ;;  %2899 = vmatpush.msrb.mxu3 %v2229_v44 }
 0x339   : > { %2878 = vmatmul.msk.f32.vlgmr.msra.gmra.mxu0 %vm2235_vm2, %v5294_v18  ;;  %2879 = vmatmul.msk.f32.vlgmr.msrb.gmra.mxu3 %vm2235_vm2, %v5301_v15 }
 0x37f   : > { %v2282_v40 = vpop.f32.mrf.mxu1 }
 0x387   : > { %v2285_v59 = vpop.f32.mrf.mxu1 }
 0x39c   : > { %v2259_v9 = vpop.f32.mrf.mxu3 }
 0x39d   : > { %v2334_v58 = vadd.f32 %v2282_v40, %v2259_v9 }
 0x3a4   : > { %v2262_v14 = vpop.f32.mrf.mxu3 }
 0x3a5   : > { %v2339_v12 = vadd.f32 %v2285_v59, %v2262_v14 }
 0x3a8   : > { %v2305_v2 = vpop.f32.mrf.mxu2 }
 0x3a9   : > { %v2335_v19 = vadd.f32 %v2334_v58, %v2305_v2 }
 0x3b0   : > { %v2308_v47 = vpop.f32.mrf.mxu2 }
 0x3b1   : > { %v2340_v31 = vadd.f32 %v2339_v12, %v2308_v47 }
 0x3b6   : > { %v2328_v29 = vpop.f32.mrf.mxu0 }
 0x3b7   : > { %v2336_v53 = vadd.f32 %v2335_v19, %v2328_v29 }
 0x3b9   : > { %2337 = vadd.xlane.f32.xlu2 %v2336_v53 }
 0x3bc   : > { %v2331_v4 = vpop.f32.mrf.mxu3 }
 0x3bd   : > { %v2341_v0 = vadd.f32 %v2340_v31, %v2331_v4 }
 0x3bf   : > { %2342 = vadd.xlane.f32.xlu1 %v2341_v0 }
 0x3d1   : > { %2501 = vperm.xlu2 %3274, %v5207_v43  }
 0x3d8   : > { %2497 = vperm.xlu1 %3273, %v5132_v35  }
 0x3d9   : > { %3277 = vset.pattern.permute.xlu2 %v3474_v33 }
 0x3da   : > { %2534 = vperm.xlu2 %3277, %v2530_v48  }
 0x3e0   : > { %3276 = vset.pattern.permute.xlu1 %v3476_v45 }
 0x3e1   : > { %2517 = vperm.xlu1 %3276, %v5207_v43  }
 0x3e2   : > { %3279 = vset.pattern.permute.xlu2 %v3475_v57 }
 0x3e9   : > { %3278 = vset.pattern.permute.xlu1 %v3474_v33 }
 0x42c   : > { %v2338_v16 = vpop.xlane.xlu2 %2337 }
 0x42d   : > { %v2344_v3 = vmul.f32 0.0009765625, %v2338_v16 }
 0x42f   : > { %v5336_v42 = vsub.f32 %v2145_v54, %v2344_v3  ;;  %v5339_v30 = vsub.f32 %v5287_v49, %v2344_v3  ;;  %v5351_v17 = vsub.f32 %v2201_v6, %v2344_v3  ;;  %v5353_v56 = vsub.f32 %v2229_v44, %v2344_v3 }
 0x431   : > { %v2355_v49 = vmul.f32 %v5339_v30, %v5339_v30  ;;  %v2356_v41 = vmul.f32 %v5351_v17, %v5351_v17  ;;  %v2357_v46 = vmul.f32 %v5353_v56, %v5353_v56 }
 0x432   : > { %v2343_v24 = vpop.xlane.xlu1 %2342 }
 0x433   : > { %v2345_v23 = vmul.f32 0.0009765625, %v2343_v24 }
 0x435   : > { %v5342_v25 = vsub.f32 %v5305_v22, %v2345_v23  ;;  %v5345_v10 = vsub.f32 %v5285_v8, %v2345_v23  ;;  %v5347_v51 = vsub.f32 %v2203_v36, %v2345_v23  ;;  %v5349_v52 = vsub.f32 %v2231_v21, %v2345_v23  ;;  %v2502_v36 = vpop.permute.xlu2 %2501 }
 0x436   : > { %v2354_v8 = vmul.f32 %v5336_v42, %v5336_v42 }
 0x437   : > { %v2358_v28 = vmul.f32 %v5342_v25, %v5342_v25  ;;  %v2359_v1 = vmul.f32 %v5345_v10, %v5345_v10  ;;  %v2360_v38 = vmul.f32 %v5347_v51, %v5347_v51  ;;  %v2361_v63 = vmul.f32 %v5349_v52, %v5349_v52 }
 0x439   : > { %2376 = vmatpush.msra.mxu3 %v2358_v28  ;;  %2399 = vmatpush.msrb.mxu1 %v2359_v1 }
 0x43a   : > { %2422 = vmatpush.msrb.mxu2 %v2360_v38  ;;  %2445 = vmatpush.msrb.mxu0 %v2361_v63 }
 0x43b   : > { %2377 = vmatpush.msra.mxu3 %v2354_v8  ;;  %2400 = vmatpush.msrb.mxu1 %v2355_v49 }
 0x43c   : > { %2423 = vmatpush.msrb.mxu2 %v2356_v41  ;;  %2446 = vmatpush.msrb.mxu0 %v2357_v46 }
 0x43d   : > { %2880 = vmatmul.msk.f32.vlgmr.msra.gmra.mxu3 %vm2235_vm2, %v5294_v18  ;;  %2884 = vmatmul.msk.f32.vlgmr.msrb.gmra.mxu2 %vm2235_vm2, %v5294_v18  ;;  %v2535_v26 = vpop.permute.xlu2 %2534 }
 0x43e   : > { %2882 = vmatmul.msk.f32.vlgmr.msrb.gmra.mxu1 %vm2235_vm2, %v5294_v18  ;;  %2886 = vmatmul.msk.f32.vlgmr.msrb.gmra.mxu0 %vm2235_vm2, %v5294_v18  ;;  %v2529_v18 = vld [vmem:[%s5326_s26 + $0x8] sm:$0xff] }
 0x43f   : > { %v2531_v50 = vadd.f32 1.0, %v2529_v18 }
 0x441   : > { %2539 = vperm.xlu1 %3278, %v2531_v50  }
 0x445   : > { %2881 = vmatmul.msk.f32.gmra.mxu3 %vm2235_vm2, %v5301_v15  ;;  %2885 = vmatmul.msk.f32.gmra.mxu2 %vm2235_vm2, %v5301_v15 }
 0x446   : > { %2883 = vmatmul.msk.f32.gmra.mxu1 %vm2235_vm2, %v5301_v15  ;;  %2887 = vmatmul.msk.f32.gmra.mxu0 %vm2235_vm2, %v5301_v15 }
 0x449   : > { %3280 = vset.pattern.permute.xlu1 %v3475_v57 }
 0x44a   : > { %2557 = vperm.xlu1 %3280, %v2529_v18   ;;  %v2498_v20 = vpop.permute.xlu1 %2497 }
 0x4bb   : > { %v2402_v13 = vpop.f32.mrf.mxu1  ;;  %v2448_v39 = vpop.f32.mrf.mxu0 }
 0x4c0   : > { %v2379_v62 = vpop.f32.mrf.mxu3  ;;  %v2425_v37 = vpop.f32.mrf.mxu2 }
 0x4c1   : > { %v2454_v22 = vadd.f32 %v2402_v13, %v2379_v62 }
 0x4c3   : > { %v2455_v54 = vadd.f32 %v2454_v22, %v2425_v37  ;;  %v2405_v32 = vpop.f32.mrf.mxu1  ;;  %v2451_v61 = vpop.f32.mrf.mxu0 }
 0x4c5   : > { %v2456_v34 = vadd.f32 %v2455_v54, %v2448_v39 }
 0x4c7   : > { %2457 = vadd.xlane.f32.xlu0 %v2456_v34 }
 0x4c8   : > { %v2382_v15 = vpop.f32.mrf.mxu3  ;;  %v2428_v11 = vpop.f32.mrf.mxu2 }
 0x4c9   : > { %v2459_v43 = vadd.f32 %v2405_v32, %v2382_v15 }
 0x4cb   : > { %v2460_v33 = vadd.f32 %v2459_v43, %v2428_v11 }
 0x4cd   : > { %v2461_v6 = vadd.f32 %v2460_v33, %v2451_v61 }
 0x4cf   : > { %2462 = vadd.xlane.f32.xlu2 %v2461_v6 }
 0x4db   : > { %2513 = vperm.xlu0 %3275, %v5132_v35   ;;  %v2518_v35 = vpop.permute.xlu1 %2517 }
 0x4e3   : > { %3281 = vset.pattern.permute.xlu0 %v3475_v57  ;;  %v2540_v28 = vpop.permute.xlu1 %2539 }
 0x4e7   : > { %2552 = vperm.xlu2 %3279, %v5332_v55  }
 0x53a   : > { %v2458_v27 = vpop.xlane.xlu0 %2457 }
 0x53b   : > { %v2464_v7 = vmul.f32 0.0009765625, %v2458_v27 }
 0x53d   : > { %v2466_v60 = vadd.f32 1e-05, %v2464_v7  ;;  %v2558_v7 = vpop.permute.xlu1 %2557 }
 0x53f   : > { %3282 = vrsqrt.f32 %v2466_v60  ;;  %vm2474_vm4 = vweird.f32 %v2466_v60 }
 0x542   : > { %v2463_v5 = vpop.xlane.xlu2 %2462 }
 0x543   : > { %v2465_v21 = vmul.f32 0.0009765625, %v2463_v5 }
 0x545   : > { %v3283_v44 = vpop.eup %3282  ;;  %v2467_v9 = vadd.f32 1e-05, %v2465_v21 }
 0x546   : > { %v2469_v40 = vmul.f32 %v3283_v44, %v2466_v60  ;;  %vm2475_vm3 = vweird.f32 %v3283_v44 }
 0x547   : > { %3284 = vrsqrt.f32 %v2467_v9  ;;  %vm2476_vm5 = vmor %vm2474_vm4, %vm2475_vm3  ;;  %vm2484_vm7 = vweird.f32 %v2467_v9 }
 0x548   : > { %v2470_v2 = vmul.f32 %v3283_v44, %v2469_v40 }
 0x54a   : > { %v2471_v58 = vmul.f32 0.5, %v2470_v2 }
 0x54c   : > { %v2472_v14 = vsub.f32 1.5, %v2471_v58 }
 0x54d   : > { %v3285_v59 = vpop.eup %3284  ;;  %v2514_v55 = vpop.permute.xlu0 %2513 }
 0x54e   : > { %v2473_v19 = vmul.f32 %v3283_v44, %v2472_v14  ;;  %v2479_v29 = vmul.f32 %v3285_v59, %v2467_v9  ;;  %vm2485_vm6 = vweird.f32 %v3285_v59 }
 0x54f   : > { %vm2486_vm11 = vmor %vm2484_vm7, %vm2485_vm6 }
 0x550   : > { %v2477_v12 = vsel %vm2476_vm5, %v3283_v44, %v2473_v19  ;;  %v2480_v53 = vmul.f32 %v3285_v59, %v2479_v29 }
 0x551   : > { %v2488_v47 = vmul.f32 %v2477_v12, %v5336_v42  ;;  %v2489_v31 = vmul.f32 %v2477_v12, %v5339_v30  ;;  %v2490_v4 = vmul.f32 %v2477_v12, %v5351_v17  ;;  %v2491_v0 = vmul.f32 %v2477_v12, %v5353_v56  ;;  %v2553_v30 = vpop.permute.xlu2 %2552 }
 0x552   : > { %v2481_v57 = vmul.f32 0.5, %v2480_v53 }
 0x553   : > { %v2504_v16 = vmul.f32 %v2498_v20, %v2488_v47  ;;  %v2505_v48 = vmul.f32 %v2498_v20, %v2489_v31  ;;  %v2506_v3 = vmul.f32 %v2498_v20, %v2490_v4  ;;  %v2507_v24 = vmul.f32 %v2498_v20, %v2491_v0 }
 0x554   : > { %v2482_v23 = vsub.f32 1.5, %v2481_v57 }
 0x555   : > { %v2520_v1 = vadd.f32 %v2514_v55, %v2504_v16  ;;  %v2521_v38 = vadd.f32 %v2514_v55, %v2505_v48  ;;  %v2522_v63 = vadd.f32 %v2514_v55, %v2506_v3  ;;  %v2523_v8 = vadd.f32 %v2514_v55, %v2507_v24 }
 0x556   : > { %v2483_v42 = vmul.f32 %v3285_v59, %v2482_v23 }
 0x557   : > { %v2542_v17 = vmul.f32 %v2535_v26, %v2520_v1  ;;  %v2543_v49 = vmul.f32 %v2535_v26, %v2521_v38  ;;  %v2544_v56 = vmul.f32 %v2535_v26, %v2522_v63  ;;  %v2545_v41 = vmul.f32 %v2535_v26, %v2523_v8 }
 0x558   : > { %v2487_v46 = vsel %vm2486_vm11, %v3285_v59, %v2483_v42 }
 0x559   : > { %v2492_v45 = vmul.f32 %v2487_v46, %v5342_v25  ;;  %v2493_v18 = vmul.f32 %v2487_v46, %v5345_v10  ;;  %v2494_v13 = vmul.f32 %v2487_v46, %v5347_v51  ;;  %v2495_v50 = vmul.f32 %v2487_v46, %v5349_v52 }
 0x55a   : > { %v5403_v39 = vadd.f32 %v2553_v30, %v2542_v17  ;;  %v5405_v62 = vadd.f32 %v2553_v30, %v2543_v49  ;;  %v5407_v37 = vadd.f32 %v2553_v30, %v2544_v56  ;;  %v5409_v22 = vadd.f32 %v2553_v30, %v2545_v41 }
 0x55b   : > { %v2508_v54 = vmul.f32 %v2502_v36, %v2492_v45  ;;  %v2509_v34 = vmul.f32 %v2502_v36, %v2493_v18  ;;  %v2510_v32 = vmul.f32 %v2502_v36, %v2494_v13  ;;  %v2511_v15 = vmul.f32 %v2502_v36, %v2495_v50 }
 0x55c   : > { %v2568_v25 = vsub.f32 0.0, %v5403_v39  ;;  %v2569_v10 = vsub.f32 0.0, %v5405_v62  ;;  %v2570_v51 = vsub.f32 0.0, %v5407_v37  ;;  %v2571_v52 = vsub.f32 0.0, %v5409_v22 }
 0x55d   : > { %v2524_v11 = vadd.f32 %v2518_v35, %v2508_v54  ;;  %v2525_v43 = vadd.f32 %v2518_v35, %v2509_v34  ;;  %v2526_v61 = vadd.f32 %v2518_v35, %v2510_v32  ;;  %v2527_v33 = vadd.f32 %v2518_v35, %v2511_v15 }
 0x55e   : > { %v2576_v6 = vmul.f32 1.442695, %v2568_v25  ;;  %v2578_v26 = vmul.f32 1.442695, %v2569_v10  ;;  %v2580_v27 = vmul.f32 1.442695, %v2570_v51 }
 0x55f   : > { %v2582_v60 = vmul.f32 1.442695, %v2571_v52  ;;  %v2546_v20 = vmul.f32 %v2540_v28, %v2524_v11  ;;  %v2547_v5 = vmul.f32 %v2540_v28, %v2525_v43  ;;  %v2548_v36 = vmul.f32 %v2540_v28, %v2526_v61 }
 0x560   : > { %3286 = vpow2.f32 %v2576_v6  ;;  %v2549_v21 = vmul.f32 %v2540_v28, %v2527_v33 }
 0x561   : > { %3288 = vpow2.f32 %v2578_v26  ;;  %v5415_v44 = vadd.f32 %v2558_v7, %v2546_v20  ;;  %v5417_v9 = vadd.f32 %v2558_v7, %v2547_v5  ;;  %v5419_v40 = vadd.f32 %v2558_v7, %v2548_v36 }
 0x562   : > { %3290 = vpow2.f32 %v2580_v27  ;;  %v5423_v35 = vadd.f32 %v2558_v7, %v2549_v21 }
 0x563   : > { %3292 = vpow2.f32 %v2582_v60  ;;  %v2572_v2 = vsub.f32 0.0, %v5415_v44  ;;  %v2573_v58 = vsub.f32 0.0, %v5417_v9  ;;  %v2574_v53 = vsub.f32 0.0, %v5419_v40 }
 0x564   : > { %v2575_v57 = vsub.f32 0.0, %v5423_v35 }
 0x565   : > { %v2584_v14 = vmul.f32 1.442695, %v2572_v2  ;;  %v2586_v59 = vmul.f32 1.442695, %v2573_v58  ;;  %v2588_v16 = vmul.f32 1.442695, %v2574_v53 }
 0x566   : > { %v3287_v19 = vpop.eup %3286  ;;  %v2590_v1 = vmul.f32 1.442695, %v2575_v57 }
 0x567   : > { %v3289_v29 = vpop.eup %3288  ;;  %v5425_v12 = vadd.f32 1.0, %v3287_v19  ;;  %3294 = vpow2.f32 %v2584_v14 }
 0x568   : > { %v3291_v47 = vpop.eup %3290  ;;  %v5428_v31 = vadd.f32 1.0, %v3289_v29  ;;  %3296 = vpow2.f32 %v2586_v59 }
 0x569   : > { %v3293_v4 = vpop.eup %3292  ;;  %v5430_v0 = vadd.f32 1.0, %v3291_v47  ;;  %3298 = vrcp.f32 %v5425_v12  ;;  %v2609_v48 = vand.u32 2147483647, %v5425_v12  ;;  %v2611_v3 = vand.u32 2147483648, %v5425_v12 }
 0x56a   : > { %v5434_v55 = vadd.f32 1.0, %v3293_v4  ;;  %3300 = vrcp.f32 %v5428_v31  ;;  %v2624_v23 = vand.u32 2147483647, %v5428_v31  ;;  %v2626_v28 = vand.u32 2147483648, %v5428_v31 }
 0x56b   : > { %3302 = vrcp.f32 %v5430_v0  ;;  %vm2605_vm12 = vweird.f32 %v5425_v12  ;;  %vm2620_vm15 = vweird.f32 %v5428_v31  ;;  %v2639_v8 = vand.u32 2147483647, %v5430_v0 }
 0x56c   : > { %3304 = vrcp.f32 %v5434_v55  ;;  %vm5451_vm10 = vcmp.eq.f32.partialorder %v2609_v48, 8.507059e+37  ;;  %v2612_v41 = vor.u32 1.1754944e-38, %v2611_v3  ;;  %vm2635_vm14 = vweird.f32 %v5430_v0 }
 0x56d   : > { %v3295_v24 = vpop.eup %3294  ;;  %3306 = vpow2.f32 %v2588_v16  ;;  %v2641_v46 = vand.u32 2147483648, %v5430_v0  ;;  %vm5458_vm13 = vcmp.eq.f32.partialorder %v2624_v23, 8.507059e+37  ;;  %v2627_v50 = vor.u32 1.1754944e-38, %v2626_v28 }
 0x56e   : > { %v3297_v38 = vpop.eup %3296  ;;  %v5446_v42 = vadd.f32 1.0, %v3295_v24  ;;  %v2654_v54 = vand.u32 2147483647, %v5434_v55  ;;  %3308 = vpow2.f32 %v2590_v1  ;;  %vm2650_vm9 = vweird.f32 %v5434_v55 }
 0x56f   : > { %v3299_v63 = vpop.eup %3298  ;;  %v5448_v30 = vadd.f32 1.0, %v3297_v38  ;;  %vm5466_vm8 = vcmp.eq.f32.partialorder %v2639_v8, 8.507059e+37  ;;  %v2656_v51 = vand.u32 2147483648, %v5434_v55  ;;  %v2642_v6 = vor.u32 1.1754944e-38, %v2641_v46 }
 0x570   : > { %v3301_v17 = vpop.eup %3300  ;;  %v2601_v49 = vmul.f32 %v3299_v63, %v5425_v12  ;;  %3310 = vrcp.f32 %v5446_v42  ;;  %vm2606_vm0 = vweird.f32 %v3299_v63  ;;  %vm5473_vm2 = vcmp.eq.f32.partialorder %v2654_v54, 8.507059e+37 }
 0x571   : > { %v3303_v45 = vpop.eup %3302  ;;  %v2616_v18 = vmul.f32 %v3301_v17, %v5428_v31  ;;  %3312 = vrcp.f32 %v5448_v30  ;;  %vm2621_vm1 = vweird.f32 %v3301_v17  ;;  %vm2607_vm4 = vmor %vm2605_vm12, %vm2606_vm0  ;;  %v2657_v36 = vor.u32 1.1754944e-38, %v2656_v51 }
 0x572   : > { %v2602_v34 = vsub.f32 1.0, %v2601_v49  ;;  %v2631_v32 = vmul.f32 %v3303_v45, %v5430_v0  ;;  %v3305_v15 = vpop.eup %3304  ;;  %vm2636_vm3 = vweird.f32 %v3303_v45  ;;  %vm2665_vm6 = vweird.f32 %v5446_v42  ;;  %vm2622_vm7 = vmor %vm2620_vm15, %vm2621_vm1 }
 0x573   : > { %v2617_v25 = vsub.f32 1.0, %v2616_v18  ;;  %v2646_v43 = vmul.f32 %v3305_v15, %v5434_v55  ;;  %v3307_v61 = vpop.eup %3306  ;;  %vm2651_vm5 = vweird.f32 %v3305_v15  ;;  %vm2637_vm11 = vmor %vm2635_vm14, %vm2636_vm3  ;;  %v2671_v55 = vand.u32 2147483648, %v5446_v42 }
 0x574   : > { %v2603_v52 = vmul.f32 %v3299_v63, %v2602_v34  ;;  %v2632_v11 = vsub.f32 1.0, %v2631_v32  ;;  %v3309_v20 = vpop.eup %3308  ;;  %v5484_v59 = vadd.f32 1.0, %v3307_v61  ;;  %vm2652_vm12 = vmor %vm2650_vm9, %vm2651_vm5  ;;  %v2686_v8 = vand.u32 2147483648, %v5448_v30 }
 0x575   : > { %v2618_v33 = vmul.f32 %v3301_v17, %v2617_v25  ;;  %v2647_v60 = vsub.f32 1.0, %v2646_v43  ;;  %v5491_v53 = vadd.f32 1.0, %v3309_v20  ;;  %v2672_v56 = vor.u32 1.1754944e-38, %v2671_v55 }
 0x576   : > { %v2604_v27 = vadd.f32 %v3299_v63, %v2603_v52  ;;  %v2633_v7 = vmul.f32 %v3303_v45, %v2632_v11  ;;  %v3311_v21 = vpop.eup %3310  ;;  %3314 = vrcp.f32 %v5484_v59  ;;  %vm2680_vm9 = vweird.f32 %v5448_v30 }
 0x577   : > { %v2619_v5 = vadd.f32 %v3301_v17, %v2618_v33  ;;  %v2648_v14 = vmul.f32 %v3305_v15, %v2647_v60  ;;  %v3313_v19 = vpop.eup %3312  ;;  %v2661_v47 = vmul.f32 %v3311_v21, %v5446_v42  ;;  %vm2666_vm15 = vweird.f32 %v3311_v21 }
 0x578   : > { %v2608_v2 = vsel %vm2607_vm4, %v3299_v63, %v2604_v27  ;;  %v2634_v58 = vadd.f32 %v3303_v45, %v2633_v7  ;;  %v2676_v24 = vmul.f32 %v3313_v19, %v5448_v30  ;;  %v2684_v63 = vand.u32 2147483647, %v5448_v30  ;;  %vm2667_vm14 = vmor %vm2665_vm6, %vm2666_vm15 }
 0x579   : > { %v2613_v29 = vsel %vm5451_vm10, %v2612_v41, %v2608_v2  ;;  %v2623_v12 = vsel %vm2622_vm7, %v3301_v17, %v2619_v5  ;;  %v2649_v57 = vadd.f32 %v3305_v15, %v2648_v14  ;;  %v2662_v3 = vsub.f32 1.0, %v2661_v47 }
 0x57a   : > { %v2628_v31 = vsel %vm5458_vm13, %v2627_v50, %v2623_v12  ;;  %v2638_v4 = vsel %vm2637_vm11, %v3303_v45, %v2634_v58  ;;  %v2720_v16 = vmul.f32 %v2613_v29, %v5403_v39  ;;  %v2669_v39 = vand.u32 2147483647, %v5446_v42 }
 0x57b   : > { %v2643_v48 = vsel %vm5466_vm8, %v2642_v6, %v2638_v4  ;;  %v2721_v0 = vmul.f32 %v2628_v31, %v5405_v62  ;;  %v2653_v23 = vsel %vm2652_vm12, %v3305_v15, %v2649_v57  ;;  %v2663_v1 = vmul.f32 %v3311_v21, %v2662_v3 }
 0x57c   : > { %v2722_v28 = vmul.f32 %v2643_v48, %v5407_v37  ;;  %2728 = vst [vmem:[%s5507_s7] sm:$0xff] %v2720_v16  ;;  %v2658_v62 = vsel %vm5473_vm2, %v2657_v36, %v2653_v23  ;;  %v2677_v38 = vsub.f32 1.0, %v2676_v24  ;;  %vm2681_vm10 = vweird.f32 %v3313_v19  ;;  %v3315_v50 = vpop.eup %3314 }
 0x57d   : > { %2729 = vst [vmem:[%s5507_s7 + $0x8] sm:$0xff] %v2721_v0  ;;  %v2723_v37 = vmul.f32 %v2658_v62, %v5409_v22  ;;  %v2664_v17 = vadd.f32 %v3311_v21, %v2663_v1  ;;  %3316 = vrcp.f32 %v5491_v53  ;;  %vm2670_vm13 = vcmp.eq.f32.partialorder %v2669_v39, 8.507059e+37  ;;  %vm2682_vm8 = vmor %vm2680_vm9, %vm2681_vm10 }
 0x57e   : > { %2730 = vst [vmem:[%s5507_s7 + $0x10] sm:$0xff] %v2722_v28  ;;  %v2678_v49 = vmul.f32 %v3313_v19, %v2677_v38  ;;  %v2687_v45 = vor.u32 1.1754944e-38, %v2686_v8  ;;  %vm2685_vm0 = vcmp.eq.f32.partialorder %v2684_v63, 8.507059e+37  ;;  %v2691_v34 = vmul.f32 %v3315_v50, %v5484_v59 }
 0x57f   : > { %2731 = vst [vmem:[%s5507_s7 + $0x18] sm:$0xff] %v2723_v37  ;;  %v2668_v41 = vsel %vm2667_vm14, %v3311_v21, %v2664_v17  ;;  %v2701_v25 = vand.u32 2147483648, %v5484_v59  ;;  %vm2696_vm1 = vweird.f32 %v3315_v50  ;;  %v2716_v52 = vand.u32 2147483648, %v5491_v53 }
 0x580   : > { %v2679_v22 = vadd.f32 %v3313_v19, %v2678_v49  ;;  %v2673_v46 = vsel %vm2670_vm13, %v2672_v56, %v2668_v41  ;;  %v2692_v30 = vsub.f32 1.0, %v2691_v34  ;;  %v2714_v11 = vand.u32 2147483647, %v5491_v53 }
 0x581   : > { %v2724_v13 = vmul.f32 %v2673_v46, %v5415_v44  ;;  %v2699_v44 = vand.u32 2147483647, %v5484_v59  ;;  %vm2695_vm3 = vweird.f32 %v5484_v59  ;;  %v2702_v61 = vor.u32 1.1754944e-38, %v2701_v25 }
 0x582   : > { %v2683_v18 = vsel %vm2682_vm8, %v3313_v19, %v2679_v22  ;;  %v2693_v51 = vmul.f32 %v3315_v50, %v2692_v30  ;;  %vm2697_vm4 = vmor %vm2695_vm3, %vm2696_vm1  ;;  %vm2710_vm5 = vweird.f32 %v5491_v53  ;;  %v2717_v26 = vor.u32 1.1754944e-38, %v2716_v52 }
 0x583   : > { %v2688_v54 = vsel %vm2685_vm0, %v2687_v45, %v2683_v18  ;;  %v3317_v42 = vpop.eup %3316  ;;  %2732 = vst [vmem:[%s5507_s7 + $0x20] sm:$0xff] %v2724_v13  ;;  %vm2700_vm6 = vcmp.eq.f32.partialorder %v2699_v44, 8.507059e+37  ;;  %vm2715_vm11 = vcmp.eq.f32.partialorder %v2714_v11, 8.507059e+37 }
 0x584   : > { %v2725_v32 = vmul.f32 %v2688_v54, %v5417_v9  ;;  %v2706_v15 = vmul.f32 %v3317_v42, %v5491_v53  ;;  %vm2711_vm2 = vweird.f32 %v3317_v42  ;;  %v2694_v43 = vadd.f32 %v3315_v50, %v2693_v51 }
 0x585   : > { %vm2712_vm7 = vmor %vm2710_vm5, %vm2711_vm2 }
 0x586   : > { %2733 = vst [vmem:[%s5507_s7 + $0x28] sm:$0xff] %v2725_v32  ;;  %v2707_v10 = vsub.f32 1.0, %v2706_v15  ;;  %v2698_v6 = vsel %vm2697_vm4, %v3315_v50, %v2694_v43 }
 0x587   : > { %v2703_v27 = vsel %vm2700_vm6, %v2702_v61, %v2698_v6 }
 0x588   : > { %v2708_v9 = vmul.f32 %v3317_v42, %v2707_v10  ;;  %v2726_v20 = vmul.f32 %v2703_v27, %v5419_v40 }
 0x58a   : > { %v2709_v33 = vadd.f32 %v3317_v42, %v2708_v9  ;;  %2734 = vst [vmem:[%s5507_s7 + $0x30] sm:$0xff] %v2726_v20 }
 0x58c   : > { %v2713_v7 = vsel %vm2712_vm7, %v3317_v42, %v2709_v33 }
 0x58d   : > { %v2718_v60 = vsel %vm2715_vm11, %v2717_v26, %v2713_v7 }
 0x58e   : > { %v2727_v5 = vmul.f32 %v2718_v60, %v5423_v35 }
 0x590   : > { %2735 = vst [vmem:[%s5507_s7 + $0x38] sm:$0xff] %v2727_v5 }
 0x591   : > { %3409 = shalt.err (!%p3406_p10)
}
 0x592   : > { %s3477_s17 = smov 512   ;;  %s3478_s7 = smov 32  }
 0x593   : > { %2906 = dma.vmem_to_hbm [thread:$0]  (%p3574_p13), %s2750_s28, 1024, %s2752_s30, %s2737_s29, %s3477_s17, %s3477_s17, %s3478_s7  }
 0x594 PF: > { %s2766_s20 = sand.u32 1, %s3440_s21   ;;  %p5787_p11 = scmp.ge.s32.totalorder %s3452_s24, 2 }
 0x595   : > { %s2767_s25 = scalar_lea.sflag [#allocation6], %s2766_s20 }
 0x596   : > { %p2917_p0 = pnand %p5787_p11, %p3579_p4 }
 0x598   : > { %p2918_p2 = pneg %p2917_p0 }
 0x59a   : > { %3435 = dma.done.wait (%p2918_p2), %s2767_s25, 1024  }
 0x59b   : > { %3437 = vsyncadd (%p2918_p2), %s2767_s25, 4294966272  ;;  %p20_p6 = scmp.ge.s32.totalorder %s3554_s11, 4   ;;  %s5788_s21 = smov %s3444_s22 }
 0x59c   : > { %s5789_s22 = smov %s3448_s23  ;;  %s5790_s23 = smov %s3566_s14 }
 0x59d   : > { %s5791_s24 = smov %s3554_s11  ;;  %22 = sbr.rel (!%p20_p6) target bundleno = 6 (0x6), region = 122 }
 0x5a2   :  { %2773 = vsyncpa [#allocation5], 1 }
 0x5a3   :  { %2775 = vsyncpa [#allocation5 + $0x1], 1 }
 0x5a4   :  { %2776 = vsyncpa [#allocation8], 1 }
 0x5a5   :  { %2777 = vsyncpa [#allocation6], 1 }
 0x5a6   :  { %2779 = vsyncpa [#allocation6 + $0x1], 1 }

</bundles_post_ra>
